<compile_context>
chip_gen: v6e
topology: v6e:2x2x1
jax: 0.10.0
libtpu: 0.0.40
codegen_flags: <defaults>
</compile_context>

<pallas_src>
import functools

import jax
import jax.numpy as jnp
from jax import lax
from jax.experimental import pallas as pl
from jax.experimental.pallas import tpu as pltpu


def _cdiv(a, b):
    return -(-a // b)


def _round_up(a, m):
    return _cdiv(a, m) * m


def _vmem_capacity_bytes():
    """Per-core VMEM capacity; conservative 64 MiB (v7x) fallback if unqueryable."""
    try:
        cap = int(pltpu.get_tpu_info().vmem_capacity_bytes)
        if cap > 0:
            return cap
    except Exception:
        pass
    return 64 * 1024 * 1024


def _lstm_layer_kernel(x_ref, wih_ref, whh_ref, b_ref, *refs,
                       t_chunk, last_valid, batch_pad, hidden_pad,
                       store_outputs, unroll):
    """One LSTM layer over one time-chunk.  Grid axis 0 = time chunks (sequential).

    x_ref  : (t_chunk*Bp, Dp)  bf16  chunk of layer inputs, rows grouped by time step
    wih_ref: (Dp, 4*Hp)        bf16  pre-transposed input->gate weights (per-gate Hp blocks)
    whh_ref: (Hp, 4*Hp)        bf16  pre-transposed hidden->gate weights
    b_ref  : (1, 4*Hp)         f32   combined bias (b_ih + b_hh), zero in padded lanes
    out_ref: (t_chunk*Bp, Hp)  bf16  per-step hidden outputs (only when store_outputs)
    hN_ref : (Bp, Hp)          f32   recurrent h state (VMEM-resident accumulator / final h)
    cN_ref : (Bp, Hp)          f32   recurrent c state (VMEM-resident accumulator / final c)
    gx_sc  : (t_chunk*Bp, 4Hp) f32   hoisted input projection (scratch)
    hout_sc: (t_chunk*Bp, Hp)  f32   per-step h staging; bulk-cast into out_ref (scratch)
    """
    if store_outputs:
        out_ref, hN_ref, cN_ref, gx_sc, hout_sc = refs
    else:
        hN_ref, cN_ref, gx_sc = refs
        out_ref = hout_sc = None

    chunk = pl.program_id(0)
    Bp, Hp = batch_pad, hidden_pad

    @pl.when(chunk == 0)
    def _():
        hN_ref[...] = jnp.zeros_like(hN_ref)
        cN_ref[...] = jnp.zeros_like(cN_ref)

    # Hoisted input projection: one (t_chunk*Bp, Dp) @ (Dp, 4Hp) bf16 MXU matmul per
    # chunk, f32 accumulation, combined bias folded in.
    gx_sc[...] = jnp.dot(x_ref[...].astype(jnp.bfloat16), wih_ref[...],
                         preferred_element_type=jnp.float32) + b_ref[...]

    whh = whh_ref[...]            # (Hp, 4Hp) bf16, held across the recurrence
    # TODO(synk): for Hp <= 256 the recurrent RHS could be pinned in MXU staging
    # registers via pltpu.matmul_push_rhs / matmul_acc_lhs (per-step push removed).

    def step(t, carry):
        # h/c live in vregs across the whole chunk (no per-step VMEM round-trip).
        h_prev, c_prev = carry
        row = pl.multiple_of(t * Bp, Bp)
        gates = gx_sc[pl.ds(row, Bp), :] + jnp.dot(
            h_prev.astype(jnp.bfloat16), whh, preferred_element_type=jnp.float32)
        # PyTorch gate order i, f, g, o; each gate block is lane-aligned (Hp % 128 == 0).
        i_g = jax.nn.sigmoid(gates[:, 0 * Hp:1 * Hp])
        f_g = jax.nn.sigmoid(gates[:, 1 * Hp:2 * Hp])
        g_g = jnp.tanh(gates[:, 2 * Hp:3 * Hp])
        o_g = jax.nn.sigmoid(gates[:, 3 * Hp:4 * Hp])
        c_new = f_g * c_prev + i_g * g_g
        h_new = o_g * jnp.tanh(c_new)
        if hout_sc is not None:
            hout_sc[pl.ds(row, Bp), :] = h_new    # 8-row-aligned f32 store, off the dep chain
        return (h_new, c_new)

    def run(n_steps):   # n_steps is a Python int -> static trip count, unrollable
        h, c = lax.fori_loop(0, n_steps, step, (hN_ref[...], cN_ref[...]),
                             unroll=max(1, min(unroll, n_steps)))
        hN_ref[...] = h
        cN_ref[...] = c

    if last_valid == t_chunk:
        run(t_chunk)              # seq_len divides into full chunks: never any masking
    else:
        last_chunk = pl.num_programs(0) - 1

        @pl.when(chunk != last_chunk)
        def _():
            run(t_chunk)

        @pl.when(chunk == last_chunk)
        def _():
            # Last chunk just runs fewer (static) steps -- no per-step freeze masking.
            run(last_valid)
            if hout_sc is not None:
                pad_rows = (t_chunk - last_valid) * Bp
                hout_sc[pl.ds(last_valid * Bp, pad_rows), :] = jnp.zeros(
                    (pad_rows, Hp), jnp.float32)   # deterministic zeros for padded steps

    if out_ref is not None:
        # Single lane-dense bulk bf16 store of the whole chunk's outputs.
        out_ref[...] = hout_sc[...].astype(out_ref.dtype)


def lstm_layer(x2d, wih_t, whh_t, bias, *, seq_len, batch_pad, hidden_pad,
               store_outputs=True, max_chunk=64):
    """Run one LSTM layer over a flattened (time*batch, feature) bf16 sequence.

    x2d : (rows, Dp) bf16, rows grouped as [t0: b0..bBp-1, t1: ...]; Bp % 8 == 0,
          Dp % 128 == 0.
    Returns (outputs (s_pad*Bp, Hp) bf16, h_final (Bp, Hp) f32, c_final (Bp, Hp) f32),
    or just (h_final, c_final) when store_outputs=False.
    """
    Dp = x2d.shape[1]
    Bp, Hp = batch_pad, hidden_pad

    # ---- Generation-aware VMEM budget -> time-chunk size (128 MiB v5e/v6e, 64 MiB v7x).
    cap = _vmem_capacity_bytes()
    budget = int(0.6 * cap)
    act_bytes = 2                                    # bf16 activations
    per_step = (2 * Bp * Dp * act_bytes              # x block (double-buffered)
                + Bp * 4 * Hp * 4)                   # gx scratch (f32)
    if store_outputs:
        per_step += 2 * Bp * Hp * act_bytes + Bp * Hp * 4   # out block + hout scratch
    fixed = ((Dp + Hp) * 4 * Hp * 2 * 2              # bf16 weights (worst case 2 buffers)
             + 2 * 4 * Hp * 4                        # bias
             + 4 * Bp * Hp * 4)                      # hN/cN output blocks

    t_chunk = max(1, min(max_chunk, seq_len))
    while t_chunk > 2 and fixed + t_chunk * per_step > budget:
        t_chunk = (t_chunk + 1) // 2
    if t_chunk < seq_len and t_chunk % 2:
        t_chunk += 1                                 # keep bf16 block offsets 16-row aligned
    n_chunks = _cdiv(seq_len, t_chunk)
    s_pad = n_chunks * t_chunk
    last_valid = seq_len - (n_chunks - 1) * t_chunk  # valid steps in the last chunk

    rows_needed = s_pad * Bp
    if x2d.shape[0] < rows_needed:
        x2d = jnp.pad(x2d, ((0, rows_needed - x2d.shape[0]), (0, 0)))
    elif x2d.shape[0] > rows_needed:
        x2d = x2d[:rows_needed]

    est = fixed + t_chunk * per_step
    vmem_limit = int(min(max(2 * est, 32 * 1024 * 1024), int(0.85 * cap)))

    kernel = functools.partial(
        _lstm_layer_kernel, t_chunk=t_chunk, last_valid=last_valid,
        batch_pad=Bp, hidden_pad=Hp, store_outputs=store_outputs,
        unroll=max(1, min(8, 1024 // Hp)))           # unroll scales with vreg pressure

    out_shapes, out_specs = [], []
    if store_outputs:
        out_shapes.append(jax.ShapeDtypeStruct((rows_needed, Hp), jnp.bfloat16))
        out_specs.append(pl.BlockSpec((t_chunk * Bp, Hp), lambda c: (c, 0)))
    out_shapes.append(jax.ShapeDtypeStruct((Bp, Hp), jnp.float32))
    out_specs.append(pl.BlockSpec((Bp, Hp), lambda c: (0, 0)))
    out_shapes.append(jax.ShapeDtypeStruct((Bp, Hp), jnp.float32))
    out_specs.append(pl.BlockSpec((Bp, Hp), lambda c: (0, 0)))

    scratch_shapes = [pltpu.VMEM((t_chunk * Bp, 4 * Hp), jnp.float32)]
    if store_outputs:
        scratch_shapes.append(pltpu.VMEM((t_chunk * Bp, Hp), jnp.float32))

    def _const_spec(shape, single_buffer):
        index_map = lambda c: (0,) * len(shape)
        if single_buffer:
            # Constant-index weights: one buffer suffices; drops the dead second copy.
            return pl.BlockSpec(shape, index_map, pipeline_mode=pl.Buffered(1))
        return pl.BlockSpec(shape, index_map)

    def _call(single_buffer_weights):
        in_specs = [
            pl.BlockSpec((t_chunk * Bp, Dp), lambda c: (c, 0)),
            _const_spec((Dp, 4 * Hp), single_buffer_weights),
            _const_spec((Hp, 4 * Hp), single_buffer_weights),
            _const_spec((1, 4 * Hp), single_buffer_weights),
        ]
        grid_spec = pltpu.PrefetchScalarGridSpec(
            num_scalar_prefetch=0,
            grid=(n_chunks,),
            in_specs=in_specs,
            out_specs=out_specs,
            scratch_shapes=scratch_shapes)
        return pl.pallas_call(
            kernel,
            out_shape=tuple(out_shapes),
            grid_spec=grid_spec,
            compiler_params=pltpu.CompilerParams(
                dimension_semantics=("arbitrary",),   # recurrence: time is sequential
                vmem_limit_bytes=vmem_limit),
        )(x2d, wih_t, whh_t, bias)

    try:
        return _call(True)
    except Exception:
        # pipeline_mode=pl.Buffered(1) unsupported on this jax/libtpu combination:
        # fall back to default (double-buffered) weight specs.
        return _call(False)


def _pack_lstm_layer(w_ih, w_hh, b_ih, b_hh, d_pad, h_pad):
    """Pre-transpose / pad / cast one PyTorch-layout LSTM layer (gate order i,f,g,o).

    w_ih: (4H, D), w_hh: (4H, H), biases (4H,).  Each gate lands in its own
    lane-aligned h_pad-wide block; padded lanes stay zero, so padded hidden lanes
    remain exactly zero through the recurrence.
    """
    four_h, d = w_ih.shape
    h = four_h // 4
    b = (b_ih + b_hh).astype(jnp.float32)
    wih_t = jnp.zeros((d_pad, 4 * h_pad), jnp.float32)
    whh_t = jnp.zeros((h_pad, 4 * h_pad), jnp.float32)
    bias = jnp.zeros((1, 4 * h_pad), jnp.float32)
    for g in range(4):
        wih_t = wih_t.at[:d, g * h_pad:g * h_pad + h].set(w_ih[g * h:(g + 1) * h, :].T)
        whh_t = whh_t.at[:h, g * h_pad:g * h_pad + h].set(w_hh[g * h:(g + 1) * h, :].T)
        bias = bias.at[0, g * h_pad:g * h_pad + h].set(b[g * h:(g + 1) * h])
    return wih_t.astype(jnp.bfloat16), whh_t.astype(jnp.bfloat16), bias


def encoder_forward(tokens, params, *, max_chunk=64):
    """Equivalent of Encoder.forward (eval mode): returns (hidden, cell)."""
    S, B = tokens.shape
    emb_table = params["embedding"]
    E = emb_table.shape[1]
    H = params["lstm"][0]["w_hh"].shape[1]
    num_layers = len(params["lstm"])

    Bp = _round_up(max(B, 8), 8)          # sublane alignment
    Hp = _round_up(max(H, 128), 128)      # lane alignment (per-gate blocks)
    Ep = _round_up(max(E, 128), 128)

    # Embedding lookup (gather) stays in plain JAX around the recurrent kernel.
    # TODO(synk): nn.Dropout / LSTM inter-layer dropout are identity in eval mode;
    # stochastic training-mode dropout is not implemented.
    x = jnp.take(emb_table, tokens, axis=0).astype(jnp.float32)      # (S, B, E)
    # Padded batch rows pick up the bias inside the kernel and evolve nonzero h/c;
    # batch rows are independent and sliced off below, so results are unaffected
    # (just wasted padding lanes of compute).
    x = jnp.pad(x, ((0, 0), (0, Bp - B), (0, Ep - E)))
    # Flatten to lane-dense 2-D (time*batch, feature) bf16 activations.
    layer_in = x.reshape(S * Bp, Ep).astype(jnp.bfloat16)
    d_pad = Ep

    # TODO(synk): on v7x (2 TensorCores) a leading "parallel" grid axis splitting Bp
    # into two sublane-aligned halves would run two independent half-batch
    # recurrences for ~2x; omitted here (no effect on v5e/v6e).

    hs, cs = [], []
    for li, layer in enumerate(params["lstm"]):
        wih_t, whh_t, bias = _pack_lstm_layer(
            layer["w_ih"], layer["w_hh"], layer["b_ih"], layer["b_hh"], d_pad, Hp)
        is_last = li == num_layers - 1
        res = lstm_layer(layer_in, wih_t, whh_t, bias,
                         seq_len=S, batch_pad=Bp, hidden_pad=Hp,
                         store_outputs=not is_last, max_chunk=max_chunk)
        if is_last:
            h_n, c_n = res              # final layer: per-step outputs are never produced
        else:
            outs, h_n, c_n = res
            layer_in, d_pad = outs, Hp  # bf16 (s_pad*Bp, Hp) feeds the next layer directly
        hs.append(h_n[:B, :H])
        cs.append(c_n[:B, :H])

    return jnp.stack(hs, axis=0), jnp.stack(cs, axis=0)


def encoder_reference(tokens, params):
    """Pure-JAX f32 reference (PyTorch nn.LSTM eval semantics), for validation."""
    x = jnp.take(params["embedding"], tokens, axis=0).astype(jnp.float32)
    hs, cs = [], []
    inp = x
    for layer in params["lstm"]:
        w_ih, w_hh = layer["w_ih"], layer["w_hh"]
        b = layer["b_ih"] + layer["b_hh"]
        H = w_hh.shape[1]
        B = inp.shape[1]

        def step(carry, x_t, w_ih=w_ih, w_hh=w_hh, b=b, H=H):
            h, c = carry
            g = x_t @ w_ih.T + h @ w_hh.T + b
            i = jax.nn.sigmoid(g[:, :H])
            f = jax.nn.sigmoid(g[:, H:2 * H])
            gg = jnp.tanh(g[:, 2 * H:3 * H])
            o = jax.nn.sigmoid(g[:, 3 * H:])
            c = f * c + i * gg
            h = o * jnp.tanh(c)
            return (h, c), h

        (h, c), out = lax.scan(step, (jnp.zeros((B, H)), jnp.zeros((B, H))), inp)
        hs.append(h)
        cs.append(c)
        inp = out
    return jnp.stack(hs), jnp.stack(cs)


def init_params(key, vocab_size, embedding_size, hidden_size, num_layers):
    """Deterministic parameter init (PyTorch-style U(-1/sqrt(H), 1/sqrt(H)))."""
    keys = jax.random.split(key, 1 + 4 * num_layers)
    params = {"embedding": jax.random.normal(
        keys[0], (vocab_size, embedding_size), dtype=jnp.float32)}
    bound = 1.0 / float(hidden_size) ** 0.5
    layers = []
    for l in range(num_layers):
        in_dim = embedding_size if l == 0 else hidden_size
        k = keys[1 + 4 * l:1 + 4 * (l + 1)]
        layers.append({
            "w_ih": jax.random.uniform(k[0], (4 * hidden_size, in_dim),
                                       minval=-bound, maxval=bound, dtype=jnp.float32),
            "w_hh": jax.random.uniform(k[1], (4 * hidden_size, hidden_size),
                                       minval=-bound, maxval=bound, dtype=jnp.float32),
            "b_ih": jax.random.uniform(k[2], (4 * hidden_size,),
                                       minval=-bound, maxval=bound, dtype=jnp.float32),
            "b_hh": jax.random.uniform(k[3], (4 * hidden_size,),
                                       minval=-bound, maxval=bound, dtype=jnp.float32),
        })
    params["lstm"] = layers
    return params


if __name__ == "__main__":
    # Small shapes consistent with Encoder.forward:
    #   x: (seq_len, batch) token ids; Embedding(vocab, E); LSTM(E, H, num_layers).
    SEQ, BATCH = 8, 4
    VOCAB, EMB, HID, LAYERS = 50, 16, 32, 2

    key = jax.random.PRNGKey(0)
    k_tok, k_par = jax.random.split(key)

    tokens = jax.random.randint(k_tok, (SEQ, BATCH), 0, VOCAB, dtype=jnp.int32)
    params = init_params(k_par, VOCAB, EMB, HID, LAYERS)

    hidden, cell = encoder_forward(tokens, params)
    jax.block_until_ready((hidden, cell))

    assert hidden.shape == (LAYERS, BATCH, HID)
    assert cell.shape == (LAYERS, BATCH, HID)

    # Sanity-check against a pure-JAX f32 reference (tolerance covers bf16 matmuls).
    h_ref, c_ref = encoder_reference(tokens, params)
    max_err = max(float(jnp.max(jnp.abs(hidden - h_ref))),
                  float(jnp.max(jnp.abs(cell - c_ref))))
    assert max_err < 5e-2, f"mismatch vs reference: {max_err}"

    print("KERNEL_OK")
</pallas_src>

<mosaic_0001>
module attributes {stable_mosaic.version = 11 : i64} {
  func.func @_lstm_layer_kernel(%arg0: i32, %arg1: memref<64x128xbf16, #tpu.memory_space<vmem>>, %arg2: memref<128x512xbf16, #tpu.memory_space<vmem>>, %arg3: memref<128x512xbf16, #tpu.memory_space<vmem>>, %arg4: memref<1x512xf32, #tpu.memory_space<vmem>>, %arg5: memref<64x128xbf16, #tpu.memory_space<vmem>>, %arg6: memref<8x128xf32, #tpu.memory_space<vmem>>, %arg7: memref<8x128xf32, #tpu.memory_space<vmem>>, %arg8: memref<64x512xf32, #tpu.memory_space<vmem>>, %arg9: memref<64x128xf32, #tpu.memory_space<vmem>>) attributes {dimension_semantics = [#tpu.dimension_semantics<arbitrary>], iteration_bounds = array<i64: 1>, scalar_prefetch = 0 : i64, scratch_operands = 2 : i64, tpu.core_type = #tpu.core_type<tc>, window_params = [{transform_indices = @transform_0, window_bounds = array<i64: 64, 128>}, {pipeline_mode = #tpu.pipeline_mode<synchronous>, transform_indices = @transform_1, window_bounds = array<i64: 128, 512>}, {pipeline_mode = #tpu.pipeline_mode<synchronous>, transform_indices = @transform_2, window_bounds = array<i64: 128, 512>}, {pipeline_mode = #tpu.pipeline_mode<synchronous>, transform_indices = @transform_3, window_bounds = array<i64: 1, 512>}, {transform_indices = @transform_4, window_bounds = array<i64: 64, 128>}, {pipeline_mode = #tpu.pipeline_mode<synchronous>, transform_indices = @transform_5, window_bounds = array<i64: 8, 128>}, {pipeline_mode = #tpu.pipeline_mode<synchronous>, transform_indices = @transform_6, window_bounds = array<i64: 8, 128>}]} {
    %c0_i32 = arith.constant 0 : i32
    %0 = arith.cmpi eq, %arg0, %c0_i32 : i32
    %1 = arith.extui %0 : i1 to i32
    %c0_i32_0 = arith.constant 0 : i32
    %2 = arith.cmpi ne, %1, %c0_i32_0 : i32
    scf.if %2 {
      %cst_79 = arith.constant 0.000000e+00 : f32
      %290 = vector.broadcast %cst_79 : f32 to vector<8x128xf32>
      %c0_80 = arith.constant 0 : index
      %c0_81 = arith.constant 0 : index
      %291 = vector.load %arg6[%c0_80, %c0_81] : memref<8x128xf32, #tpu.memory_space<vmem>>, vector<8x128xf32>
      tpu.vector_store %arg6[%c0_80, %c0_81], %290 {strides = array<i32>} : memref<8x128xf32, #tpu.memory_space<vmem>>, vector<8x128xf32>,
      %cst_82 = arith.constant 0.000000e+00 : f32
      %292 = vector.broadcast %cst_82 : f32 to vector<8x128xf32>
      %c0_83 = arith.constant 0 : index
      %c0_84 = arith.constant 0 : index
      %293 = vector.load %arg7[%c0_83, %c0_84] : memref<8x128xf32, #tpu.memory_space<vmem>>, vector<8x128xf32>
      tpu.vector_store %arg7[%c0_83, %c0_84], %292 {strides = array<i32>} : memref<8x128xf32, #tpu.memory_space<vmem>>, vector<8x128xf32>,
    } else {
    }
    %c0 = arith.constant 0 : index
    %c0_1 = arith.constant 0 : index
    %3 = vector.load %arg1[%c0, %c0_1] : memref<64x128xbf16, #tpu.memory_space<vmem>>, vector<64x128xbf16>
    %c0_2 = arith.constant 0 : index
    %c0_3 = arith.constant 0 : index
    %4 = vector.load %arg2[%c0_2, %c0_3] : memref<128x512xbf16, #tpu.memory_space<vmem>>, vector<128x512xbf16>
    %cst = arith.constant dense<0.000000e+00> : vector<64x512xf32>
    %5 = tpu.matmul %3, %4, %cst {dimension_numbers = #tpu.dot_dimension_numbers<[1], [0], [0], [1], [0, 0, 1, 1], [], []>} : vector<64x128xbf16>, vector<128x512xbf16>, vector<64x512xf32> -> vector<64x512xf32>
    %c0_4 = arith.constant 0 : index
    %c0_5 = arith.constant 0 : index
    %6 = vector.load %arg4[%c0_4, %c0_5] : memref<1x512xf32, #tpu.memory_space<vmem>>, vector<1x512xf32>
    %7 = vector.broadcast %6 : vector<1x512xf32> to vector<64x512xf32>
    %8 = arith.addf %5, %7 : vector<64x512xf32>
    %c0_6 = arith.constant 0 : index
    %c0_7 = arith.constant 0 : index
    %9 = vector.load %arg8[%c0_6, %c0_7] : memref<64x512xf32, #tpu.memory_space<vmem>>, vector<64x512xf32>
    tpu.vector_store %arg8[%c0_6, %c0_7], %8 {strides = array<i32>} : memref<64x512xf32, #tpu.memory_space<vmem>>, vector<64x512xf32>,
    %c0_8 = arith.constant 0 : index
    %c0_9 = arith.constant 0 : index
    %10 = vector.load %arg3[%c0_8, %c0_9] : memref<128x512xbf16, #tpu.memory_space<vmem>>, vector<128x512xbf16>
    %c0_10 = arith.constant 0 : index
    %c0_11 = arith.constant 0 : index
    %11 = vector.load %arg6[%c0_10, %c0_11] : memref<8x128xf32, #tpu.memory_space<vmem>>, vector<8x128xf32>
    %c0_12 = arith.constant 0 : index
    %c0_13 = arith.constant 0 : index
    %12 = vector.load %arg7[%c0_12, %c0_13] : memref<8x128xf32, #tpu.memory_space<vmem>>, vector<8x128xf32>
    %c0_i32_14 = arith.constant 0 : i32
    %c8_i32 = arith.constant 8 : i32
    %13 = arith.muli %c0_i32_14, %c8_i32 : i32
    %14 = tpu.assume_multiple %13, 8 : i32
    %15 = arith.index_cast %14 : i32 to index
    %c0_15 = arith.constant 0 : index
    %16 = vector.load %arg8[%15, %c0_15] : memref<64x512xf32, #tpu.memory_space<vmem>>, vector<8x512xf32>
    %17 = arith.truncf %11 : vector<8x128xf32> to vector<8x128xbf16>
    %cst_16 = arith.constant dense<0.000000e+00> : vector<8x512xf32>
    %18 = tpu.matmul %17, %10, %cst_16 {dimension_numbers = #tpu.dot_dimension_numbers<[1], [0], [0], [1], [0, 0, 1, 1], [], []>} : vector<8x128xbf16>, vector<128x512xbf16>, vector<8x512xf32> -> vector<8x512xf32>
    %19 = arith.addf %16, %18 : vector<8x512xf32>
    %20 = vector.extract_strided_slice %19 {offsets = [0, 0], sizes = [8, 128], strides = [1, 1]} : vector<8x512xf32> to vector<8x128xf32>
    %21 = arith.negf %20 : vector<8x128xf32>
    %22 = math.exp %21 : vector<8x128xf32>
    %cst_17 = arith.constant 1.000000e+00 : f32
    %23 = vector.broadcast %cst_17 : f32 to vector<8x128xf32>
    %24 = arith.addf %23, %22 : vector<8x128xf32>
    %25 = arith.divf %23, %24 : vector<8x128xf32>
    %26 = vector.extract_strided_slice %19 {offsets = [0, 128], sizes = [8, 128], strides = [1, 1]} : vector<8x512xf32> to vector<8x128xf32>
    %27 = arith.negf %26 : vector<8x128xf32>
    %28 = math.exp %27 : vector<8x128xf32>
    %cst_18 = arith.constant 1.000000e+00 : f32
    %29 = vector.broadcast %cst_18 : f32 to vector<8x128xf32>
    %30 = arith.addf %29, %28 : vector<8x128xf32>
    %31 = arith.divf %29, %30 : vector<8x128xf32>
    %32 = vector.extract_strided_slice %19 {offsets = [0, 256], sizes = [8, 128], strides = [1, 1]} : vector<8x512xf32> to vector<8x128xf32>
    %33 = math.tanh %32 : vector<8x128xf32>
    %34 = vector.extract_strided_slice %19 {offsets = [0, 384], sizes = [8, 128], strides = [1, 1]} : vector<8x512xf32> to vector<8x128xf32>
    %35 = arith.negf %34 : vector<8x128xf32>
    %36 = math.exp %35 : vector<8x128xf32>
    %cst_19 = arith.constant 1.000000e+00 : f32
    %37 = vector.broadcast %cst_19 : f32 to vector<8x128xf32>
    %38 = arith.addf %37, %36 : vector<8x128xf32>
    %39 = arith.divf %37, %38 : vector<8x128xf32>
    %40 = arith.mulf %31, %12 : vector<8x128xf32>
    %41 = arith.mulf %25, %33 : vector<8x128xf32>
    %42 = arith.addf %40, %41 : vector<8x128xf32>
    %43 = math.tanh %42 : vector<8x128xf32>
    %44 = arith.mulf %39, %43 : vector<8x128xf32>
    %45 = arith.index_cast %14 : i32 to index
    %c0_20 = arith.constant 0 : index
    %46 = vector.load %arg9[%45, %c0_20] : memref<64x128xf32, #tpu.memory_space<vmem>>, vector<8x128xf32>
    tpu.vector_store %arg9[%45, %c0_20], %44 {strides = array<i32>} : memref<64x128xf32, #tpu.memory_space<vmem>>, vector<8x128xf32>,
    %c1_i32 = arith.constant 1 : i32
    %c8_i32_21 = arith.constant 8 : i32
    %47 = arith.muli %c1_i32, %c8_i32_21 : i32
    %48 = tpu.assume_multiple %47, 8 : i32
    %49 = arith.index_cast %48 : i32 to index
    %c0_22 = arith.constant 0 : index
    %50 = vector.load %arg8[%49, %c0_22] : memref<64x512xf32, #tpu.memory_space<vmem>>, vector<8x512xf32>
    %51 = arith.truncf %44 : vector<8x128xf32> to vector<8x128xbf16>
    %cst_23 = arith.constant dense<0.000000e+00> : vector<8x512xf32>
    %52 = tpu.matmul %51, %10, %cst_23 {dimension_numbers = #tpu.dot_dimension_numbers<[1], [0], [0], [1], [0, 0, 1, 1], [], []>} : vector<8x128xbf16>, vector<128x512xbf16>, vector<8x512xf32> -> vector<8x512xf32>
    %53 = arith.addf %50, %52 : vector<8x512xf32>
    %54 = vector.extract_strided_slice %53 {offsets = [0, 0], sizes = [8, 128], strides = [1, 1]} : vector<8x512xf32> to vector<8x128xf32>
    %55 = arith.negf %54 : vector<8x128xf32>
    %56 = math.exp %55 : vector<8x128xf32>
    %cst_24 = arith.constant 1.000000e+00 : f32
    %57 = vector.broadcast %cst_24 : f32 to vector<8x128xf32>
    %58 = arith.addf %57, %56 : vector<8x128xf32>
    %59 = arith.divf %57, %58 : vector<8x128xf32>
    %60 = vector.extract_strided_slice %53 {offsets = [0, 128], sizes = [8, 128], strides = [1, 1]} : vector<8x512xf32> to vector<8x128xf32>
    %61 = arith.negf %60 : vector<8x128xf32>
    %62 = math.exp %61 : vector<8x128xf32>
    %cst_25 = arith.constant 1.000000e+00 : f32
    %63 = vector.broadcast %cst_25 : f32 to vector<8x128xf32>
    %64 = arith.addf %63, %62 : vector<8x128xf32>
    %65 = arith.divf %63, %64 : vector<8x128xf32>
    %66 = vector.extract_strided_slice %53 {offsets = [0, 256], sizes = [8, 128], strides = [1, 1]} : vector<8x512xf32> to vector<8x128xf32>
    %67 = math.tanh %66 : vector<8x128xf32>
    %68 = vector.extract_strided_slice %53 {offsets = [0, 384], sizes = [8, 128], strides = [1, 1]} : vector<8x512xf32> to vector<8x128xf32>
    %69 = arith.negf %68 : vector<8x128xf32>
    %70 = math.exp %69 : vector<8x128xf32>
    %cst_26 = arith.constant 1.000000e+00 : f32
    %71 = vector.broadcast %cst_26 : f32 to vector<8x128xf32>
    %72 = arith.addf %71, %70 : vector<8x128xf32>
    %73 = arith.divf %71, %72 : vector<8x128xf32>
    %74 = arith.mulf %65, %42 : vector<8x128xf32>
    %75 = arith.mulf %59, %67 : vector<8x128xf32>
    %76 = arith.addf %74, %75 : vector<8x128xf32>
    %77 = math.tanh %76 : vector<8x128xf32>
    %78 = arith.mulf %73, %77 : vector<8x128xf32>
    %79 = arith.index_cast %48 : i32 to index
    %c0_27 = arith.constant 0 : index
    %80 = vector.load %arg9[%79, %c0_27] : memref<64x128xf32, #tpu.memory_space<vmem>>, vector<8x128xf32>
    tpu.vector_store %arg9[%79, %c0_27], %78 {strides = array<i32>} : memref<64x128xf32, #tpu.memory_space<vmem>>, vector<8x128xf32>,
    %c2_i32 = arith.constant 2 : i32
    %c8_i32_28 = arith.constant 8 : i32
    %81 = arith.muli %c2_i32, %c8_i32_28 : i32
    %82 = tpu.assume_multiple %81, 8 : i32
    %83 = arith.index_cast %82 : i32 to index
    %c0_29 = arith.constant 0 : index
    %84 = vector.load %arg8[%83, %c0_29] : memref<64x512xf32, #tpu.memory_space<vmem>>, vector<8x512xf32>
    %85 = arith.truncf %78 : vector<8x128xf32> to vector<8x128xbf16>
    %cst_30 = arith.constant dense<0.000000e+00> : vector<8x512xf32>
    %86 = tpu.matmul %85, %10, %cst_30 {dimension_numbers = #tpu.dot_dimension_numbers<[1], [0], [0], [1], [0, 0, 1, 1], [], []>} : vector<8x128xbf16>, vector<128x512xbf16>, vector<8x512xf32> -> vector<8x512xf32>
    %87 = arith.addf %84, %86 : vector<8x512xf32>
    %88 = vector.extract_strided_slice %87 {offsets = [0, 0], sizes = [8, 128], strides = [1, 1]} : vector<8x512xf32> to vector<8x128xf32>
    %89 = arith.negf %88 : vector<8x128xf32>
    %90 = math.exp %89 : vector<8x128xf32>
    %cst_31 = arith.constant 1.000000e+00 : f32
    %91 = vector.broadcast %cst_31 : f32 to vector<8x128xf32>
    %92 = arith.addf %91, %90 : vector<8x128xf32>
    %93 = arith.divf %91, %92 : vector<8x128xf32>
    %94 = vector.extract_strided_slice %87 {offsets = [0, 128], sizes = [8, 128], strides = [1, 1]} : vector<8x512xf32> to vector<8x128xf32>
    %95 = arith.negf %94 : vector<8x128xf32>
    %96 = math.exp %95 : vector<8x128xf32>
    %cst_32 = arith.constant 1.000000e+00 : f32
    %97 = vector.broadcast %cst_32 : f32 to vector<8x128xf32>
    %98 = arith.addf %97, %96 : vector<8x128xf32>
    %99 = arith.divf %97, %98 : vector<8x128xf32>
    %100 = vector.extract_strided_slice %87 {offsets = [0, 256], sizes = [8, 128], strides = [1, 1]} : vector<8x512xf32> to vector<8x128xf32>
    %101 = math.tanh %100 : vector<8x128xf32>
    %102 = vector.extract_strided_slice %87 {offsets = [0, 384], sizes = [8, 128], strides = [1, 1]} : vector<8x512xf32> to vector<8x128xf32>
    %103 = arith.negf %102 : vector<8x128xf32>
    %104 = math.exp %103 : vector<8x128xf32>
    %cst_33 = arith.constant 1.000000e+00 : f32
    %105 = vector.broadcast %cst_33 : f32 to vector<8x128xf32>
    %106 = arith.addf %105, %104 : vector<8x128xf32>
    %107 = arith.divf %105, %106 : vector<8x128xf32>
    %108 = arith.mulf %99, %76 : vector<8x128xf32>
    %109 = arith.mulf %93, %101 : vector<8x128xf32>
    %110 = arith.addf %108, %109 : vector<8x128xf32>
    %111 = math.tanh %110 : vector<8x128xf32>
    %112 = arith.mulf %107, %111 : vector<8x128xf32>
    %113 = arith.index_cast %82 : i32 to index
    %c0_34 = arith.constant 0 : index
    %114 = vector.load %arg9[%113, %c0_34] : memref<64x128xf32, #tpu.memory_space<vmem>>, vector<8x128xf32>
    tpu.vector_store %arg9[%113, %c0_34], %112 {strides = array<i32>} : memref<64x128xf32, #tpu.memory_space<vmem>>, vector<8x128xf32>,
    %c3_i32 = arith.constant 3 : i32
    %c8_i32_35 = arith.constant 8 : i32
    %115 = arith.muli %c3_i32, %c8_i32_35 : i32
    %116 = tpu.assume_multiple %115, 8 : i32
    %117 = arith.index_cast %116 : i32 to index
    %c0_36 = arith.constant 0 : index
    %118 = vector.load %arg8[%117, %c0_36] : memref<64x512xf32, #tpu.memory_space<vmem>>, vector<8x512xf32>
    %119 = arith.truncf %112 : vector<8x128xf32> to vector<8x128xbf16>
    %cst_37 = arith.constant dense<0.000000e+00> : vector<8x512xf32>
    %120 = tpu.matmul %119, %10, %cst_37 {dimension_numbers = #tpu.dot_dimension_numbers<[1], [0], [0], [1], [0, 0, 1, 1], [], []>} : vector<8x128xbf16>, vector<128x512xbf16>, vector<8x512xf32> -> vector<8x512xf32>
    %121 = arith.addf %118, %120 : vector<8x512xf32>
    %122 = vector.extract_strided_slice %121 {offsets = [0, 0], sizes = [8, 128], strides = [1, 1]} : vector<8x512xf32> to vector<8x128xf32>
    %123 = arith.negf %122 : vector<8x128xf32>
    %124 = math.exp %123 : vector<8x128xf32>
    %cst_38 = arith.constant 1.000000e+00 : f32
    %125 = vector.broadcast %cst_38 : f32 to vector<8x128xf32>
    %126 = arith.addf %125, %124 : vector<8x128xf32>
    %127 = arith.divf %125, %126 : vector<8x128xf32>
    %128 = vector.extract_strided_slice %121 {offsets = [0, 128], sizes = [8, 128], strides = [1, 1]} : vector<8x512xf32> to vector<8x128xf32>
    %129 = arith.negf %128 : vector<8x128xf32>
    %130 = math.exp %129 : vector<8x128xf32>
    %cst_39 = arith.constant 1.000000e+00 : f32
    %131 = vector.broadcast %cst_39 : f32 to vector<8x128xf32>
    %132 = arith.addf %131, %130 : vector<8x128xf32>
    %133 = arith.divf %131, %132 : vector<8x128xf32>
    %134 = vector.extract_strided_slice %121 {offsets = [0, 256], sizes = [8, 128], strides = [1, 1]} : vector<8x512xf32> to vector<8x128xf32>
    %135 = math.tanh %134 : vector<8x128xf32>
    %136 = vector.extract_strided_slice %121 {offsets = [0, 384], sizes = [8, 128], strides = [1, 1]} : vector<8x512xf32> to vector<8x128xf32>
    %137 = arith.negf %136 : vector<8x128xf32>
    %138 = math.exp %137 : vector<8x128xf32>
    %cst_40 = arith.constant 1.000000e+00 : f32
    %139 = vector.broadcast %cst_40 : f32 to vector<8x128xf32>
    %140 = arith.addf %139, %138 : vector<8x128xf32>
    %141 = arith.divf %139, %140 : vector<8x128xf32>
    %142 = arith.mulf %133, %110 : vector<8x128xf32>
    %143 = arith.mulf %127, %135 : vector<8x128xf32>
    %144 = arith.addf %142, %143 : vector<8x128xf32>
    %145 = math.tanh %144 : vector<8x128xf32>
    %146 = arith.mulf %141, %145 : vector<8x128xf32>
    %147 = arith.index_cast %116 : i32 to index
    %c0_41 = arith.constant 0 : index
    %148 = vector.load %arg9[%147, %c0_41] : memref<64x128xf32, #tpu.memory_space<vmem>>, vector<8x128xf32>
    tpu.vector_store %arg9[%147, %c0_41], %146 {strides = array<i32>} : memref<64x128xf32, #tpu.memory_space<vmem>>, vector<8x128xf32>,
    %c4_i32 = arith.constant 4 : i32
    %c8_i32_42 = arith.constant 8 : i32
    %149 = arith.muli %c4_i32, %c8_i32_42 : i32
    %150 = tpu.assume_multiple %149, 8 : i32
    %151 = arith.index_cast %150 : i32 to index
    %c0_43 = arith.constant 0 : index
    %152 = vector.load %arg8[%151, %c0_43] : memref<64x512xf32, #tpu.memory_space<vmem>>, vector<8x512xf32>
    %153 = arith.truncf %146 : vector<8x128xf32> to vector<8x128xbf16>
    %cst_44 = arith.constant dense<0.000000e+00> : vector<8x512xf32>
    %154 = tpu.matmul %153, %10, %cst_44 {dimension_numbers = #tpu.dot_dimension_numbers<[1], [0], [0], [1], [0, 0, 1, 1], [], []>} : vector<8x128xbf16>, vector<128x512xbf16>, vector<8x512xf32> -> vector<8x512xf32>
    %155 = arith.addf %152, %154 : vector<8x512xf32>
    %156 = vector.extract_strided_slice %155 {offsets = [0, 0], sizes = [8, 128], strides = [1, 1]} : vector<8x512xf32> to vector<8x128xf32>
    %157 = arith.negf %156 : vector<8x128xf32>
    %158 = math.exp %157 : vector<8x128xf32>
    %cst_45 = arith.constant 1.000000e+00 : f32
    %159 = vector.broadcast %cst_45 : f32 to vector<8x128xf32>
    %160 = arith.addf %159, %158 : vector<8x128xf32>
    %161 = arith.divf %159, %160 : vector<8x128xf32>
    %162 = vector.extract_strided_slice %155 {offsets = [0, 128], sizes = [8, 128], strides = [1, 1]} : vector<8x512xf32> to vector<8x128xf32>
    %163 = arith.negf %162 : vector<8x128xf32>
    %164 = math.exp %163 : vector<8x128xf32>
    %cst_46 = arith.constant 1.000000e+00 : f32
    %165 = vector.broadcast %cst_46 : f32 to vector<8x128xf32>
    %166 = arith.addf %165, %164 : vector<8x128xf32>
    %167 = arith.divf %165, %166 : vector<8x128xf32>
    %168 = vector.extract_strided_slice %155 {offsets = [0, 256], sizes = [8, 128], strides = [1, 1]} : vector<8x512xf32> to vector<8x128xf32>
    %169 = math.tanh %168 : vector<8x128xf32>
    %170 = vector.extract_strided_slice %155 {offsets = [0, 384], sizes = [8, 128], strides = [1, 1]} : vector<8x512xf32> to vector<8x128xf32>
    %171 = arith.negf %170 : vector<8x128xf32>
    %172 = math.exp %171 : vector<8x128xf32>
    %cst_47 = arith.constant 1.000000e+00 : f32
    %173 = vector.broadcast %cst_47 : f32 to vector<8x128xf32>
    %174 = arith.addf %173, %172 : vector<8x128xf32>
    %175 = arith.divf %173, %174 : vector<8x128xf32>
    %176 = arith.mulf %167, %144 : vector<8x128xf32>
    %177 = arith.mulf %161, %169 : vector<8x128xf32>
    %178 = arith.addf %176, %177 : vector<8x128xf32>
    %179 = math.tanh %178 : vector<8x128xf32>
    %180 = arith.mulf %175, %179 : vector<8x128xf32>
    %181 = arith.index_cast %150 : i32 to index
    %c0_48 = arith.constant 0 : index
    %182 = vector.load %arg9[%181, %c0_48] : memref<64x128xf32, #tpu.memory_space<vmem>>, vector<8x128xf32>
    tpu.vector_store %arg9[%181, %c0_48], %180 {strides = array<i32>} : memref<64x128xf32, #tpu.memory_space<vmem>>, vector<8x128xf32>,
    %c5_i32 = arith.constant 5 : i32
    %c8_i32_49 = arith.constant 8 : i32
    %183 = arith.muli %c5_i32, %c8_i32_49 : i32
    %184 = tpu.assume_multiple %183, 8 : i32
    %185 = arith.index_cast %184 : i32 to index
    %c0_50 = arith.constant 0 : index
    %186 = vector.load %arg8[%185, %c0_50] : memref<64x512xf32, #tpu.memory_space<vmem>>, vector<8x512xf32>
    %187 = arith.truncf %180 : vector<8x128xf32> to vector<8x128xbf16>
    %cst_51 = arith.constant dense<0.000000e+00> : vector<8x512xf32>
    %188 = tpu.matmul %187, %10, %cst_51 {dimension_numbers = #tpu.dot_dimension_numbers<[1], [0], [0], [1], [0, 0, 1, 1], [], []>} : vector<8x128xbf16>, vector<128x512xbf16>, vector<8x512xf32> -> vector<8x512xf32>
    %189 = arith.addf %186, %188 : vector<8x512xf32>
    %190 = vector.extract_strided_slice %189 {offsets = [0, 0], sizes = [8, 128], strides = [1, 1]} : vector<8x512xf32> to vector<8x128xf32>
    %191 = arith.negf %190 : vector<8x128xf32>
    %192 = math.exp %191 : vector<8x128xf32>
    %cst_52 = arith.constant 1.000000e+00 : f32
    %193 = vector.broadcast %cst_52 : f32 to vector<8x128xf32>
    %194 = arith.addf %193, %192 : vector<8x128xf32>
    %195 = arith.divf %193, %194 : vector<8x128xf32>
    %196 = vector.extract_strided_slice %189 {offsets = [0, 128], sizes = [8, 128], strides = [1, 1]} : vector<8x512xf32> to vector<8x128xf32>
    %197 = arith.negf %196 : vector<8x128xf32>
    %198 = math.exp %197 : vector<8x128xf32>
    %cst_53 = arith.constant 1.000000e+00 : f32
    %199 = vector.broadcast %cst_53 : f32 to vector<8x128xf32>
    %200 = arith.addf %199, %198 : vector<8x128xf32>
    %201 = arith.divf %199, %200 : vector<8x128xf32>
    %202 = vector.extract_strided_slice %189 {offsets = [0, 256], sizes = [8, 128], strides = [1, 1]} : vector<8x512xf32> to vector<8x128xf32>
    %203 = math.tanh %202 : vector<8x128xf32>
    %204 = vector.extract_strided_slice %189 {offsets = [0, 384], sizes = [8, 128], strides = [1, 1]} : vector<8x512xf32> to vector<8x128xf32>
    %205 = arith.negf %204 : vector<8x128xf32>
    %206 = math.exp %205 : vector<8x128xf32>
    %cst_54 = arith.constant 1.000000e+00 : f32
    %207 = vector.broadcast %cst_54 : f32 to vector<8x128xf32>
    %208 = arith.addf %207, %206 : vector<8x128xf32>
    %209 = arith.divf %207, %208 : vector<8x128xf32>
    %210 = arith.mulf %201, %178 : vector<8x128xf32>
    %211 = arith.mulf %195, %203 : vector<8x128xf32>
    %212 = arith.addf %210, %211 : vector<8x128xf32>
    %213 = math.tanh %212 : vector<8x128xf32>
    %214 = arith.mulf %209, %213 : vector<8x128xf32>
    %215 = arith.index_cast %184 : i32 to index
    %c0_55 = arith.constant 0 : index
    %216 = vector.load %arg9[%215, %c0_55] : memref<64x128xf32, #tpu.memory_space<vmem>>, vector<8x128xf32>
    tpu.vector_store %arg9[%215, %c0_55], %214 {strides = array<i32>} : memref<64x128xf32, #tpu.memory_space<vmem>>, vector<8x128xf32>,
    %c6_i32 = arith.constant 6 : i32
    %c8_i32_56 = arith.constant 8 : i32
    %217 = arith.muli %c6_i32, %c8_i32_56 : i32
    %218 = tpu.assume_multiple %217, 8 : i32
    %219 = arith.index_cast %218 : i32 to index
    %c0_57 = arith.constant 0 : index
    %220 = vector.load %arg8[%219, %c0_57] : memref<64x512xf32, #tpu.memory_space<vmem>>, vector<8x512xf32>
    %221 = arith.truncf %214 : vector<8x128xf32> to vector<8x128xbf16>
    %cst_58 = arith.constant dense<0.000000e+00> : vector<8x512xf32>
    %222 = tpu.matmul %221, %10, %cst_58 {dimension_numbers = #tpu.dot_dimension_numbers<[1], [0], [0], [1], [0, 0, 1, 1], [], []>} : vector<8x128xbf16>, vector<128x512xbf16>, vector<8x512xf32> -> vector<8x512xf32>
    %223 = arith.addf %220, %222 : vector<8x512xf32>
    %224 = vector.extract_strided_slice %223 {offsets = [0, 0], sizes = [8, 128], strides = [1, 1]} : vector<8x512xf32> to vector<8x128xf32>
    %225 = arith.negf %224 : vector<8x128xf32>
    %226 = math.exp %225 : vector<8x128xf32>
    %cst_59 = arith.constant 1.000000e+00 : f32
    %227 = vector.broadcast %cst_59 : f32 to vector<8x128xf32>
    %228 = arith.addf %227, %226 : vector<8x128xf32>
    %229 = arith.divf %227, %228 : vector<8x128xf32>
    %230 = vector.extract_strided_slice %223 {offsets = [0, 128], sizes = [8, 128], strides = [1, 1]} : vector<8x512xf32> to vector<8x128xf32>
    %231 = arith.negf %230 : vector<8x128xf32>
    %232 = math.exp %231 : vector<8x128xf32>
    %cst_60 = arith.constant 1.000000e+00 : f32
    %233 = vector.broadcast %cst_60 : f32 to vector<8x128xf32>
    %234 = arith.addf %233, %232 : vector<8x128xf32>
    %235 = arith.divf %233, %234 : vector<8x128xf32>
    %236 = vector.extract_strided_slice %223 {offsets = [0, 256], sizes = [8, 128], strides = [1, 1]} : vector<8x512xf32> to vector<8x128xf32>
    %237 = math.tanh %236 : vector<8x128xf32>
    %238 = vector.extract_strided_slice %223 {offsets = [0, 384], sizes = [8, 128], strides = [1, 1]} : vector<8x512xf32> to vector<8x128xf32>
    %239 = arith.negf %238 : vector<8x128xf32>
    %240 = math.exp %239 : vector<8x128xf32>
    %cst_61 = arith.constant 1.000000e+00 : f32
    %241 = vector.broadcast %cst_61 : f32 to vector<8x128xf32>
    %242 = arith.addf %241, %240 : vector<8x128xf32>
    %243 = arith.divf %241, %242 : vector<8x128xf32>
    %244 = arith.mulf %235, %212 : vector<8x128xf32>
    %245 = arith.mulf %229, %237 : vector<8x128xf32>
    %246 = arith.addf %244, %245 : vector<8x128xf32>
    %247 = math.tanh %246 : vector<8x128xf32>
    %248 = arith.mulf %243, %247 : vector<8x128xf32>
    %249 = arith.index_cast %218 : i32 to index
    %c0_62 = arith.constant 0 : index
    %250 = vector.load %arg9[%249, %c0_62] : memref<64x128xf32, #tpu.memory_space<vmem>>, vector<8x128xf32>
    tpu.vector_store %arg9[%249, %c0_62], %248 {strides = array<i32>} : memref<64x128xf32, #tpu.memory_space<vmem>>, vector<8x128xf32>,
    %c7_i32 = arith.constant 7 : i32
    %c8_i32_63 = arith.constant 8 : i32
    %251 = arith.muli %c7_i32, %c8_i32_63 : i32
    %252 = tpu.assume_multiple %251, 8 : i32
    %253 = arith.index_cast %252 : i32 to index
    %c0_64 = arith.constant 0 : index
    %254 = vector.load %arg8[%253, %c0_64] : memref<64x512xf32, #tpu.memory_space<vmem>>, vector<8x512xf32>
    %255 = arith.truncf %248 : vector<8x128xf32> to vector<8x128xbf16>
    %cst_65 = arith.constant dense<0.000000e+00> : vector<8x512xf32>
    %256 = tpu.matmul %255, %10, %cst_65 {dimension_numbers = #tpu.dot_dimension_numbers<[1], [0], [0], [1], [0, 0, 1, 1], [], []>} : vector<8x128xbf16>, vector<128x512xbf16>, vector<8x512xf32> -> vector<8x512xf32>
    %257 = arith.addf %254, %256 : vector<8x512xf32>
    %258 = vector.extract_strided_slice %257 {offsets = [0, 0], sizes = [8, 128], strides = [1, 1]} : vector<8x512xf32> to vector<8x128xf32>
    %259 = arith.negf %258 : vector<8x128xf32>
    %260 = math.exp %259 : vector<8x128xf32>
    %cst_66 = arith.constant 1.000000e+00 : f32
    %261 = vector.broadcast %cst_66 : f32 to vector<8x128xf32>
    %262 = arith.addf %261, %260 : vector<8x128xf32>
    %263 = arith.divf %261, %262 : vector<8x128xf32>
    %264 = vector.extract_strided_slice %257 {offsets = [0, 128], sizes = [8, 128], strides = [1, 1]} : vector<8x512xf32> to vector<8x128xf32>
    %265 = arith.negf %264 : vector<8x128xf32>
    %266 = math.exp %265 : vector<8x128xf32>
    %cst_67 = arith.constant 1.000000e+00 : f32
    %267 = vector.broadcast %cst_67 : f32 to vector<8x128xf32>
    %268 = arith.addf %267, %266 : vector<8x128xf32>
    %269 = arith.divf %267, %268 : vector<8x128xf32>
    %270 = vector.extract_strided_slice %257 {offsets = [0, 256], sizes = [8, 128], strides = [1, 1]} : vector<8x512xf32> to vector<8x128xf32>
    %271 = math.tanh %270 : vector<8x128xf32>
    %272 = vector.extract_strided_slice %257 {offsets = [0, 384], sizes = [8, 128], strides = [1, 1]} : vector<8x512xf32> to vector<8x128xf32>
    %273 = arith.negf %272 : vector<8x128xf32>
    %274 = math.exp %273 : vector<8x128xf32>
    %cst_68 = arith.constant 1.000000e+00 : f32
    %275 = vector.broadcast %cst_68 : f32 to vector<8x128xf32>
    %276 = arith.addf %275, %274 : vector<8x128xf32>
    %277 = arith.divf %275, %276 : vector<8x128xf32>
    %278 = arith.mulf %269, %246 : vector<8x128xf32>
    %279 = arith.mulf %263, %271 : vector<8x128xf32>
    %280 = arith.addf %278, %279 : vector<8x128xf32>
    %281 = math.tanh %280 : vector<8x128xf32>
    %282 = arith.mulf %277, %281 : vector<8x128xf32>
    %283 = arith.index_cast %252 : i32 to index
    %c0_69 = arith.constant 0 : index
    %284 = vector.load %arg9[%283, %c0_69] : memref<64x128xf32, #tpu.memory_space<vmem>>, vector<8x128xf32>
    tpu.vector_store %arg9[%283, %c0_69], %282 {strides = array<i32>} : memref<64x128xf32, #tpu.memory_space<vmem>>, vector<8x128xf32>,
    %c8_i32_70 = arith.constant 8 : i32
    %c0_71 = arith.constant 0 : index
    %c0_72 = arith.constant 0 : index
    %285 = vector.load %arg6[%c0_71, %c0_72] : memref<8x128xf32, #tpu.memory_space<vmem>>, vector<8x128xf32>
    tpu.vector_store %arg6[%c0_71, %c0_72], %282 {strides = array<i32>} : memref<8x128xf32, #tpu.memory_space<vmem>>, vector<8x128xf32>,
    %c0_73 = arith.constant 0 : index
    %c0_74 = arith.constant 0 : index
    %286 = vector.load %arg7[%c0_73, %c0_74] : memref<8x128xf32, #tpu.memory_space<vmem>>, vector<8x128xf32>
    tpu.vector_store %arg7[%c0_73, %c0_74], %280 {strides = array<i32>} : memref<8x128xf32, #tpu.memory_space<vmem>>, vector<8x128xf32>,
    %c0_75 = arith.constant 0 : index
    %c0_76 = arith.constant 0 : index
    %287 = vector.load %arg9[%c0_75, %c0_76] : memref<64x128xf32, #tpu.memory_space<vmem>>, vector<64x128xf32>
    %288 = arith.truncf %287 : vector<64x128xf32> to vector<64x128xbf16>
    %c0_77 = arith.constant 0 : index
    %c0_78 = arith.constant 0 : index
    %289 = vector.load %arg5[%c0_77, %c0_78] : memref<64x128xbf16, #tpu.memory_space<vmem>>, vector<64x128xbf16>
    tpu.vector_store %arg5[%c0_77, %c0_78], %288 {strides = array<i32>} : memref<64x128xbf16, #tpu.memory_space<vmem>>, vector<64x128xbf16>,
    return
  }
  func.func @transform_0(%arg0: i32) -> (i32, i32) {
    %c0_i32 = arith.constant 0 : i32
    %c0_i32_0 = arith.constant 0 : i32
    return %arg0, %c0_i32 : i32, i32
  }
  func.func @transform_1(%arg0: i32) -> (i32, i32) {
    %c0_i32 = arith.constant 0 : i32
    %c0_i32_0 = arith.constant 0 : i32
    %c0_i32_1 = arith.constant 0 : i32
    return %c0_i32, %c0_i32_0 : i32, i32
  }
  func.func @transform_2(%arg0: i32) -> (i32, i32) {
    %c0_i32 = arith.constant 0 : i32
    %c0_i32_0 = arith.constant 0 : i32
    %c0_i32_1 = arith.constant 0 : i32
    return %c0_i32, %c0_i32_0 : i32, i32
  }
  func.func @transform_3(%arg0: i32) -> (i32, i32) {
    %c0_i32 = arith.constant 0 : i32
    %c0_i32_0 = arith.constant 0 : i32
    %c0_i32_1 = arith.constant 0 : i32
    return %c0_i32, %c0_i32_0 : i32, i32
  }
  func.func @transform_4(%arg0: i32) -> (i32, i32) {
    %c0_i32 = arith.constant 0 : i32
    %c0_i32_0 = arith.constant 0 : i32
    return %arg0, %c0_i32 : i32, i32
  }
  func.func @transform_5(%arg0: i32) -> (i32, i32) {
    %c0_i32 = arith.constant 0 : i32
    %c0_i32_0 = arith.constant 0 : i32
    %c0_i32_1 = arith.constant 0 : i32
    return %c0_i32, %c0_i32_0 : i32, i32
  }
  func.func @transform_6(%arg0: i32) -> (i32, i32) {
    %c0_i32 = arith.constant 0 : i32
    %c0_i32_0 = arith.constant 0 : i32
    %c0_i32_1 = arith.constant 0 : i32
    return %c0_i32, %c0_i32_0 : i32, i32
  }
}

module attributes {stable_mosaic.version = 11 : i64} {
  func.func @_lstm_layer_kernel(%arg0: i32, %arg1: memref<64x128xbf16, #tpu.memory_space<vmem>>, %arg2: memref<128x512xbf16, #tpu.memory_space<vmem>>, %arg3: memref<128x512xbf16, #tpu.memory_space<vmem>>, %arg4: memref<1x512xf32, #tpu.memory_space<vmem>>, %arg5: memref<64x128xbf16, #tpu.memory_space<vmem>>, %arg6: memref<8x128xf32, #tpu.memory_space<vmem>>, %arg7: memref<8x128xf32, #tpu.memory_space<vmem>>, %arg8: memref<64x512xf32, #tpu.memory_space<vmem>>, %arg9: memref<64x128xf32, #tpu.memory_space<vmem>>) attributes {dimension_semantics = [#tpu.dimension_semantics<arbitrary>], iteration_bounds = array<i64: 1>, scalar_prefetch = 0 : i64, scratch_operands = 2 : i64, tpu.core_type = #tpu.core_type<tc>, window_params = [{transform_indices = @transform_0, window_bounds = array<i64: 64, 128>}, {pipeline_mode = #tpu.pipeline_mode<synchronous>, transform_indices = @transform_1, window_bounds = array<i64: 128, 512>}, {pipeline_mode = #tpu.pipeline_mode<synchronous>, transform_indices = @transform_2, window_bounds = array<i64: 128, 512>}, {pipeline_mode = #tpu.pipeline_mode<synchronous>, transform_indices = @transform_3, window_bounds = array<i64: 1, 512>}, {transform_indices = @transform_4, window_bounds = array<i64: 64, 128>}, {pipeline_mode = #tpu.pipeline_mode<synchronous>, transform_indices = @transform_5, window_bounds = array<i64: 8, 128>}, {pipeline_mode = #tpu.pipeline_mode<synchronous>, transform_indices = @transform_6, window_bounds = array<i64: 8, 128>}]} {
    %c0_i32 = arith.constant 0 : i32
    %0 = arith.cmpi eq, %arg0, %c0_i32 : i32
    %1 = arith.extui %0 : i1 to i32
    %c0_i32_0 = arith.constant 0 : i32
    %2 = arith.cmpi ne, %1, %c0_i32_0 : i32
    scf.if %2 {
      %cst_79 = arith.constant 0.000000e+00 : f32
      %290 = vector.broadcast %cst_79 : f32 to vector<8x128xf32>
      %c0_80 = arith.constant 0 : index
      %c0_81 = arith.constant 0 : index
      %291 = vector.load %arg6[%c0_80, %c0_81] : memref<8x128xf32, #tpu.memory_space<vmem>>, vector<8x128xf32>
      tpu.vector_store %arg6[%c0_80, %c0_81], %290 {strides = array<i32>} : memref<8x128xf32, #tpu.memory_space<vmem>>, vector<8x128xf32>,
      %cst_82 = arith.constant 0.000000e+00 : f32
      %292 = vector.broadcast %cst_82 : f32 to vector<8x128xf32>
      %c0_83 = arith.constant 0 : index
      %c0_84 = arith.constant 0 : index
      %293 = vector.load %arg7[%c0_83, %c0_84] : memref<8x128xf32, #tpu.memory_space<vmem>>, vector<8x128xf32>
      tpu.vector_store %arg7[%c0_83, %c0_84], %292 {strides = array<i32>} : memref<8x128xf32, #tpu.memory_space<vmem>>, vector<8x128xf32>,
    } else {
    }
    %c0 = arith.constant 0 : index
    %c0_1 = arith.constant 0 : index
    %3 = vector.load %arg1[%c0, %c0_1] : memref<64x128xbf16, #tpu.memory_space<vmem>>, vector<64x128xbf16>
    %c0_2 = arith.constant 0 : index
    %c0_3 = arith.constant 0 : index
    %4 = vector.load %arg2[%c0_2, %c0_3] : memref<128x512xbf16, #tpu.memory_space<vmem>>, vector<128x512xbf16>
    %cst = arith.constant dense<0.000000e+00> : vector<64x512xf32>
    %5 = tpu.matmul %3, %4, %cst {dimension_numbers = #tpu.dot_dimension_numbers<[1], [0], [0], [1], [0, 0, 1, 1], [], []>} : vector<64x128xbf16>, vector<128x512xbf16>, vector<64x512xf32> -> vector<64x512xf32>
    %c0_4 = arith.constant 0 : index
    %c0_5 = arith.constant 0 : index
    %6 = vector.load %arg4[%c0_4, %c0_5] : memref<1x512xf32, #tpu.memory_space<vmem>>, vector<1x512xf32>
    %7 = vector.broadcast %6 : vector<1x512xf32> to vector<64x512xf32>
    %8 = arith.addf %5, %7 : vector<64x512xf32>
    %c0_6 = arith.constant 0 : index
    %c0_7 = arith.constant 0 : index
    %9 = vector.load %arg8[%c0_6, %c0_7] : memref<64x512xf32, #tpu.memory_space<vmem>>, vector<64x512xf32>
    tpu.vector_store %arg8[%c0_6, %c0_7], %8 {strides = array<i32>} : memref<64x512xf32, #tpu.memory_space<vmem>>, vector<64x512xf32>,
    %c0_8 = arith.constant 0 : index
    %c0_9 = arith.constant 0 : index
    %10 = vector.load %arg3[%c0_8, %c0_9] : memref<128x512xbf16, #tpu.memory_space<vmem>>, vector<128x512xbf16>
    %c0_10 = arith.constant 0 : index
    %c0_11 = arith.constant 0 : index
    %11 = vector.load %arg6[%c0_10, %c0_11] : memref<8x128xf32, #tpu.memory_space<vmem>>, vector<8x128xf32>
    %c0_12 = arith.constant 0 : index
    %c0_13 = arith.constant 0 : index
    %12 = vector.load %arg7[%c0_12, %c0_13] : memref<8x128xf32, #tpu.memory_space<vmem>>, vector<8x128xf32>
    %c0_i32_14 = arith.constant 0 : i32
    %c8_i32 = arith.constant 8 : i32
    %13 = arith.muli %c0_i32_14, %c8_i32 : i32
    %14 = tpu.assume_multiple %13, 8 : i32
    %15 = arith.index_cast %14 : i32 to index
    %c0_15 = arith.constant 0 : index
    %16 = vector.load %arg8[%15, %c0_15] : memref<64x512xf32, #tpu.memory_space<vmem>>, vector<8x512xf32>
    %17 = arith.truncf %11 : vector<8x128xf32> to vector<8x128xbf16>
    %cst_16 = arith.constant dense<0.000000e+00> : vector<8x512xf32>
    %18 = tpu.matmul %17, %10, %cst_16 {dimension_numbers = #tpu.dot_dimension_numbers<[1], [0], [0], [1], [0, 0, 1, 1], [], []>} : vector<8x128xbf16>, vector<128x512xbf16>, vector<8x512xf32> -> vector<8x512xf32>
    %19 = arith.addf %16, %18 : vector<8x512xf32>
    %20 = vector.extract_strided_slice %19 {offsets = [0, 0], sizes = [8, 128], strides = [1, 1]} : vector<8x512xf32> to vector<8x128xf32>
    %21 = arith.negf %20 : vector<8x128xf32>
    %22 = math.exp %21 : vector<8x128xf32>
    %cst_17 = arith.constant 1.000000e+00 : f32
    %23 = vector.broadcast %cst_17 : f32 to vector<8x128xf32>
    %24 = arith.addf %23, %22 : vector<8x128xf32>
    %25 = arith.divf %23, %24 : vector<8x128xf32>
    %26 = vector.extract_strided_slice %19 {offsets = [0, 128], sizes = [8, 128], strides = [1, 1]} : vector<8x512xf32> to vector<8x128xf32>
    %27 = arith.negf %26 : vector<8x128xf32>
    %28 = math.exp %27 : vector<8x128xf32>
    %cst_18 = arith.constant 1.000000e+00 : f32
    %29 = vector.broadcast %cst_18 : f32 to vector<8x128xf32>
    %30 = arith.addf %29, %28 : vector<8x128xf32>
    %31 = arith.divf %29, %30 : vector<8x128xf32>
    %32 = vector.extract_strided_slice %19 {offsets = [0, 256], sizes = [8, 128], strides = [1, 1]} : vector<8x512xf32> to vector<8x128xf32>
    %33 = math.tanh %32 : vector<8x128xf32>
    %34 = vector.extract_strided_slice %19 {offsets = [0, 384], sizes = [8, 128], strides = [1, 1]} : vector<8x512xf32> to vector<8x128xf32>
    %35 = arith.negf %34 : vector<8x128xf32>
    %36 = math.exp %35 : vector<8x128xf32>
    %cst_19 = arith.constant 1.000000e+00 : f32
    %37 = vector.broadcast %cst_19 : f32 to vector<8x128xf32>
    %38 = arith.addf %37, %36 : vector<8x128xf32>
    %39 = arith.divf %37, %38 : vector<8x128xf32>
    %40 = arith.mulf %31, %12 : vector<8x128xf32>
    %41 = arith.mulf %25, %33 : vector<8x128xf32>
    %42 = arith.addf %40, %41 : vector<8x128xf32>
    %43 = math.tanh %42 : vector<8x128xf32>
    %44 = arith.mulf %39, %43 : vector<8x128xf32>
    %45 = arith.index_cast %14 : i32 to index
    %c0_20 = arith.constant 0 : index
    %46 = vector.load %arg9[%45, %c0_20] : memref<64x128xf32, #tpu.memory_space<vmem>>, vector<8x128xf32>
    tpu.vector_store %arg9[%45, %c0_20], %44 {strides = array<i32>} : memref<64x128xf32, #tpu.memory_space<vmem>>, vector<8x128xf32>,
    %c1_i32 = arith.constant 1 : i32
    %c8_i32_21 = arith.constant 8 : i32
    %47 = arith.muli %c1_i32, %c8_i32_21 : i32
    %48 = tpu.assume_multiple %47, 8 : i32
    %49 = arith.index_cast %48 : i32 to index
    %c0_22 = arith.constant 0 : index
    %50 = vector.load %arg8[%49, %c0_22] : memref<64x512xf32, #tpu.memory_space<vmem>>, vector<8x512xf32>
    %51 = arith.truncf %44 : vector<8x128xf32> to vector<8x128xbf16>
    %cst_23 = arith.constant dense<0.000000e+00> : vector<8x512xf32>
    %52 = tpu.matmul %51, %10, %cst_23 {dimension_numbers = #tpu.dot_dimension_numbers<[1], [0], [0], [1], [0, 0, 1, 1], [], []>} : vector<8x128xbf16>, vector<128x512xbf16>, vector<8x512xf32> -> vector<8x512xf32>
    %53 = arith.addf %50, %52 : vector<8x512xf32>
    %54 = vector.extract_strided_slice %53 {offsets = [0, 0], sizes = [8, 128], strides = [1, 1]} : vector<8x512xf32> to vector<8x128xf32>
    %55 = arith.negf %54 : vector<8x128xf32>
    %56 = math.exp %55 : vector<8x128xf32>
    %cst_24 = arith.constant 1.000000e+00 : f32
    %57 = vector.broadcast %cst_24 : f32 to vector<8x128xf32>
    %58 = arith.addf %57, %56 : vector<8x128xf32>
    %59 = arith.divf %57, %58 : vector<8x128xf32>
    %60 = vector.extract_strided_slice %53 {offsets = [0, 128], sizes = [8, 128], strides = [1, 1]} : vector<8x512xf32> to vector<8x128xf32>
    %61 = arith.negf %60 : vector<8x128xf32>
    %62 = math.exp %61 : vector<8x128xf32>
    %cst_25 = arith.constant 1.000000e+00 : f32
    %63 = vector.broadcast %cst_25 : f32 to vector<8x128xf32>
    %64 = arith.addf %63, %62 : vector<8x128xf32>
    %65 = arith.divf %63, %64 : vector<8x128xf32>
    %66 = vector.extract_strided_slice %53 {offsets = [0, 256], sizes = [8, 128], strides = [1, 1]} : vector<8x512xf32> to vector<8x128xf32>
    %67 = math.tanh %66 : vector<8x128xf32>
    %68 = vector.extract_strided_slice %53 {offsets = [0, 384], sizes = [8, 128], strides = [1, 1]} : vector<8x512xf32> to vector<8x128xf32>
    %69 = arith.negf %68 : vector<8x128xf32>
    %70 = math.exp %69 : vector<8x128xf32>
    %cst_26 = arith.constant 1.000000e+00 : f32
    %71 = vector.broadcast %cst_26 : f32 to vector<8x128xf32>
    %72 = arith.addf %71, %70 : vector<8x128xf32>
    %73 = arith.divf %71, %72 : vector<8x128xf32>
    %74 = arith.mulf %65, %42 : vector<8x128xf32>
    %75 = arith.mulf %59, %67 : vector<8x128xf32>
    %76 = arith.addf %74, %75 : vector<8x128xf32>
    %77 = math.tanh %76 : vector<8x128xf32>
    %78 = arith.mulf %73, %77 : vector<8x128xf32>
    %79 = arith.index_cast %48 : i32 to index
    %c0_27 = arith.constant 0 : index
    %80 = vector.load %arg9[%79, %c0_27] : memref<64x128xf32, #tpu.memory_space<vmem>>, vector<8x128xf32>
    tpu.vector_store %arg9[%79, %c0_27], %78 {strides = array<i32>} : memref<64x128xf32, #tpu.memory_space<vmem>>, vector<8x128xf32>,
    %c2_i32 = arith.constant 2 : i32
    %c8_i32_28 = arith.constant 8 : i32
    %81 = arith.muli %c2_i32, %c8_i32_28 : i32
    %82 = tpu.assume_multiple %81, 8 : i32
    %83 = arith.index_cast %82 : i32 to index
    %c0_29 = arith.constant 0 : index
    %84 = vector.load %arg8[%83, %c0_29] : memref<64x512xf32, #tpu.memory_space<vmem>>, vector<8x512xf32>
    %85 = arith.truncf %78 : vector<8x128xf32> to vector<8x128xbf16>
    %cst_30 = arith.constant dense<0.000000e+00> : vector<8x512xf32>
    %86 = tpu.matmul %85, %10, %cst_30 {dimension_numbers = #tpu.dot_dimension_numbers<[1], [0], [0], [1], [0, 0, 1, 1], [], []>} : vector<8x128xbf16>, vector<128x512xbf16>, vector<8x512xf32> -> vector<8x512xf32>
    %87 = arith.addf %84, %86 : vector<8x512xf32>
    %88 = vector.extract_strided_slice %87 {offsets = [0, 0], sizes = [8, 128], strides = [1, 1]} : vector<8x512xf32> to vector<8x128xf32>
    %89 = arith.negf %88 : vector<8x128xf32>
    %90 = math.exp %89 : vector<8x128xf32>
    %cst_31 = arith.constant 1.000000e+00 : f32
    %91 = vector.broadcast %cst_31 : f32 to vector<8x128xf32>
    %92 = arith.addf %91, %90 : vector<8x128xf32>
    %93 = arith.divf %91, %92 : vector<8x128xf32>
    %94 = vector.extract_strided_slice %87 {offsets = [0, 128], sizes = [8, 128], strides = [1, 1]} : vector<8x512xf32> to vector<8x128xf32>
    %95 = arith.negf %94 : vector<8x128xf32>
    %96 = math.exp %95 : vector<8x128xf32>
    %cst_32 = arith.constant 1.000000e+00 : f32
    %97 = vector.broadcast %cst_32 : f32 to vector<8x128xf32>
    %98 = arith.addf %97, %96 : vector<8x128xf32>
    %99 = arith.divf %97, %98 : vector<8x128xf32>
    %100 = vector.extract_strided_slice %87 {offsets = [0, 256], sizes = [8, 128], strides = [1, 1]} : vector<8x512xf32> to vector<8x128xf32>
    %101 = math.tanh %100 : vector<8x128xf32>
    %102 = vector.extract_strided_slice %87 {offsets = [0, 384], sizes = [8, 128], strides = [1, 1]} : vector<8x512xf32> to vector<8x128xf32>
    %103 = arith.negf %102 : vector<8x128xf32>
    %104 = math.exp %103 : vector<8x128xf32>
    %cst_33 = arith.constant 1.000000e+00 : f32
    %105 = vector.broadcast %cst_33 : f32 to vector<8x128xf32>
    %106 = arith.addf %105, %104 : vector<8x128xf32>
    %107 = arith.divf %105, %106 : vector<8x128xf32>
    %108 = arith.mulf %99, %76 : vector<8x128xf32>
    %109 = arith.mulf %93, %101 : vector<8x128xf32>
    %110 = arith.addf %108, %109 : vector<8x128xf32>
    %111 = math.tanh %110 : vector<8x128xf32>
    %112 = arith.mulf %107, %111 : vector<8x128xf32>
    %113 = arith.index_cast %82 : i32 to index
    %c0_34 = arith.constant 0 : index
    %114 = vector.load %arg9[%113, %c0_34] : memref<64x128xf32, #tpu.memory_space<vmem>>, vector<8x128xf32>
    tpu.vector_store %arg9[%113, %c0_34], %112 {strides = array<i32>} : memref<64x128xf32, #tpu.memory_space<vmem>>, vector<8x128xf32>,
    %c3_i32 = arith.constant 3 : i32
    %c8_i32_35 = arith.constant 8 : i32
    %115 = arith.muli %c3_i32, %c8_i32_35 : i32
    %116 = tpu.assume_multiple %115, 8 : i32
    %117 = arith.index_cast %116 : i32 to index
    %c0_36 = arith.constant 0 : index
    %118 = vector.load %arg8[%117, %c0_36] : memref<64x512xf32, #tpu.memory_space<vmem>>, vector<8x512xf32>
    %119 = arith.truncf %112 : vector<8x128xf32> to vector<8x128xbf16>
    %cst_37 = arith.constant dense<0.000000e+00> : vector<8x512xf32>
    %120 = tpu.matmul %119, %10, %cst_37 {dimension_numbers = #tpu.dot_dimension_numbers<[1], [0], [0], [1], [0, 0, 1, 1], [], []>} : vector<8x128xbf16>, vector<128x512xbf16>, vector<8x512xf32> -> vector<8x512xf32>
    %121 = arith.addf %118, %120 : vector<8x512xf32>
    %122 = vector.extract_strided_slice %121 {offsets = [0, 0], sizes = [8, 128], strides = [1, 1]} : vector<8x512xf32> to vector<8x128xf32>
    %123 = arith.negf %122 : vector<8x128xf32>
    %124 = math.exp %123 : vector<8x128xf32>
    %cst_38 = arith.constant 1.000000e+00 : f32
    %125 = vector.broadcast %cst_38 : f32 to vector<8x128xf32>
    %126 = arith.addf %125, %124 : vector<8x128xf32>
    %127 = arith.divf %125, %126 : vector<8x128xf32>
    %128 = vector.extract_strided_slice %121 {offsets = [0, 128], sizes = [8, 128], strides = [1, 1]} : vector<8x512xf32> to vector<8x128xf32>
    %129 = arith.negf %128 : vector<8x128xf32>
    %130 = math.exp %129 : vector<8x128xf32>
    %cst_39 = arith.constant 1.000000e+00 : f32
    %131 = vector.broadcast %cst_39 : f32 to vector<8x128xf32>
    %132 = arith.addf %131, %130 : vector<8x128xf32>
    %133 = arith.divf %131, %132 : vector<8x128xf32>
    %134 = vector.extract_strided_slice %121 {offsets = [0, 256], sizes = [8, 128], strides = [1, 1]} : vector<8x512xf32> to vector<8x128xf32>
    %135 = math.tanh %134 : vector<8x128xf32>
    %136 = vector.extract_strided_slice %121 {offsets = [0, 384], sizes = [8, 128], strides = [1, 1]} : vector<8x512xf32> to vector<8x128xf32>
    %137 = arith.negf %136 : vector<8x128xf32>
    %138 = math.exp %137 : vector<8x128xf32>
    %cst_40 = arith.constant 1.000000e+00 : f32
    %139 = vector.broadcast %cst_40 : f32 to vector<8x128xf32>
    %140 = arith.addf %139, %138 : vector<8x128xf32>
    %141 = arith.divf %139, %140 : vector<8x128xf32>
    %142 = arith.mulf %133, %110 : vector<8x128xf32>
    %143 = arith.mulf %127, %135 : vector<8x128xf32>
    %144 = arith.addf %142, %143 : vector<8x128xf32>
    %145 = math.tanh %144 : vector<8x128xf32>
    %146 = arith.mulf %141, %145 : vector<8x128xf32>
    %147 = arith.index_cast %116 : i32 to index
    %c0_41 = arith.constant 0 : index
    %148 = vector.load %arg9[%147, %c0_41] : memref<64x128xf32, #tpu.memory_space<vmem>>, vector<8x128xf32>
    tpu.vector_store %arg9[%147, %c0_41], %146 {strides = array<i32>} : memref<64x128xf32, #tpu.memory_space<vmem>>, vector<8x128xf32>,
    %c4_i32 = arith.constant 4 : i32
    %c8_i32_42 = arith.constant 8 : i32
    %149 = arith.muli %c4_i32, %c8_i32_42 : i32
    %150 = tpu.assume_multiple %149, 8 : i32
    %151 = arith.index_cast %150 : i32 to index
    %c0_43 = arith.constant 0 : index
    %152 = vector.load %arg8[%151, %c0_43] : memref<64x512xf32, #tpu.memory_space<vmem>>, vector<8x512xf32>
    %153 = arith.truncf %146 : vector<8x128xf32> to vector<8x128xbf16>
    %cst_44 = arith.constant dense<0.000000e+00> : vector<8x512xf32>
    %154 = tpu.matmul %153, %10, %cst_44 {dimension_numbers = #tpu.dot_dimension_numbers<[1], [0], [0], [1], [0, 0, 1, 1], [], []>} : vector<8x128xbf16>, vector<128x512xbf16>, vector<8x512xf32> -> vector<8x512xf32>
    %155 = arith.addf %152, %154 : vector<8x512xf32>
    %156 = vector.extract_strided_slice %155 {offsets = [0, 0], sizes = [8, 128], strides = [1, 1]} : vector<8x512xf32> to vector<8x128xf32>
    %157 = arith.negf %156 : vector<8x128xf32>
    %158 = math.exp %157 : vector<8x128xf32>
    %cst_45 = arith.constant 1.000000e+00 : f32
    %159 = vector.broadcast %cst_45 : f32 to vector<8x128xf32>
    %160 = arith.addf %159, %158 : vector<8x128xf32>
    %161 = arith.divf %159, %160 : vector<8x128xf32>
    %162 = vector.extract_strided_slice %155 {offsets = [0, 128], sizes = [8, 128], strides = [1, 1]} : vector<8x512xf32> to vector<8x128xf32>
    %163 = arith.negf %162 : vector<8x128xf32>
    %164 = math.exp %163 : vector<8x128xf32>
    %cst_46 = arith.constant 1.000000e+00 : f32
    %165 = vector.broadcast %cst_46 : f32 to vector<8x128xf32>
    %166 = arith.addf %165, %164 : vector<8x128xf32>
    %167 = arith.divf %165, %166 : vector<8x128xf32>
    %168 = vector.extract_strided_slice %155 {offsets = [0, 256], sizes = [8, 128], strides = [1, 1]} : vector<8x512xf32> to vector<8x128xf32>
    %169 = math.tanh %168 : vector<8x128xf32>
    %170 = vector.extract_strided_slice %155 {offsets = [0, 384], sizes = [8, 128], strides = [1, 1]} : vector<8x512xf32> to vector<8x128xf32>
    %171 = arith.negf %170 : vector<8x128xf32>
    %172 = math.exp %171 : vector<8x128xf32>
    %cst_47 = arith.constant 1.000000e+00 : f32
    %173 = vector.broadcast %cst_47 : f32 to vector<8x128xf32>
    %174 = arith.addf %173, %172 : vector<8x128xf32>
    %175 = arith.divf %173, %174 : vector<8x128xf32>
    %176 = arith.mulf %167, %144 : vector<8x128xf32>
    %177 = arith.mulf %161, %169 : vector<8x128xf32>
    %178 = arith.addf %176, %177 : vector<8x128xf32>
    %179 = math.tanh %178 : vector<8x128xf32>
    %180 = arith.mulf %175, %179 : vector<8x128xf32>
    %181 = arith.index_cast %150 : i32 to index
    %c0_48 = arith.constant 0 : index
    %182 = vector.load %arg9[%181, %c0_48] : memref<64x128xf32, #tpu.memory_space<vmem>>, vector<8x128xf32>
    tpu.vector_store %arg9[%181, %c0_48], %180 {strides = array<i32>} : memref<64x128xf32, #tpu.memory_space<vmem>>, vector<8x128xf32>,
    %c5_i32 = arith.constant 5 : i32
    %c8_i32_49 = arith.constant 8 : i32
    %183 = arith.muli %c5_i32, %c8_i32_49 : i32
    %184 = tpu.assume_multiple %183, 8 : i32
    %185 = arith.index_cast %184 : i32 to index
    %c0_50 = arith.constant 0 : index
    %186 = vector.load %arg8[%185, %c0_50] : memref<64x512xf32, #tpu.memory_space<vmem>>, vector<8x512xf32>
    %187 = arith.truncf %180 : vector<8x128xf32> to vector<8x128xbf16>
    %cst_51 = arith.constant dense<0.000000e+00> : vector<8x512xf32>
    %188 = tpu.matmul %187, %10, %cst_51 {dimension_numbers = #tpu.dot_dimension_numbers<[1], [0], [0], [1], [0, 0, 1, 1], [], []>} : vector<8x128xbf16>, vector<128x512xbf16>, vector<8x512xf32> -> vector<8x512xf32>
    %189 = arith.addf %186, %188 : vector<8x512xf32>
    %190 = vector.extract_strided_slice %189 {offsets = [0, 0], sizes = [8, 128], strides = [1, 1]} : vector<8x512xf32> to vector<8x128xf32>
    %191 = arith.negf %190 : vector<8x128xf32>
    %192 = math.exp %191 : vector<8x128xf32>
    %cst_52 = arith.constant 1.000000e+00 : f32
    %193 = vector.broadcast %cst_52 : f32 to vector<8x128xf32>
    %194 = arith.addf %193, %192 : vector<8x128xf32>
    %195 = arith.divf %193, %194 : vector<8x128xf32>
    %196 = vector.extract_strided_slice %189 {offsets = [0, 128], sizes = [8, 128], strides = [1, 1]} : vector<8x512xf32> to vector<8x128xf32>
    %197 = arith.negf %196 : vector<8x128xf32>
    %198 = math.exp %197 : vector<8x128xf32>
    %cst_53 = arith.constant 1.000000e+00 : f32
    %199 = vector.broadcast %cst_53 : f32 to vector<8x128xf32>
    %200 = arith.addf %199, %198 : vector<8x128xf32>
    %201 = arith.divf %199, %200 : vector<8x128xf32>
    %202 = vector.extract_strided_slice %189 {offsets = [0, 256], sizes = [8, 128], strides = [1, 1]} : vector<8x512xf32> to vector<8x128xf32>
    %203 = math.tanh %202 : vector<8x128xf32>
    %204 = vector.extract_strided_slice %189 {offsets = [0, 384], sizes = [8, 128], strides = [1, 1]} : vector<8x512xf32> to vector<8x128xf32>
    %205 = arith.negf %204 : vector<8x128xf32>
    %206 = math.exp %205 : vector<8x128xf32>
    %cst_54 = arith.constant 1.000000e+00 : f32
    %207 = vector.broadcast %cst_54 : f32 to vector<8x128xf32>
    %208 = arith.addf %207, %206 : vector<8x128xf32>
    %209 = arith.divf %207, %208 : vector<8x128xf32>
    %210 = arith.mulf %201, %178 : vector<8x128xf32>
    %211 = arith.mulf %195, %203 : vector<8x128xf32>
    %212 = arith.addf %210, %211 : vector<8x128xf32>
    %213 = math.tanh %212 : vector<8x128xf32>
    %214 = arith.mulf %209, %213 : vector<8x128xf32>
    %215 = arith.index_cast %184 : i32 to index
    %c0_55 = arith.constant 0 : index
    %216 = vector.load %arg9[%215, %c0_55] : memref<64x128xf32, #tpu.memory_space<vmem>>, vector<8x128xf32>
    tpu.vector_store %arg9[%215, %c0_55], %214 {strides = array<i32>} : memref<64x128xf32, #tpu.memory_space<vmem>>, vector<8x128xf32>,
    %c6_i32 = arith.constant 6 : i32
    %c8_i32_56 = arith.constant 8 : i32
    %217 = arith.muli %c6_i32, %c8_i32_56 : i32
    %218 = tpu.assume_multiple %217, 8 : i32
    %219 = arith.index_cast %218 : i32 to index
    %c0_57 = arith.constant 0 : index
    %220 = vector.load %arg8[%219, %c0_57] : memref<64x512xf32, #tpu.memory_space<vmem>>, vector<8x512xf32>
    %221 = arith.truncf %214 : vector<8x128xf32> to vector<8x128xbf16>
    %cst_58 = arith.constant dense<0.000000e+00> : vector<8x512xf32>
    %222 = tpu.matmul %221, %10, %cst_58 {dimension_numbers = #tpu.dot_dimension_numbers<[1], [0], [0], [1], [0, 0, 1, 1], [], []>} : vector<8x128xbf16>, vector<128x512xbf16>, vector<8x512xf32> -> vector<8x512xf32>
    %223 = arith.addf %220, %222 : vector<8x512xf32>
    %224 = vector.extract_strided_slice %223 {offsets = [0, 0], sizes = [8, 128], strides = [1, 1]} : vector<8x512xf32> to vector<8x128xf32>
    %225 = arith.negf %224 : vector<8x128xf32>
    %226 = math.exp %225 : vector<8x128xf32>
    %cst_59 = arith.constant 1.000000e+00 : f32
    %227 = vector.broadcast %cst_59 : f32 to vector<8x128xf32>
    %228 = arith.addf %227, %226 : vector<8x128xf32>
    %229 = arith.divf %227, %228 : vector<8x128xf32>
    %230 = vector.extract_strided_slice %223 {offsets = [0, 128], sizes = [8, 128], strides = [1, 1]} : vector<8x512xf32> to vector<8x128xf32>
    %231 = arith.negf %230 : vector<8x128xf32>
    %232 = math.exp %231 : vector<8x128xf32>
    %cst_60 = arith.constant 1.000000e+00 : f32
    %233 = vector.broadcast %cst_60 : f32 to vector<8x128xf32>
    %234 = arith.addf %233, %232 : vector<8x128xf32>
    %235 = arith.divf %233, %234 : vector<8x128xf32>
    %236 = vector.extract_strided_slice %223 {offsets = [0, 256], sizes = [8, 128], strides = [1, 1]} : vector<8x512xf32> to vector<8x128xf32>
    %237 = math.tanh %236 : vector<8x128xf32>
    %238 = vector.extract_strided_slice %223 {offsets = [0, 384], sizes = [8, 128], strides = [1, 1]} : vector<8x512xf32> to vector<8x128xf32>
    %239 = arith.negf %238 : vector<8x128xf32>
    %240 = math.exp %239 : vector<8x128xf32>
    %cst_61 = arith.constant 1.000000e+00 : f32
    %241 = vector.broadcast %cst_61 : f32 to vector<8x128xf32>
    %242 = arith.addf %241, %240 : vector<8x128xf32>
    %243 = arith.divf %241, %242 : vector<8x128xf32>
    %244 = arith.mulf %235, %212 : vector<8x128xf32>
    %245 = arith.mulf %229, %237 : vector<8x128xf32>
    %246 = arith.addf %244, %245 : vector<8x128xf32>
    %247 = math.tanh %246 : vector<8x128xf32>
    %248 = arith.mulf %243, %247 : vector<8x128xf32>
    %249 = arith.index_cast %218 : i32 to index
    %c0_62 = arith.constant 0 : index
    %250 = vector.load %arg9[%249, %c0_62] : memref<64x128xf32, #tpu.memory_space<vmem>>, vector<8x128xf32>
    tpu.vector_store %arg9[%249, %c0_62], %248 {strides = array<i32>} : memref<64x128xf32, #tpu.memory_space<vmem>>, vector<8x128xf32>,
    %c7_i32 = arith.constant 7 : i32
    %c8_i32_63 = arith.constant 8 : i32
    %251 = arith.muli %c7_i32, %c8_i32_63 : i32
    %252 = tpu.assume_multiple %251, 8 : i32
    %253 = arith.index_cast %252 : i32 to index
    %c0_64 = arith.constant 0 : index
    %254 = vector.load %arg8[%253, %c0_64] : memref<64x512xf32, #tpu.memory_space<vmem>>, vector<8x512xf32>
    %255 = arith.truncf %248 : vector<8x128xf32> to vector<8x128xbf16>
    %cst_65 = arith.constant dense<0.000000e+00> : vector<8x512xf32>
    %256 = tpu.matmul %255, %10, %cst_65 {dimension_numbers = #tpu.dot_dimension_numbers<[1], [0], [0], [1], [0, 0, 1, 1], [], []>} : vector<8x128xbf16>, vector<128x512xbf16>, vector<8x512xf32> -> vector<8x512xf32>
    %257 = arith.addf %254, %256 : vector<8x512xf32>
    %258 = vector.extract_strided_slice %257 {offsets = [0, 0], sizes = [8, 128], strides = [1, 1]} : vector<8x512xf32> to vector<8x128xf32>
    %259 = arith.negf %258 : vector<8x128xf32>
    %260 = math.exp %259 : vector<8x128xf32>
    %cst_66 = arith.constant 1.000000e+00 : f32
    %261 = vector.broadcast %cst_66 : f32 to vector<8x128xf32>
    %262 = arith.addf %261, %260 : vector<8x128xf32>
    %263 = arith.divf %261, %262 : vector<8x128xf32>
    %264 = vector.extract_strided_slice %257 {offsets = [0, 128], sizes = [8, 128], strides = [1, 1]} : vector<8x512xf32> to vector<8x128xf32>
    %265 = arith.negf %264 : vector<8x128xf32>
    %266 = math.exp %265 : vector<8x128xf32>
    %cst_67 = arith.constant 1.000000e+00 : f32
    %267 = vector.broadcast %cst_67 : f32 to vector<8x128xf32>
    %268 = arith.addf %267, %266 : vector<8x128xf32>
    %269 = arith.divf %267, %268 : vector<8x128xf32>
    %270 = vector.extract_strided_slice %257 {offsets = [0, 256], sizes = [8, 128], strides = [1, 1]} : vector<8x512xf32> to vector<8x128xf32>
    %271 = math.tanh %270 : vector<8x128xf32>
    %272 = vector.extract_strided_slice %257 {offsets = [0, 384], sizes = [8, 128], strides = [1, 1]} : vector<8x512xf32> to vector<8x128xf32>
    %273 = arith.negf %272 : vector<8x128xf32>
    %274 = math.exp %273 : vector<8x128xf32>
    %cst_68 = arith.constant 1.000000e+00 : f32
    %275 = vector.broadcast %cst_68 : f32 to vector<8x128xf32>
    %276 = arith.addf %275, %274 : vector<8x128xf32>
    %277 = arith.divf %275, %276 : vector<8x128xf32>
    %278 = arith.mulf %269, %246 : vector<8x128xf32>
    %279 = arith.mulf %263, %271 : vector<8x128xf32>
    %280 = arith.addf %278, %279 : vector<8x128xf32>
    %281 = math.tanh %280 : vector<8x128xf32>
    %282 = arith.mulf %277, %281 : vector<8x128xf32>
    %283 = arith.index_cast %252 : i32 to index
    %c0_69 = arith.constant 0 : index
    %284 = vector.load %arg9[%283, %c0_69] : memref<64x128xf32, #tpu.memory_space<vmem>>, vector<8x128xf32>
    tpu.vector_store %arg9[%283, %c0_69], %282 {strides = array<i32>} : memref<64x128xf32, #tpu.memory_space<vmem>>, vector<8x128xf32>,
    %c8_i32_70 = arith.constant 8 : i32
    %c0_71 = arith.constant 0 : index
    %c0_72 = arith.constant 0 : index
    %285 = vector.load %arg6[%c0_71, %c0_72] : memref<8x128xf32, #tpu.memory_space<vmem>>, vector<8x128xf32>
    tpu.vector_store %arg6[%c0_71, %c0_72], %282 {strides = array<i32>} : memref<8x128xf32, #tpu.memory_space<vmem>>, vector<8x128xf32>,
    %c0_73 = arith.constant 0 : index
    %c0_74 = arith.constant 0 : index
    %286 = vector.load %arg7[%c0_73, %c0_74] : memref<8x128xf32, #tpu.memory_space<vmem>>, vector<8x128xf32>
    tpu.vector_store %arg7[%c0_73, %c0_74], %280 {strides = array<i32>} : memref<8x128xf32, #tpu.memory_space<vmem>>, vector<8x128xf32>,
    %c0_75 = arith.constant 0 : index
    %c0_76 = arith.constant 0 : index
    %287 = vector.load %arg9[%c0_75, %c0_76] : memref<64x128xf32, #tpu.memory_space<vmem>>, vector<64x128xf32>
    %288 = arith.truncf %287 : vector<64x128xf32> to vector<64x128xbf16>
    %c0_77 = arith.constant 0 : index
    %c0_78 = arith.constant 0 : index
    %289 = vector.load %arg5[%c0_77, %c0_78] : memref<64x128xbf16, #tpu.memory_space<vmem>>, vector<64x128xbf16>
    tpu.vector_store %arg5[%c0_77, %c0_78], %288 {strides = array<i32>} : memref<64x128xbf16, #tpu.memory_space<vmem>>, vector<64x128xbf16>,
    return
  }
  func.func @transform_0(%arg0: i32) -> (i32, i32) {
    %c0_i32 = arith.constant 0 : i32
    %c0_i32_0 = arith.constant 0 : i32
    return %arg0, %c0_i32 : i32, i32
  }
  func.func @transform_1(%arg0: i32) -> (i32, i32) {
    %c0_i32 = arith.constant 0 : i32
    %c0_i32_0 = arith.constant 0 : i32
    %c0_i32_1 = arith.constant 0 : i32
    return %c0_i32, %c0_i32_0 : i32, i32
  }
  func.func @transform_2(%arg0: i32) -> (i32, i32) {
    %c0_i32 = arith.constant 0 : i32
    %c0_i32_0 = arith.constant 0 : i32
    %c0_i32_1 = arith.constant 0 : i32
    return %c0_i32, %c0_i32_0 : i32, i32
  }
  func.func @transform_3(%arg0: i32) -> (i32, i32) {
    %c0_i32 = arith.constant 0 : i32
    %c0_i32_0 = arith.constant 0 : i32
    %c0_i32_1 = arith.constant 0 : i32
    return %c0_i32, %c0_i32_0 : i32, i32
  }
  func.func @transform_4(%arg0: i32) -> (i32, i32) {
    %c0_i32 = arith.constant 0 : i32
    %c0_i32_0 = arith.constant 0 : i32
    return %arg0, %c0_i32 : i32, i32
  }
  func.func @transform_5(%arg0: i32) -> (i32, i32) {
    %c0_i32 = arith.constant 0 : i32
    %c0_i32_0 = arith.constant 0 : i32
    %c0_i32_1 = arith.constant 0 : i32
    return %c0_i32, %c0_i32_0 : i32, i32
  }
  func.func @transform_6(%arg0: i32) -> (i32, i32) {
    %c0_i32 = arith.constant 0 : i32
    %c0_i32_0 = arith.constant 0 : i32
    %c0_i32_1 = arith.constant 0 : i32
    return %c0_i32, %c0_i32_0 : i32, i32
  }
}

</mosaic_0001>

<bundles_post_ra>
// kernel: tpu_custom_call.1
= control target key start
LH: loop header
LB: loop body
LE: loop exit
PB: predicated region body
PF: predicated region fallthrough
CT: control target
= control target key end

     0   :  { %12 = vsyncpa [#allocation5], 0  ;;  %s2887_s0 = inlined_call_operand.hbm [shape: bf16[64,128], index: 0, kind: input, shape index: {}]   ;;  %s2888_s1 = inlined_call_operand.hbm [shape: bf16[128,512], index: 1, kind: input, shape index: {}]   ;;  %s2889_s2 = inlined_call_operand.hbm [shape: bf16[128,512], index: 2, kind: input, shape index: {}]   ;;  %s2890_s3 = inlined_call_operand.vmem [shape: f32[1,512], index: 3, kind: input, shape index: {}]   ;;  %s2891_s4 = inlined_call_operand.hbm [shape: bf16[64,128], index: 4, kind: output, shape index: {0}]   ;;  %s2892_s5 = inlined_call_operand.hbm [shape: f32[8,128], index: 5, kind: output, shape index: {1}]   ;;  %s2893_s6 = inlined_call_operand.hbm [shape: f32[8,128], index: 6, kind: output, shape index: {2}]  }
   0x1   :  { %13 = vsyncpa [#allocation8], 0 }
   0x2   :  { %14 = vsyncpa [#allocation6], 0 }
   0x3   :  { %15 = vsyncpa [#allocation12], 0  ;;  %s2280_s21 = smov [#allocation7]  }
   0x4   :  { %s33_s22 = sshll.u32 %s2280_s21, 4  ;;  %s34_s22 = int_to_ptr.vmem [resolvable:$true] %s33_s22 }
   0x5   :  { %s2160_s23 = scalar_lea.vmem %s34_s22, 4096  ;;  %p2165_p1 = scmp.lt.s32.totalorder %s34_s22, %s34_s22 }
   0x6   :  { %p2161_p0 = scmp.ne.s32.totalorder %s34_s22, %s2160_s23  ;;  %p2166_p2 = scmp.lt.s32.totalorder %s2160_s23, %s2160_s23 }
   0x8   :  { %p2167_p3 = por %p2166_p2, %p2165_p1 }
   0xa   :  { %p2168_p4 = pnand %p2167_p3, %p2161_p0 }
   0xc   :  { %2171 = shalt.err (!%p2168_p4)
}
   0xd   :  { %s2281_s24 = smov 256   ;;  %s2282_s25 = smov 16  }
   0xe   :  { %39 = dma.hbm_to_vmem [thread:$0]  %s2888_s1, 4096, %s34_s22, [#allocation8], %s2281_s24, %s2281_s24, %s2282_s25  }
   0xf   :  { %s2283_s28 = smov [#allocation4]  }
  0x10   :  { %s21_s29 = sshll.u32 %s2283_s28, 4  ;;  %s22_s29 = int_to_ptr.vmem [resolvable:$true] %s21_s29 }
  0x11   :  { %s2180_s30 = scalar_lea.vmem %s22_s29, 512  ;;  %p2185_p6 = scmp.lt.s32.totalorder %s22_s29, %s22_s29 }
  0x12   :  { %p2181_p5 = scmp.ne.s32.totalorder %s22_s29, %s2180_s30  ;;  %p2186_p7 = scmp.lt.s32.totalorder %s2180_s30, %s2180_s30 }
  0x14   :  { %p2187_p8 = por %p2186_p7, %p2185_p6 }
  0x16   :  { %p2188_p9 = pnand %p2187_p8, %p2181_p5 }
  0x18   :  { %2191 = shalt.err (!%p2188_p9)
}
  0x19   :  { %s2284_s7 = smov 64   ;;  %s2285_s8 = smov 4  }
  0x1a   :  { %27 = dma.hbm_to_vmem [thread:$0]  %s2887_s0, 512, %s22_s29, [#allocation5], %s2284_s7, %s2284_s7, %s2285_s8  }
  0x1b   :  { %s2286_s1 = smov [#allocation9]  }
  0x1c   :  { %s45_s11 = sshll.u32 %s2286_s1, 4  ;;  %s46_s11 = int_to_ptr.vmem [resolvable:$true] %s45_s11 }
  0x1d   :  { %s2200_s12 = scalar_lea.vmem %s46_s11, 4096  ;;  %p2205_p11 = scmp.lt.s32.totalorder %s46_s11, %s46_s11 }
  0x1e   :  { %p2201_p10 = scmp.ne.s32.totalorder %s46_s11, %s2200_s12  ;;  %p2206_p12 = scmp.lt.s32.totalorder %s2200_s12, %s2200_s12 }
  0x20   :  { %p2207_p13 = por %p2206_p12, %p2205_p11 }
  0x22   :  { %p2208_p0 = pnand %p2207_p13, %p2201_p10 }
  0x24   :  { %2211 = shalt.err (!%p2208_p0)
}
  0x25   :  { %51 = dma.hbm_to_vmem [thread:$0]  %s2889_s2, 4096, %s46_s11, [#allocation8], %s2281_s24, %s2281_s24, %s2282_s25  }
  0x26   :  { %2272 = dma.done.wait [#allocation5], 512  }
  0x27   :  { %2273 = vsyncadd [#allocation5], 4294966784 }
  0x28   :  { %2274 = dma.done.wait [#allocation8], 8192  }
  0x29   :  { %2275 = vsyncadd [#allocation8], 4294959104  ;;  %v2894_v0 = vmov 0   ;;  %v1892_v1 = vld [vmem:[#allocation7 + $0xe4] ss:$16 sps:$4 sm:$0xff]   ;;  %v1953_v44 = vld [vmem:[#allocation4 + $0x8] sm:$0xff]  }
  0x2a   :  { %348 = vmatprep.mubr.bf16.mxu0 %v2894_v0  ;;  %421 = vmatprep.mubr.bf16.mxu1 %v2894_v0  ;;  %v1894_v2 = vld [vmem:[#allocation7 + $0xec] ss:$16 sps:$4 sm:$0xff]   ;;  %v1896_v3 = vld [vmem:[#allocation7 + $0xe0] ss:$16 sps:$4 sm:$0xff]   ;;  %v1897_v4 = vld [vmem:[#allocation7 + $0xe8] ss:$16 sps:$4 sm:$0xff]  }
  0x2b   :  { %316 = vmatprep.subr.bf16.mxu0 %v1892_v1  ;;  %389 = vmatprep.subr.bf16.mxu1 %v1894_v2  ;;  %v1898_v5 = vld [vmem:[#allocation7 + $0xc4] ss:$16 sps:$4 sm:$0xff]   ;;  %v1900_v6 = vld [vmem:[#allocation7 + $0xcc] ss:$16 sps:$4 sm:$0xff]   ;;  %v1902_v7 = vld [vmem:[#allocation7 + $0xc0] ss:$16 sps:$4 sm:$0xff]  }
  0x2c   :  { %317 = vmatpush1.bf16.msra.mxu0 %v1896_v3  ;;  %390 = vmatpush1.bf16.msra.mxu1 %v1897_v4  ;;  %v1903_v8 = vld [vmem:[#allocation7 + $0xc8] ss:$16 sps:$4 sm:$0xff]   ;;  %v1904_v9 = vld [vmem:[#allocation7 + $0xa4] ss:$16 sps:$4 sm:$0xff]   ;;  %v1906_v10 = vld [vmem:[#allocation7 + $0xac] ss:$16 sps:$4 sm:$0xff]  }
  0x2d   :  { %318 = vmatprep.subr.bf16.mxu0 %v1898_v5  ;;  %391 = vmatprep.subr.bf16.mxu1 %v1900_v6  ;;  %v1908_v11 = vld [vmem:[#allocation7 + $0xa0] ss:$16 sps:$4 sm:$0xff]   ;;  %v1909_v12 = vld [vmem:[#allocation7 + $0xa8] ss:$16 sps:$4 sm:$0xff]   ;;  %v1910_v13 = vld [vmem:[#allocation7 + $0x84] ss:$16 sps:$4 sm:$0xff]  }
  0x2e   :  { %v1912_v14 = vld [vmem:[#allocation7 + $0x8c] ss:$16 sps:$4 sm:$0xff]   ;;  %v1914_v15 = vld [vmem:[#allocation7 + $0x80] ss:$16 sps:$4 sm:$0xff]   ;;  %v1915_v16 = vld [vmem:[#allocation7 + $0x88] ss:$16 sps:$4 sm:$0xff]  }
  0x2f   :  { %v1916_v17 = vld [vmem:[#allocation7 + $0x64] ss:$16 sps:$4 sm:$0xff]   ;;  %v1918_v18 = vld [vmem:[#allocation7 + $0x6c] ss:$16 sps:$4 sm:$0xff]   ;;  %v1920_v19 = vld [vmem:[#allocation7 + $0x60] ss:$16 sps:$4 sm:$0xff]  }
  0x30   :  { %319 = vmatpush1.bf16.msra.mxu0 %v1902_v7  ;;  %392 = vmatpush1.bf16.msra.mxu1 %v1903_v8  ;;  %v1921_v20 = vld [vmem:[#allocation7 + $0x68] ss:$16 sps:$4 sm:$0xff]   ;;  %v1922_v21 = vld [vmem:[#allocation7 + $0x44] ss:$16 sps:$4 sm:$0xff]   ;;  %v1924_v22 = vld [vmem:[#allocation7 + $0x4c] ss:$16 sps:$4 sm:$0xff]   ;;  %v112_v7 = vlaneseq }
  0x31   :  { %320 = vmatprep.subr.bf16.mxu0 %v1904_v9  ;;  %393 = vmatprep.subr.bf16.mxu1 %v1906_v10  ;;  %v1926_v23 = vld [vmem:[#allocation7 + $0x40] ss:$16 sps:$4 sm:$0xff]   ;;  %v1927_v24 = vld [vmem:[#allocation7 + $0x48] ss:$16 sps:$4 sm:$0xff]   ;;  %v1928_v25 = vld [vmem:[#allocation7 + $0x24] ss:$16 sps:$4 sm:$0xff]  }
  0x32   :  { %v1930_v26 = vld [vmem:[#allocation7 + $0x2c] ss:$16 sps:$4 sm:$0xff]   ;;  %v1932_v27 = vld [vmem:[#allocation7 + $0x20] ss:$16 sps:$4 sm:$0xff]   ;;  %v1933_v28 = vld [vmem:[#allocation7 + $0x28] ss:$16 sps:$4 sm:$0xff]  }
  0x33   :  { %v1934_v29 = vld [vmem:[#allocation7 + $0x4] ss:$16 sps:$4 sm:$0xff]   ;;  %v1936_v30 = vld [vmem:[#allocation7 + $0xc] ss:$16 sps:$4 sm:$0xff]   ;;  %v1938_v31 = vld [vmem:[#allocation7] ss:$16 sps:$4 sm:$0xff]  }
  0x34   :  { %321 = vmatpush1.bf16.msra.mxu0 %v1908_v11  ;;  %394 = vmatpush1.bf16.msra.mxu1 %v1909_v12  ;;  %v1939_v32 = vld [vmem:[#allocation7 + $0x8] ss:$16 sps:$4 sm:$0xff]   ;;  %v2341_v33 = vld [vmem:[#allocation9 + $0xe4] ss:$16 sps:$4 sm:$0xff]   ;;  %v2343_v34 = vld [vmem:[#allocation9 + $0xec] ss:$16 sps:$4 sm:$0xff]  }
  0x35   :  { %322 = vmatprep.subr.bf16.mxu0 %v1910_v13  ;;  %395 = vmatprep.subr.bf16.mxu1 %v1912_v14  ;;  %v1940_v35 = vld [vmem:[#allocation4] sm:$0xff]   ;;  %v2347_v37 = vld [vmem:[#allocation9 + $0xe8] ss:$16 sps:$4 sm:$0xff]   ;;  %v2353_v39 = vld [vmem:[#allocation9 + $0xcc] ss:$16 sps:$4 sm:$0xff]   ;;  %v2288_v6 = vmov 0.0|0.0  }
  0x36   :  { %v2345_v36 = vld [vmem:[#allocation9 + $0xe0] ss:$16 sps:$4 sm:$0xff]   ;;  %v2351_v38 = vld [vmem:[#allocation9 + $0xc4] ss:$16 sps:$4 sm:$0xff]   ;;  %v2359_v41 = vld [vmem:[#allocation9 + $0xc8] ss:$16 sps:$4 sm:$0xff]  }
  0x37   :  { %v2355_v40 = vld [vmem:[#allocation9 + $0xc0] ss:$16 sps:$4 sm:$0xff]   ;;  %v2363_v42 = vld [vmem:[#allocation9 + $0xa4] ss:$16 sps:$4 sm:$0xff]   ;;  %v2365_v43 = vld [vmem:[#allocation9 + $0xac] ss:$16 sps:$4 sm:$0xff]  }
  0x38   :  { %323 = vmatpush1.bf16.msra.mxu0 %v1914_v15  ;;  %396 = vmatpush1.bf16.msra.mxu1 %v1915_v16  ;;  %v2369_v45 = vld [vmem:[#allocation9 + $0xa0] ss:$16 sps:$4 sm:$0xff]   ;;  %v2371_v46 = vld [vmem:[#allocation9 + $0xa8] ss:$16 sps:$4 sm:$0xff]   ;;  %v2375_v47 = vld [vmem:[#allocation9 + $0x84] ss:$16 sps:$4 sm:$0xff]  }
  0x39   :  { %324 = vmatprep.subr.bf16.mxu0 %v1916_v17  ;;  %397 = vmatprep.subr.bf16.mxu1 %v1918_v18  ;;  %v2379_v48 = vld [vmem:[#allocation9 + $0x8c] ss:$16 sps:$4 sm:$0xff]   ;;  %v2381_v49 = vld [vmem:[#allocation9 + $0x80] ss:$16 sps:$4 sm:$0xff]   ;;  %v2383_v50 = vld [vmem:[#allocation9 + $0x88] ss:$16 sps:$4 sm:$0xff]  }
  0x3a   :  { %v2387_v51 = vld [vmem:[#allocation9 + $0x64] ss:$16 sps:$4 sm:$0xff]   ;;  %v2391_v52 = vld [vmem:[#allocation9 + $0x6c] ss:$16 sps:$4 sm:$0xff]   ;;  %v2397_v54 = vld [vmem:[#allocation9 + $0x60] ss:$16 sps:$4 sm:$0xff]  }
  0x3b   :  { %v1966_v53 = vld [vmem:[#allocation4 + $0x10] sm:$0xff]   ;;  %v2399_v55 = vld [vmem:[#allocation9 + $0x68] ss:$16 sps:$4 sm:$0xff]   ;;  %v2405_v57 = vld [vmem:[#allocation9 + $0x4c] ss:$16 sps:$4 sm:$0xff]   ;;  %v113_v8 = vshrl.u32 %v112_v7, 7 }
  0x3c   :  { %325 = vmatpush1.bf16.msra.mxu0 %v1920_v19  ;;  %398 = vmatpush1.bf16.msra.mxu1 %v1921_v20  ;;  %v2403_v56 = vld [vmem:[#allocation9 + $0x44] ss:$16 sps:$4 sm:$0xff]   ;;  %v2409_v58 = vld [vmem:[#allocation9 + $0x40] ss:$16 sps:$4 sm:$0xff]   ;;  %v2411_v59 = vld [vmem:[#allocation9 + $0x48] ss:$16 sps:$4 sm:$0xff]  }
  0x3d   :  { %326 = vmatprep.subr.bf16.mxu0 %v1922_v21  ;;  %399 = vmatprep.subr.bf16.mxu1 %v1924_v22  ;;  %v2415_v60 = vld [vmem:[#allocation9 + $0x24] ss:$16 sps:$4 sm:$0xff]   ;;  %v2417_v61 = vld [vmem:[#allocation9 + $0x2c] ss:$16 sps:$4 sm:$0xff]   ;;  %v2423_v63 = vld [vmem:[#allocation9 + $0x20] ss:$16 sps:$4 sm:$0xff]  }
  0x3e   :  { %v1979_v62 = vld [vmem:[#allocation4 + $0x18] sm:$0xff]   ;;  %v2429_v2 = vld [vmem:[#allocation9 + $0x4] ss:$16 sps:$4 sm:$0xff]   ;;  %v2435_v4 = vld [vmem:[#allocation9] ss:$16 sps:$4 sm:$0xff]   ;;  %v122_v9 = vsub.s32 2, %v113_v8 }
  0x3f   :  { %v2425_v1 = vld [vmem:[#allocation9 + $0x28] ss:$16 sps:$4 sm:$0xff]   ;;  %v2431_v3 = vld [vmem:[#allocation9 + $0xc] ss:$16 sps:$4 sm:$0xff]   ;;  %v114_v10 = vsub.s32 0, %v113_v8  ;;  %v126_v11 = vsub.s32 3, %v113_v8 }
  0x40   :  { %327 = vmatpush1.bf16.msra.mxu0 %v1926_v23  ;;  %400 = vmatpush1.bf16.msra.mxu1 %v1927_v24  ;;  %v2437_v5 = vld [vmem:[#allocation9 + $0x8] ss:$16 sps:$4 sm:$0xff]   ;;  %v110_v12 = vld [vmem:[%s2890_s3] sm:$0xf]  ;;  %v118_v16 = vsub.s32 1, %v113_v8  ;;  %s2289_s3 = smov [#allocation11]  }
  0x41   :  { %328 = vmatprep.subr.bf16.mxu0 %v1928_v25  ;;  %401 = vmatprep.subr.bf16.mxu1 %v1930_v26  ;;  %v2488_v15 = vrot.slane %v110_v12, %v122_v9  ;;  %v115_v19 = vrot.slane %v110_v12, %v114_v10  ;;  %v2494_v20 = vrot.slane %v110_v12, %v126_v11  ;;  %s1715_s15 = sshll.u32 %s2289_s3, 4  ;;  %s2290_s16 = smov [#allocation13]   ;;  %s1716_s15 = int_to_ptr.vmem [resolvable:$true] %s1715_s15 }
  0x42   :  { %v119_v23 = vrot.slane %v110_v12, %v118_v16  ;;  %s1725_s17 = sshll.u32 %s2290_s16, 4  ;;  %s2291_s18 = smov [#allocation10]   ;;  %s1726_s17 = int_to_ptr.vmem [resolvable:$true] %s1725_s17 }
  0x43   :  { %s1702_s19 = sshll.u32 %s2291_s18, 4  ;;  %s2212_s20 = scalar_lea.vmem %s1716_s15, 128  ;;  %s1703_s19 = int_to_ptr.vmem [resolvable:$true] %s1702_s19 }
  0x44   :  { %329 = vmatpush1.bf16.msra.mxu0 %v1932_v27  ;;  %402 = vmatpush1.bf16.msra.mxu1 %v1933_v28  ;;  %p2213_p1 = scmp.ne.s32.totalorder %s1716_s15, %s2212_s20  ;;  %p2217_p2 = scmp.lt.s32.totalorder %s1716_s15, %s1716_s15 }
  0x45   :  { %330 = vmatprep.subr.bf16.mxu0 %v1934_v29  ;;  %403 = vmatprep.subr.bf16.mxu1 %v1936_v30  ;;  %p2218_p3 = scmp.lt.s32.totalorder %s2212_s20, %s2212_s20 }
  0x47   :  { %p2219_p4 = por %p2218_p3, %p2217_p2 }
  0x48   :  { %331 = vmatpush1.bf16.msra.mxu0 %v1938_v31  ;;  %404 = vmatpush1.bf16.msra.mxu1 %v1939_v32 }
  0x49   :  { %696 = vmatprep.subr.bf16.mxu0 %v2341_v33  ;;  %737 = vmatprep.subr.bf16.mxu1 %v2343_v34  ;;  %p2220_p5 = pnand %p2219_p4, %p2213_p1 }
  0x4b   :  { %349 = vmatmul.mubr.bf16.vlgmr.msra.gmra.mxu0 %v1940_v35  ;;  %422 = vmatmul.mubr.bf16.vlgmr.msra.gmra.mxu1 %v1940_v35 }
  0x4c   :  { %697 = vmatpush1.bf16.msra.mxu0 %v2345_v36  ;;  %738 = vmatpush1.bf16.msra.mxu1 %v2347_v37 }
  0x4d   :  { %698 = vmatprep.subr.bf16.mxu0 %v2351_v38  ;;  %739 = vmatprep.subr.bf16.mxu1 %v2353_v39 }
  0x4e   :  { %358 = vmatprep.mubr.bf16.mxu0 %v2894_v0  ;;  %431 = vmatprep.mubr.bf16.mxu1 %v2894_v0 }
  0x50   :  { %699 = vmatpush1.bf16.msra.mxu0 %v2355_v40  ;;  %740 = vmatpush1.bf16.msra.mxu1 %v2359_v41 }
  0x51   :  { %700 = vmatprep.subr.bf16.mxu0 %v2363_v42  ;;  %741 = vmatprep.subr.bf16.mxu1 %v2365_v43 }
  0x53   :  { %359 = vmatmul.mubr.bf16.gmra.mxu0 %v1953_v44  ;;  %432 = vmatmul.mubr.bf16.gmra.mxu1 %v1953_v44 }
  0x54   :  { %701 = vmatpush1.bf16.msra.mxu0 %v2369_v45  ;;  %742 = vmatpush1.bf16.msra.mxu1 %v2371_v46 }
  0x55   :  { %702 = vmatprep.subr.bf16.mxu0 %v2375_v47  ;;  %743 = vmatprep.subr.bf16.mxu1 %v2379_v48 }
  0x56   :  { %368 = vmatprep.mubr.bf16.mxu0 %v2894_v0  ;;  %441 = vmatprep.mubr.bf16.mxu1 %v2894_v0 }
  0x58   :  { %703 = vmatpush1.bf16.msra.mxu0 %v2381_v49  ;;  %744 = vmatpush1.bf16.msra.mxu1 %v2383_v50 }
  0x59   :  { %704 = vmatprep.subr.bf16.mxu0 %v2387_v51  ;;  %745 = vmatprep.subr.bf16.mxu1 %v2391_v52 }
  0x5b   :  { %369 = vmatmul.mubr.bf16.gmra.mxu0 %v1966_v53  ;;  %442 = vmatmul.mubr.bf16.gmra.mxu1 %v1966_v53 }
  0x5c   :  { %705 = vmatpush1.bf16.msra.mxu0 %v2397_v54  ;;  %746 = vmatpush1.bf16.msra.mxu1 %v2399_v55 }
  0x5d   :  { %706 = vmatprep.subr.bf16.mxu0 %v2403_v56  ;;  %747 = vmatprep.subr.bf16.mxu1 %v2405_v57 }
  0x5e   :  { %378 = vmatprep.mubr.bf16.mxu0 %v2894_v0  ;;  %451 = vmatprep.mubr.bf16.mxu1 %v2894_v0 }
  0x60   :  { %707 = vmatpush1.bf16.msra.mxu0 %v2409_v58  ;;  %748 = vmatpush1.bf16.msra.mxu1 %v2411_v59 }
  0x61   :  { %708 = vmatprep.subr.bf16.mxu0 %v2415_v60  ;;  %749 = vmatprep.subr.bf16.mxu1 %v2417_v61 }
  0x63   :  { %379 = vmatmul.mubr.bf16.gmra.mxu0 %v1979_v62  ;;  %452 = vmatmul.mubr.bf16.gmra.mxu1 %v1979_v62 }
  0x64   :  { %709 = vmatpush1.bf16.msra.mxu0 %v2423_v63  ;;  %750 = vmatpush1.bf16.msra.mxu1 %v2425_v1 }
  0x65   :  { %710 = vmatprep.subr.bf16.mxu0 %v2429_v2  ;;  %751 = vmatprep.subr.bf16.mxu1 %v2431_v3 }
  0x66   :  { %728 = vmatprep.mubr.bf16.mxu0 %v2894_v0  ;;  %769 = vmatprep.mubr.bf16.mxu1 %v2894_v0 }
  0x68   :  { %711 = vmatpush1.bf16.msra.mxu0 %v2435_v4  ;;  %752 = vmatpush1.bf16.msra.mxu1 %v2437_v5 }
  0x69   :  { %815 = vmatprep.subr.bf16.mxu0 %v2341_v33  ;;  %856 = vmatprep.subr.bf16.mxu1 %v2343_v34 }
  0x6b   :  { %729 = vmatmul.mubr.bf16.vlgmr.msra.gmra.mxu0 %v2288_v6  ;;  %770 = vmatmul.mubr.bf16.vlgmr.msra.gmra.mxu1 %v2288_v6 }
  0x6c   :  { %816 = vmatpush1.bf16.msra.mxu0 %v2345_v36  ;;  %857 = vmatpush1.bf16.msra.mxu1 %v2347_v37 }
  0x6d   :  { %817 = vmatprep.subr.bf16.mxu0 %v2351_v38  ;;  %858 = vmatprep.subr.bf16.mxu1 %v2353_v39 }
  0x6e   :  { %847 = vmatprep.mubr.bf16.mxu0 %v2894_v0  ;;  %888 = vmatprep.mubr.bf16.mxu1 %v2894_v0 }
  0x70   :  { %818 = vmatpush1.bf16.msra.mxu0 %v2355_v40  ;;  %859 = vmatpush1.bf16.msra.mxu1 %v2359_v41 }
  0x71   :  { %819 = vmatprep.subr.bf16.mxu0 %v2363_v42  ;;  %860 = vmatprep.subr.bf16.mxu1 %v2365_v43 }
  0x74   :  { %820 = vmatpush1.bf16.msra.mxu0 %v2369_v45  ;;  %861 = vmatpush1.bf16.msra.mxu1 %v2371_v46 }
  0x75   :  { %821 = vmatprep.subr.bf16.mxu0 %v2375_v47  ;;  %862 = vmatprep.subr.bf16.mxu1 %v2379_v48 }
  0x78   :  { %822 = vmatpush1.bf16.msra.mxu0 %v2381_v49  ;;  %863 = vmatpush1.bf16.msra.mxu1 %v2383_v50 }
  0x79   :  { %823 = vmatprep.subr.bf16.mxu0 %v2387_v51  ;;  %864 = vmatprep.subr.bf16.mxu1 %v2391_v52 }
  0x7c   :  { %824 = vmatpush1.bf16.msra.mxu0 %v2397_v54  ;;  %865 = vmatpush1.bf16.msra.mxu1 %v2399_v55 }
  0x7d   :  { %825 = vmatprep.subr.bf16.mxu0 %v2403_v56  ;;  %866 = vmatprep.subr.bf16.mxu1 %v2405_v57 }
  0x80   :  { %826 = vmatpush1.bf16.msra.mxu0 %v2409_v58  ;;  %867 = vmatpush1.bf16.msra.mxu1 %v2411_v59 }
  0x81   :  { %827 = vmatprep.subr.bf16.mxu0 %v2415_v60  ;;  %868 = vmatprep.subr.bf16.mxu1 %v2417_v61 }
  0x84   :  { %828 = vmatpush1.bf16.msra.mxu0 %v2423_v63  ;;  %869 = vmatpush1.bf16.msra.mxu1 %v2425_v1 }
  0x85   :  { %829 = vmatprep.subr.bf16.mxu0 %v2429_v2  ;;  %870 = vmatprep.subr.bf16.mxu1 %v2431_v3 }
  0x88   :  { %830 = vmatpush1.bf16.msra.mxu0 %v2435_v4  ;;  %871 = vmatpush1.bf16.msra.mxu1 %v2437_v5 }
  0x89   :  { %935 = vmatprep.subr.bf16.mxu0 %v2341_v33  ;;  %976 = vmatprep.subr.bf16.mxu1 %v2343_v34 }
 0x10b   :  { %v2484_v13 = vpop.f32.mrf.mxu0  ;;  %v2486_v14 = vpop.f32.mrf.mxu1 }
 0x10d   :  { %v2490_v17 = vpop.f32.mrf.mxu0  ;;  %v2492_v18 = vpop.f32.mrf.mxu1 }
 0x10f   :  { %v354_v21 = vpop.f32.mrf.mxu0  ;;  %v427_v22 = vpop.f32.mrf.mxu1 }
 0x110   :  { %v2496_v24 = vadd.f32 %v354_v21, %v115_v19  ;;  %v2499_v25 = vadd.f32 %v427_v22, %v2488_v15 }
 0x111   :  { %v356_v26 = vpop.f32.mrf.mxu0  ;;  %v429_v27 = vpop.f32.mrf.mxu1 }
 0x112   :  { %v2501_v28 = vadd.f32 %v356_v26, %v119_v23  ;;  %v2504_v29 = vadd.f32 %v429_v27, %v2494_v20 }
 0x113   :  { %v360_v30 = vpop.f32.mrf.mxu0  ;;  %v433_v31 = vpop.f32.mrf.mxu1 }
 0x114   :  { %v2506_v32 = vadd.f32 %v360_v30, %v115_v19  ;;  %v2509_v35 = vadd.f32 %v433_v31, %v2488_v15 }
 0x115   :  { %v362_v44 = vpop.f32.mrf.mxu0  ;;  %v435_v53 = vpop.f32.mrf.mxu1 }
 0x116   :  { %2896 = vst [vmem:[#allocation18_spill] sm:$0xff] %v2509_v35  ;;  %v2511_v62 = vadd.f32 %v362_v44, %v119_v23  ;;  %v2514_v6 = vadd.f32 %v435_v53, %v2494_v20 }
 0x117   :  { %v364_v7 = vpop.f32.mrf.mxu0  ;;  %v437_v8 = vpop.f32.mrf.mxu1 }
 0x118   :  { %v2516_v9 = vadd.f32 %v364_v7, %v115_v19  ;;  %v2519_v10 = vadd.f32 %v437_v8, %v2488_v15 }
 0x119   :  { %v366_v11 = vpop.f32.mrf.mxu0  ;;  %v439_v12 = vpop.f32.mrf.mxu1 }
 0x11a   :  { %2897 = vst [vmem:[#allocation19_spill] sm:$0xff] %v2516_v9  ;;  %2898 = vst [vmem:[#allocation20_spill] sm:$0xff] %v2519_v10  ;;  %v2521_v16 = vadd.f32 %v366_v11, %v119_v23  ;;  %v2524_v21 = vadd.f32 %v439_v12, %v2494_v20 }
 0x11b   :  { %v370_v22 = vpop.f32.mrf.mxu0  ;;  %v443_v26 = vpop.f32.mrf.mxu1 }
 0x11c   :  { %2899 = vst [vmem:[#allocation21_spill] sm:$0xff] %v2521_v16  ;;  %2900 = vst [vmem:[#allocation22_spill] sm:$0xff] %v2524_v21  ;;  %v2526_v27 = vadd.f32 %v370_v22, %v115_v19  ;;  %v2529_v30 = vadd.f32 %v443_v26, %v2488_v15 }
 0x11d   :  { %v372_v31 = vpop.f32.mrf.mxu0  ;;  %v445_v44 = vpop.f32.mrf.mxu1 }
 0x11e   :  { %2901 = vst [vmem:[#allocation23_spill] sm:$0xff] %v2526_v27  ;;  %2902 = vst [vmem:[#allocation24_spill] sm:$0xff] %v2529_v30  ;;  %v2531_v53 = vadd.f32 %v372_v31, %v119_v23  ;;  %v2534_v7 = vadd.f32 %v445_v44, %v2494_v20 }
 0x11f   :  { %v374_v8 = vpop.f32.mrf.mxu0  ;;  %v447_v11 = vpop.f32.mrf.mxu1 }
 0x120   :  { %2903 = vst [vmem:[#allocation25_spill] sm:$0xff] %v2531_v53  ;;  %2904 = vst [vmem:[#allocation26_spill] sm:$0xff] %v2534_v7  ;;  %v2536_v0 = vadd.f32 %v374_v8, %v115_v19  ;;  %v2539_v12 = vadd.f32 %v447_v11, %v2488_v15 }
 0x121   :  { %v376_v10 = vpop.f32.mrf.mxu0  ;;  %v449_v22 = vpop.f32.mrf.mxu1 }
 0x122   :  { %2905 = vst [vmem:[#allocation27_spill] sm:$0xff] %v2536_v0  ;;  %2906 = vst [vmem:[#allocation28_spill] sm:$0xff] %v2539_v12  ;;  %v2541_v27 = vadd.f32 %v376_v10, %v119_v23  ;;  %v2544_v26 = vadd.f32 %v449_v22, %v2494_v20 }
 0x123   :  { %v380_v30 = vpop.f32.mrf.mxu0  ;;  %v453_v31 = vpop.f32.mrf.mxu1 }
 0x124   :  { %2907 = vst [vmem:[#allocation29_spill] sm:$0xff] %v2541_v27  ;;  %2908 = vst [vmem:[#allocation30_spill] sm:$0xff] %v2544_v26  ;;  %v2546_v53 = vadd.f32 %v380_v30, %v115_v19  ;;  %v2549_v44 = vadd.f32 %v453_v31, %v2488_v15 }
 0x125   :  { %v382_v7 = vpop.f32.mrf.mxu0  ;;  %v455_v8 = vpop.f32.mrf.mxu1 }
 0x126   :  { %2909 = vst [vmem:[#allocation31_spill] sm:$0xff] %v2546_v53  ;;  %2910 = vst [vmem:[#allocation32_spill] sm:$0xff] %v2549_v44  ;;  %v2551_v0 = vadd.f32 %v382_v7, %v119_v23  ;;  %v2554_v11 = vadd.f32 %v455_v8, %v2494_v20  ;;  %v351_v53 = vadd.f32 %v2484_v13, %v115_v19 }
 0x127   :  { %v384_v12 = vpop.f32.mrf.mxu0  ;;  %v457_v10 = vpop.f32.mrf.mxu1  ;;  %v353_v8 = vadd.f32 %v2490_v17, %v119_v23 }
 0x128   :  { %2911 = vst [vmem:[#allocation33_spill] sm:$0xff] %v2551_v0  ;;  %2912 = vst [vmem:[#allocation34_spill] sm:$0xff] %v2554_v11  ;;  %v2556_v27 = vadd.f32 %v384_v12, %v115_v19  ;;  %v2559_v22 = vadd.f32 %v457_v10, %v2488_v15  ;;  %v426_v19 = vadd.f32 %v2492_v18, %v2494_v20 }
 0x129   :  { %v386_v26 = vpop.f32.mrf.mxu0  ;;  %v459_v30 = vpop.f32.mrf.mxu1 }
 0x12a   :  { %2913 = vst [vmem:[#allocation35_spill] sm:$0xff] %v2556_v27  ;;  %2914 = vst [vmem:[#allocation36_spill] sm:$0xff] %v2559_v22  ;;  %v2562_v31 = vadd.f32 %v386_v26, %v119_v23  ;;  %v2565_v44 = vadd.f32 %v459_v30, %v2494_v20  ;;  %v424_v30 = vadd.f32 %v2486_v14, %v2488_v15 }
 0x12b   :  { %v730_v7 = vpop.f32.mrf.mxu0  ;;  %v771_v0 = vpop.f32.mrf.mxu1 }
 0x12c   :  { %v778_v11 = vadd.f32 %v730_v7, %v351_v53  ;;  %v780_v53 = vadd.f32 %v771_v0, %v424_v30 }
 0x12d   :  { %v732_v21 = vpop.f32.mrf.mxu0  ;;  %v773_v12 = vpop.f32.mrf.mxu1 }
 0x12e   :  { %v1817_v27 = vmul.f32 -1.442695, %v778_v11  ;;  %v779_v16 = vadd.f32 %v732_v21, %v353_v8  ;;  %v781_v26 = vadd.f32 %v773_v12, %v426_v19 }
 0x12f   :  { %v734_v10 = vpop.f32.mrf.mxu0  ;;  %v775_v22 = vpop.f32.mrf.mxu1 }
 0x130   :  { %1992 = vpow2.f32 %v1817_v27  ;;  %v1818_v9 = vmul.f32 -1.442695, %v779_v16  ;;  %v1819_v17 = vmul.f32 -1.442695, %v781_v26  ;;  %v2915_v10 = vmov 0  }
 0x131   :  { %v735_v35 = vpop.f32.mrf.mxu0  ;;  %v776_v13 = vpop.f32.mrf.mxu1 }
 0x132   :  { %1994 = vpow2.f32 %v1818_v9 }
 0x133   :  { %1996 = vpow2.f32 %v1819_v17 }
 0x13d   :  { %v1993_v23 = vpop.eup %1992 }
 0x13e   :  { %v785_v7 = vadd.f32 1.0, %v1993_v23 }
 0x13f   :  { %v1995_v11 = vpop.eup %1994 }
 0x140   :  { %1998 = vrcp.f32 %v785_v7  ;;  %v791_v21 = vadd.f32 1.0, %v1995_v11  ;;  %v1997_v35 = vpop.eup %1996 }
 0x141   :  { %2000 = vtanh.f32 %v780_v53  ;;  %v798_v22 = vadd.f32 1.0, %v1997_v35 }
 0x142   :  { %2002 = vrcp.f32 %v791_v21 }
 0x143   :  { %2004 = vrcp.f32 %v798_v22 }
 0x14d   :  { %v1999_v16 = vpop.eup %1998 }
 0x14e   :  { %v2001_v9 = vpop.eup %2000 }
 0x14f   :  { %v2003_v27 = vpop.eup %2002  ;;  %v802_v18 = vmul.f32 %v2001_v9, %v1999_v16 }
 0x150   :  { %v801_v20 = vmul.f32 0.0, %v2003_v27  ;;  %v2005_v0 = vpop.eup %2004 }
 0x152   :  { %v2572_v8 = vadd.f32 %v802_v18, %v801_v20 }
 0x154   :  { %2006 = vtanh.f32 %v2572_v8 }
 0x161   :  { %v2007_v14 = vpop.eup %2006 }
 0x162   :  { %v2575_v15 = vmul.f32 %v2007_v14, %v2005_v0 }
 0x164   :  { %v814_v12 = vpack.c.bf16 %v2575_v15, %v2575_v15 }
 0x166   :  { %848 = vmatmul.mubr.bf16.vlgmr.msra.gmra.mxu0 %v814_v12  ;;  %889 = vmatmul.mubr.bf16.vlgmr.msra.gmra.mxu1 %v814_v12 }
 0x167   :  { %936 = vmatpush1.bf16.msra.mxu0 %v2345_v36  ;;  %977 = vmatpush1.bf16.msra.mxu1 %v2347_v37 }
 0x168   :  { %937 = vmatprep.subr.bf16.mxu0 %v2351_v38  ;;  %978 = vmatprep.subr.bf16.mxu1 %v2353_v39 }
 0x169   :  { %967 = vmatprep.mubr.bf16.mxu0 %v2915_v10  ;;  %1008 = vmatprep.mubr.bf16.mxu1 %v2915_v10 }
 0x16b   :  { %938 = vmatpush1.bf16.msra.mxu0 %v2355_v40  ;;  %979 = vmatpush1.bf16.msra.mxu1 %v2359_v41 }
 0x16c   :  { %939 = vmatprep.subr.bf16.mxu0 %v2363_v42  ;;  %980 = vmatprep.subr.bf16.mxu1 %v2365_v43 }
 0x16f   :  { %940 = vmatpush1.bf16.msra.mxu0 %v2369_v45  ;;  %981 = vmatpush1.bf16.msra.mxu1 %v2371_v46 }
 0x170   :  { %941 = vmatprep.subr.bf16.mxu0 %v2375_v47  ;;  %982 = vmatprep.subr.bf16.mxu1 %v2379_v48 }
 0x173   :  { %942 = vmatpush1.bf16.msra.mxu0 %v2381_v49  ;;  %983 = vmatpush1.bf16.msra.mxu1 %v2383_v50 }
 0x174   :  { %943 = vmatprep.subr.bf16.mxu0 %v2387_v51  ;;  %984 = vmatprep.subr.bf16.mxu1 %v2391_v52 }
 0x177   :  { %944 = vmatpush1.bf16.msra.mxu0 %v2397_v54  ;;  %985 = vmatpush1.bf16.msra.mxu1 %v2399_v55 }
 0x178   :  { %945 = vmatprep.subr.bf16.mxu0 %v2403_v56  ;;  %986 = vmatprep.subr.bf16.mxu1 %v2405_v57 }
 0x17b   :  { %946 = vmatpush1.bf16.msra.mxu0 %v2409_v58  ;;  %987 = vmatpush1.bf16.msra.mxu1 %v2411_v59 }
 0x17c   :  { %947 = vmatprep.subr.bf16.mxu0 %v2415_v60  ;;  %988 = vmatprep.subr.bf16.mxu1 %v2417_v61 }
 0x17f   :  { %948 = vmatpush1.bf16.msra.mxu0 %v2423_v63  ;;  %989 = vmatpush1.bf16.msra.mxu1 %v2425_v1 }
 0x180   :  { %949 = vmatprep.subr.bf16.mxu0 %v2429_v2  ;;  %990 = vmatprep.subr.bf16.mxu1 %v2431_v3 }
 0x183   :  { %950 = vmatpush1.bf16.msra.mxu0 %v2435_v4  ;;  %991 = vmatpush1.bf16.msra.mxu1 %v2437_v5 }
 0x184   :  { %1055 = vmatprep.subr.bf16.mxu0 %v2341_v33  ;;  %1096 = vmatprep.subr.bf16.mxu1 %v2343_v34 }
 0x226   :  { %v849_v13 = vpop.f32.mrf.mxu0  ;;  %v890_v19 = vpop.f32.mrf.mxu1 }
 0x227   :  { %v897_v26 = vadd.f32 %v849_v13, %v2496_v24  ;;  %v899_v27 = vadd.f32 %v890_v19, %v2499_v25 }
 0x228   :  { %v851_v30 = vpop.f32.mrf.mxu0  ;;  %v892_v17 = vpop.f32.mrf.mxu1 }
 0x229   :  { %v1820_v23 = vmul.f32 -1.442695, %v897_v26  ;;  %v898_v53 = vadd.f32 %v851_v30, %v2501_v28  ;;  %v900_v9 = vadd.f32 %v892_v17, %v2504_v29 }
 0x22a   :  { %v853_v7 = vpop.f32.mrf.mxu0  ;;  %v894_v11 = vpop.f32.mrf.mxu1 }
 0x22b   :  { %2008 = vpow2.f32 %v1820_v23  ;;  %v1821_v21 = vmul.f32 -1.442695, %v898_v53  ;;  %v1822_v22 = vmul.f32 -1.442695, %v900_v9 }
 0x22c   :  { %v854_v35 = vpop.f32.mrf.mxu0  ;;  %v895_v16 = vpop.f32.mrf.mxu1 }
 0x22d   :  { %2010 = vpow2.f32 %v1821_v21 }
 0x22e   :  { %2012 = vtanh.f32 %v899_v27 }
 0x22f   :  { %2014 = vpow2.f32 %v1822_v22 }
 0x238   :  { %v2009_v18 = vpop.eup %2008 }
 0x239   :  { %v904_v20 = vadd.f32 1.0, %v2009_v18 }
 0x23a   :  { %v2011_v24 = vpop.eup %2010 }
 0x23b   :  { %2016 = vrcp.f32 %v904_v20  ;;  %v910_v0 = vadd.f32 1.0, %v2011_v24  ;;  %v2013_v28 = vpop.eup %2012 }
 0x23c   :  { %v2015_v14 = vpop.eup %2014 }
 0x23d   :  { %2018 = vrcp.f32 %v910_v0  ;;  %v917_v30 = vadd.f32 1.0, %v2015_v14 }
 0x23f   :  { %2020 = vrcp.f32 %v917_v30 }
 0x248   :  { %v2017_v12 = vpop.eup %2016 }
 0x249   :  { %v921_v13 = vmul.f32 %v2017_v12, %v2013_v28  ;;  %v2916_v28 = vld [vmem:[#allocation18_spill] sm:$0xff] }
 0x24a   :  { %v2019_v26 = vpop.eup %2018 }
 0x24b   :  { %v920_v23 = vmul.f32 %v2019_v26, %v2572_v8 }
 0x24c   :  { %v2021_v25 = vpop.eup %2020 }
 0x24d   :  { %v2618_v29 = vadd.f32 %v921_v13, %v920_v23 }
 0x24f   :  { %2022 = vtanh.f32 %v2618_v29 }
 0x25c   :  { %v2023_v19 = vpop.eup %2022 }
 0x25d   :  { %v924_v17 = vmul.f32 %v2023_v19, %v2021_v25 }
 0x25f   :  { %v934_v53 = vpack.c.bf16 %v924_v17, %v924_v17  ;;  %v1860_v7 = vpack.c.bf16 %v924_v17, %v2575_v15 }
 0x261   :  { %968 = vmatmul.mubr.bf16.vlgmr.msra.gmra.mxu0 %v934_v53  ;;  %1009 = vmatmul.mubr.bf16.vlgmr.msra.gmra.mxu1 %v934_v53  ;;  %1861 = vst [vmem:[#allocation10] sm:$0xff] %v1860_v7  }
 0x262   :  { %1056 = vmatpush1.bf16.msra.mxu0 %v2345_v36  ;;  %1097 = vmatpush1.bf16.msra.mxu1 %v2347_v37 }
 0x263   :  { %1057 = vmatprep.subr.bf16.mxu0 %v2351_v38  ;;  %1098 = vmatprep.subr.bf16.mxu1 %v2353_v39 }
 0x264   :  { %1087 = vmatprep.mubr.bf16.mxu0 %v2915_v10  ;;  %1128 = vmatprep.mubr.bf16.mxu1 %v2915_v10 }
 0x266   :  { %1058 = vmatpush1.bf16.msra.mxu0 %v2355_v40  ;;  %1099 = vmatpush1.bf16.msra.mxu1 %v2359_v41 }
 0x267   :  { %1059 = vmatprep.subr.bf16.mxu0 %v2363_v42  ;;  %1100 = vmatprep.subr.bf16.mxu1 %v2365_v43 }
 0x26a   :  { %1060 = vmatpush1.bf16.msra.mxu0 %v2369_v45  ;;  %1101 = vmatpush1.bf16.msra.mxu1 %v2371_v46 }
 0x26b   :  { %1061 = vmatprep.subr.bf16.mxu0 %v2375_v47  ;;  %1102 = vmatprep.subr.bf16.mxu1 %v2379_v48 }
 0x26e   :  { %1062 = vmatpush1.bf16.msra.mxu0 %v2381_v49  ;;  %1103 = vmatpush1.bf16.msra.mxu1 %v2383_v50 }
 0x26f   :  { %1063 = vmatprep.subr.bf16.mxu0 %v2387_v51  ;;  %1104 = vmatprep.subr.bf16.mxu1 %v2391_v52 }
 0x272   :  { %1064 = vmatpush1.bf16.msra.mxu0 %v2397_v54  ;;  %1105 = vmatpush1.bf16.msra.mxu1 %v2399_v55 }
 0x273   :  { %1065 = vmatprep.subr.bf16.mxu0 %v2403_v56  ;;  %1106 = vmatprep.subr.bf16.mxu1 %v2405_v57 }
 0x276   :  { %1066 = vmatpush1.bf16.msra.mxu0 %v2409_v58  ;;  %1107 = vmatpush1.bf16.msra.mxu1 %v2411_v59 }
 0x277   :  { %1067 = vmatprep.subr.bf16.mxu0 %v2415_v60  ;;  %1108 = vmatprep.subr.bf16.mxu1 %v2417_v61 }
 0x27a   :  { %1068 = vmatpush1.bf16.msra.mxu0 %v2423_v63  ;;  %1109 = vmatpush1.bf16.msra.mxu1 %v2425_v1 }
 0x27b   :  { %1069 = vmatprep.subr.bf16.mxu0 %v2429_v2  ;;  %1110 = vmatprep.subr.bf16.mxu1 %v2431_v3 }
 0x27e   :  { %1070 = vmatpush1.bf16.msra.mxu0 %v2435_v4  ;;  %1111 = vmatpush1.bf16.msra.mxu1 %v2437_v5 }
 0x27f   :  { %1175 = vmatprep.subr.bf16.mxu0 %v2341_v33  ;;  %1216 = vmatprep.subr.bf16.mxu1 %v2343_v34 }
 0x321   :  { %v969_v8 = vpop.f32.mrf.mxu0  ;;  %v1010_v15 = vpop.f32.mrf.mxu1 }
 0x322   :  { %v1017_v11 = vadd.f32 %v969_v8, %v2506_v32  ;;  %v1019_v14 = vadd.f32 %v1010_v15, %v2916_v28 }
 0x323   :  { %v971_v21 = vpop.f32.mrf.mxu0  ;;  %v1012_v35 = vpop.f32.mrf.mxu1 }
 0x324   :  { %v1823_v16 = vmul.f32 -1.442695, %v1017_v11  ;;  %v1018_v9 = vadd.f32 %v971_v21, %v2511_v62  ;;  %v1020_v0 = vadd.f32 %v1012_v35, %v2514_v6 }
 0x325   :  { %v973_v27 = vpop.f32.mrf.mxu0  ;;  %v1014_v22 = vpop.f32.mrf.mxu1 }
 0x326   :  { %2024 = vpow2.f32 %v1823_v16  ;;  %v1824_v18 = vmul.f32 -1.442695, %v1018_v9  ;;  %v1825_v12 = vmul.f32 -1.442695, %v1020_v0  ;;  %v2917_v16 = vld [vmem:[#allocation19_spill] sm:$0xff] }
 0x327   :  { %v974_v20 = vpop.f32.mrf.mxu0  ;;  %v1015_v24 = vpop.f32.mrf.mxu1 }
 0x328   :  { %2026 = vpow2.f32 %v1824_v18  ;;  %v2918_v20 = vld [vmem:[#allocation21_spill] sm:$0xff] }
 0x329   :  { %2028 = vtanh.f32 %v1019_v14 }
 0x32a   :  { %2030 = vpow2.f32 %v1825_v12 }
 0x333   :  { %v2025_v13 = vpop.eup %2024 }
 0x334   :  { %v1024_v26 = vadd.f32 1.0, %v2025_v13 }
 0x335   :  { %v2027_v32 = vpop.eup %2026 }
 0x336   :  { %2032 = vrcp.f32 %v1024_v26  ;;  %v1030_v30 = vadd.f32 1.0, %v2027_v32  ;;  %v2029_v62 = vpop.eup %2028  ;;  %v2919_v26 = vld [vmem:[#allocation22_spill] sm:$0xff]  ;;  %v2920_v32 = vld [vmem:[#allocation20_spill] sm:$0xff] }
 0x337   :  { %v2031_v23 = vpop.eup %2030 }
 0x338   :  { %2034 = vrcp.f32 %v1030_v30  ;;  %v1037_v53 = vadd.f32 1.0, %v2031_v23 }
 0x33a   :  { %2036 = vrcp.f32 %v1037_v53 }
 0x343   :  { %v2033_v25 = vpop.eup %2032 }
 0x344   :  { %v1041_v19 = vmul.f32 %v2033_v25, %v2029_v62 }
 0x345   :  { %v2035_v17 = vpop.eup %2034 }
 0x346   :  { %v1040_v7 = vmul.f32 %v2035_v17, %v2618_v29 }
 0x347   :  { %v2037_v8 = vpop.eup %2036 }
 0x348   :  { %v2661_v6 = vadd.f32 %v1041_v19, %v1040_v7 }
 0x34a   :  { %2038 = vtanh.f32 %v2661_v6 }
 0x357   :  { %v2039_v15 = vpop.eup %2038 }
 0x358   :  { %v2664_v11 = vmul.f32 %v2039_v15, %v2037_v8 }
 0x35a   :  { %v1054_v21 = vpack.c.bf16 %v2664_v11, %v2664_v11 }
 0x35c   :  { %1088 = vmatmul.mubr.bf16.vlgmr.msra.gmra.mxu0 %v1054_v21  ;;  %1129 = vmatmul.mubr.bf16.vlgmr.msra.gmra.mxu1 %v1054_v21 }
 0x35d   :  { %1176 = vmatpush1.bf16.msra.mxu0 %v2345_v36  ;;  %1217 = vmatpush1.bf16.msra.mxu1 %v2347_v37 }
 0x35e   :  { %1177 = vmatprep.subr.bf16.mxu0 %v2351_v38  ;;  %1218 = vmatprep.subr.bf16.mxu1 %v2353_v39 }
 0x35f   :  { %1207 = vmatprep.mubr.bf16.mxu0 %v2915_v10  ;;  %1248 = vmatprep.mubr.bf16.mxu1 %v2915_v10 }
 0x361   :  { %1178 = vmatpush1.bf16.msra.mxu0 %v2355_v40  ;;  %1219 = vmatpush1.bf16.msra.mxu1 %v2359_v41 }
 0x362   :  { %1179 = vmatprep.subr.bf16.mxu0 %v2363_v42  ;;  %1220 = vmatprep.subr.bf16.mxu1 %v2365_v43 }
 0x365   :  { %1180 = vmatpush1.bf16.msra.mxu0 %v2369_v45  ;;  %1221 = vmatpush1.bf16.msra.mxu1 %v2371_v46 }
 0x366   :  { %1181 = vmatprep.subr.bf16.mxu0 %v2375_v47  ;;  %1222 = vmatprep.subr.bf16.mxu1 %v2379_v48 }
 0x369   :  { %1182 = vmatpush1.bf16.msra.mxu0 %v2381_v49  ;;  %1223 = vmatpush1.bf16.msra.mxu1 %v2383_v50 }
 0x36a   :  { %1183 = vmatprep.subr.bf16.mxu0 %v2387_v51  ;;  %1224 = vmatprep.subr.bf16.mxu1 %v2391_v52 }
 0x36d   :  { %1184 = vmatpush1.bf16.msra.mxu0 %v2397_v54  ;;  %1225 = vmatpush1.bf16.msra.mxu1 %v2399_v55 }
 0x36e   :  { %1185 = vmatprep.subr.bf16.mxu0 %v2403_v56  ;;  %1226 = vmatprep.subr.bf16.mxu1 %v2405_v57 }
 0x371   :  { %1186 = vmatpush1.bf16.msra.mxu0 %v2409_v58  ;;  %1227 = vmatpush1.bf16.msra.mxu1 %v2411_v59 }
 0x372   :  { %1187 = vmatprep.subr.bf16.mxu0 %v2415_v60  ;;  %1228 = vmatprep.subr.bf16.mxu1 %v2417_v61 }
 0x375   :  { %1188 = vmatpush1.bf16.msra.mxu0 %v2423_v63  ;;  %1229 = vmatpush1.bf16.msra.mxu1 %v2425_v1 }
 0x376   :  { %1189 = vmatprep.subr.bf16.mxu0 %v2429_v2  ;;  %1230 = vmatprep.subr.bf16.mxu1 %v2431_v3 }
 0x379   :  { %1190 = vmatpush1.bf16.msra.mxu0 %v2435_v4  ;;  %1231 = vmatpush1.bf16.msra.mxu1 %v2437_v5 }
 0x37a   :  { %1295 = vmatprep.subr.bf16.mxu0 %v2341_v33  ;;  %1336 = vmatprep.subr.bf16.mxu1 %v2343_v34 }
 0x41c   :  { %v1089_v29 = vpop.f32.mrf.mxu0  ;;  %v1130_v35 = vpop.f32.mrf.mxu1 }
 0x41d   :  { %v1137_v9 = vadd.f32 %v1089_v29, %v2917_v16  ;;  %v1139_v34 = vadd.f32 %v1130_v35, %v2920_v32 }
 0x41e   :  { %v1091_v27 = vpop.f32.mrf.mxu0  ;;  %v1132_v22 = vpop.f32.mrf.mxu1 }
 0x41f   :  { %v1826_v18 = vmul.f32 -1.442695, %v1137_v9  ;;  %v1138_v24 = vadd.f32 %v1091_v27, %v2918_v20  ;;  %v1140_v33 = vadd.f32 %v1132_v22, %v2919_v26 }
 0x420   :  { %v1093_v0 = vpop.f32.mrf.mxu0  ;;  %v1134_v28 = vpop.f32.mrf.mxu1 }
 0x421   :  { %2040 = vpow2.f32 %v1826_v18  ;;  %v1827_v14 = vmul.f32 -1.442695, %v1138_v24  ;;  %v1828_v30 = vmul.f32 -1.442695, %v1140_v33 }
 0x422   :  { %v1094_v12 = vpop.f32.mrf.mxu0  ;;  %v1135_v13 = vpop.f32.mrf.mxu1 }
 0x423   :  { %2042 = vpow2.f32 %v1827_v14 }
 0x424   :  { %2044 = vtanh.f32 %v1139_v34 }
 0x425   :  { %2046 = vpow2.f32 %v1828_v30 }
 0x42e   :  { %v2041_v62 = vpop.eup %2040 }
 0x42f   :  { %v1144_v23 = vadd.f32 1.0, %v2041_v62 }
 0x430   :  { %v2043_v25 = vpop.eup %2042 }
 0x431   :  { %2048 = vrcp.f32 %v1144_v23  ;;  %v1150_v19 = vadd.f32 1.0, %v2043_v25  ;;  %v2045_v17 = vpop.eup %2044 }
 0x432   :  { %v2047_v53 = vpop.eup %2046 }
 0x433   :  { %2050 = vrcp.f32 %v1150_v19  ;;  %v1157_v21 = vadd.f32 1.0, %v2047_v53  ;;  %v2761_v19 = vld [vmem:[#allocation9 + $0xe0] ss:$16 sps:$4 sm:$0xff]   ;;  %v2767_v53 = vld [vmem:[#allocation9 + $0xc4] ss:$16 sps:$4 sm:$0xff]  }
 0x435   :  { %2052 = vrcp.f32 %v1157_v21  ;;  %v2781_v21 = vld [vmem:[#allocation9 + $0xa4] ss:$16 sps:$4 sm:$0xff]  }
 0x43e   :  { %v2049_v7 = vpop.eup %2048 }
 0x43f   :  { %v1161_v8 = vmul.f32 %v2049_v7, %v2045_v17  ;;  %v2764_v17 = vld [vmem:[#allocation9 + $0xe8] ss:$16 sps:$4 sm:$0xff]   ;;  %v2770_v7 = vld [vmem:[#allocation9 + $0xcc] ss:$16 sps:$4 sm:$0xff]  }
 0x440   :  { %v2051_v15 = vpop.eup %2050 }
 0x441   :  { %v1160_v29 = vmul.f32 %v2051_v15, %v2661_v6  ;;  %v2778_v15 = vld [vmem:[#allocation9 + $0xc8] ss:$16 sps:$4 sm:$0xff]  }
 0x442   :  { %v2053_v35 = vpop.eup %2052 }
 0x443   :  { %v2707_v16 = vadd.f32 %v1161_v8, %v1160_v29  ;;  %v2775_v8 = vld [vmem:[#allocation9 + $0xc0] ss:$16 sps:$4 sm:$0xff]   ;;  %v2784_v29 = vld [vmem:[#allocation9 + $0xac] ss:$16 sps:$4 sm:$0xff]  }
 0x445   :  { %2054 = vtanh.f32 %v2707_v16 }
 0x452   :  { %v2055_v9 = vpop.eup %2054 }
 0x453   :  { %v1164_v27 = vmul.f32 %v2055_v9, %v2053_v35  ;;  %v2790_v35 = vld [vmem:[#allocation9 + $0xa8] ss:$16 sps:$4 sm:$0xff]   ;;  %v2793_v9 = vld [vmem:[#allocation9 + $0x84] ss:$16 sps:$4 sm:$0xff]  }
 0x455   :  { %v1174_v22 = vpack.c.bf16 %v1164_v27, %v1164_v27  ;;  %v1865_v18 = vpack.c.bf16 %v1164_v27, %v2664_v11  ;;  %v2796_v27 = vld [vmem:[#allocation9 + $0x8c] ss:$16 sps:$4 sm:$0xff]  }
 0x457   :  { %1208 = vmatmul.mubr.bf16.vlgmr.msra.gmra.mxu0 %v1174_v22  ;;  %1249 = vmatmul.mubr.bf16.vlgmr.msra.gmra.mxu1 %v1174_v22  ;;  %1877 = vst [vmem:[#allocation10 + $0x8] sm:$0xff] %v1865_v18   ;;  %v2799_v22 = vld [vmem:[#allocation9 + $0x80] ss:$16 sps:$4 sm:$0xff]   ;;  %v2802_v18 = vld [vmem:[#allocation9 + $0x88] ss:$16 sps:$4 sm:$0xff]  }
 0x458   :  { %1296 = vmatpush1.bf16.msra.mxu0 %v2345_v36  ;;  %1337 = vmatpush1.bf16.msra.mxu1 %v2347_v37  ;;  %v2743_v36 = vld [vmem:[#allocation9 + $0xe4] ss:$16 sps:$4 sm:$0xff]   ;;  %v2746_v37 = vld [vmem:[#allocation9 + $0xec] ss:$16 sps:$4 sm:$0xff]  }
 0x459   :  { %1297 = vmatprep.subr.bf16.mxu0 %v2351_v38  ;;  %1338 = vmatprep.subr.bf16.mxu1 %v2353_v39 }
 0x45a   :  { %1327 = vmatprep.mubr.bf16.mxu0 %v2915_v10  ;;  %1368 = vmatprep.mubr.bf16.mxu1 %v2915_v10 }
 0x45c   :  { %1298 = vmatpush1.bf16.msra.mxu0 %v2355_v40  ;;  %1339 = vmatpush1.bf16.msra.mxu1 %v2359_v41  ;;  %v2921_v40 = vld [vmem:[#allocation23_spill] sm:$0xff] }
 0x45d   :  { %1299 = vmatprep.subr.bf16.mxu0 %v2363_v42  ;;  %1340 = vmatprep.subr.bf16.mxu1 %v2365_v43 }
 0x460   :  { %1300 = vmatpush1.bf16.msra.mxu0 %v2369_v45  ;;  %1341 = vmatpush1.bf16.msra.mxu1 %v2371_v46  ;;  %v2922_v46 = vld [vmem:[#allocation25_spill] sm:$0xff] }
 0x461   :  { %1301 = vmatprep.subr.bf16.mxu0 %v2375_v47  ;;  %1342 = vmatprep.subr.bf16.mxu1 %v2379_v48 }
 0x464   :  { %1302 = vmatpush1.bf16.msra.mxu0 %v2381_v49  ;;  %1343 = vmatpush1.bf16.msra.mxu1 %v2383_v50 }
 0x465   :  { %1303 = vmatprep.subr.bf16.mxu0 %v2387_v51  ;;  %1344 = vmatprep.subr.bf16.mxu1 %v2391_v52 }
 0x468   :  { %1304 = vmatpush1.bf16.msra.mxu0 %v2397_v54  ;;  %1345 = vmatpush1.bf16.msra.mxu1 %v2399_v55  ;;  %v2923_v54 = vld [vmem:[#allocation26_spill] sm:$0xff] }
 0x469   :  { %1305 = vmatprep.subr.bf16.mxu0 %v2403_v56  ;;  %1346 = vmatprep.subr.bf16.mxu1 %v2405_v57  ;;  %v2924_v56 = vld [vmem:[#allocation24_spill] sm:$0xff] }
 0x46c   :  { %1306 = vmatpush1.bf16.msra.mxu0 %v2409_v58  ;;  %1347 = vmatpush1.bf16.msra.mxu1 %v2411_v59 }
 0x46d   :  { %1307 = vmatprep.subr.bf16.mxu0 %v2415_v60  ;;  %1348 = vmatprep.subr.bf16.mxu1 %v2417_v61 }
 0x470   :  { %1308 = vmatpush1.bf16.msra.mxu0 %v2423_v63  ;;  %1349 = vmatpush1.bf16.msra.mxu1 %v2425_v1 }
 0x471   :  { %1309 = vmatprep.subr.bf16.mxu0 %v2429_v2  ;;  %1350 = vmatprep.subr.bf16.mxu1 %v2431_v3 }
 0x474   :  { %1310 = vmatpush1.bf16.msra.mxu0 %v2435_v4  ;;  %1351 = vmatpush1.bf16.msra.mxu1 %v2437_v5 }
 0x475   :  { %1415 = vmatprep.subr.bf16.mxu0 %v2743_v36  ;;  %1456 = vmatprep.subr.bf16.mxu1 %v2746_v37 }
 0x517   :  { %v1209_v38 = vpop.f32.mrf.mxu0  ;;  %v1250_v39 = vpop.f32.mrf.mxu1 }
 0x518   :  { %v1257_v41 = vadd.f32 %v1209_v38, %v2921_v40  ;;  %v1259_v57 = vadd.f32 %v1250_v39, %v2924_v56  ;;  %v2805_v38 = vld [vmem:[#allocation9 + $0x64] ss:$16 sps:$4 sm:$0xff]   ;;  %v2808_v39 = vld [vmem:[#allocation9 + $0x6c] ss:$16 sps:$4 sm:$0xff]   ;;  %v2811_v40 = vld [vmem:[#allocation9 + $0x60] ss:$16 sps:$4 sm:$0xff]  }
 0x519   :  { %v1211_v42 = vpop.f32.mrf.mxu0  ;;  %v1252_v43 = vpop.f32.mrf.mxu1 }
 0x51a   :  { %v1829_v45 = vmul.f32 -1.442695, %v1257_v41  ;;  %v1258_v47 = vadd.f32 %v1211_v42, %v2922_v46  ;;  %v1260_v55 = vadd.f32 %v1252_v43, %v2923_v54  ;;  %v2814_v41 = vld [vmem:[#allocation9 + $0x68] ss:$16 sps:$4 sm:$0xff]   ;;  %v2817_v42 = vld [vmem:[#allocation9 + $0x44] ss:$16 sps:$4 sm:$0xff]  }
 0x51b   :  { %v1213_v48 = vpop.f32.mrf.mxu0  ;;  %v1254_v49 = vpop.f32.mrf.mxu1  ;;  %v2820_v43 = vld [vmem:[#allocation9 + $0x4c] ss:$16 sps:$4 sm:$0xff]  }
 0x51c   :  { %2056 = vpow2.f32 %v1829_v45  ;;  %v1830_v50 = vmul.f32 -1.442695, %v1258_v47  ;;  %v1831_v6 = vmul.f32 -1.442695, %v1260_v55 }
 0x51d   :  { %v1214_v51 = vpop.f32.mrf.mxu0  ;;  %v1255_v52 = vpop.f32.mrf.mxu1 }
 0x51e   :  { %2058 = vpow2.f32 %v1830_v50  ;;  %v2928_v50 = vld [vmem:[#allocation28_spill] sm:$0xff] }
 0x51f   :  { %2060 = vtanh.f32 %v1259_v57 }
 0x520   :  { %2062 = vpow2.f32 %v1831_v6 }
 0x529   :  { %v2057_v11 = vpop.eup %2056 }
 0x52a   :  { %v1264_v20 = vadd.f32 1.0, %v2057_v11 }
 0x52b   :  { %v2059_v24 = vpop.eup %2058 }
 0x52c   :  { %2064 = vrcp.f32 %v1264_v20  ;;  %v1270_v0 = vadd.f32 1.0, %v2059_v24  ;;  %v2061_v28 = vpop.eup %2060 }
 0x52d   :  { %v2063_v14 = vpop.eup %2062 }
 0x52e   :  { %2066 = vrcp.f32 %v1270_v0  ;;  %v1277_v33 = vadd.f32 1.0, %v2063_v14 }
 0x530   :  { %2068 = vrcp.f32 %v1277_v33 }
 0x539   :  { %v2065_v12 = vpop.eup %2064 }
 0x53a   :  { %v1281_v13 = vmul.f32 %v2065_v12, %v2061_v28 }
 0x53b   :  { %v2067_v26 = vpop.eup %2066 }
 0x53c   :  { %v1280_v32 = vmul.f32 %v2067_v26, %v2707_v16  ;;  %v2787_v16 = vld [vmem:[#allocation9 + $0xa0] ss:$16 sps:$4 sm:$0xff]  }
 0x53d   :  { %v2069_v30 = vpop.eup %2068 }
 0x53e   :  { %v2754_v34 = vadd.f32 %v1281_v13, %v1280_v32 }
 0x540   :  { %2070 = vtanh.f32 %v2754_v34 }
 0x54d   :  { %v2071_v62 = vpop.eup %2070 }
 0x54e   :  { %v2757_v23 = vmul.f32 %v2071_v62, %v2069_v30  ;;  %v2144_v30 = vld [vmem:[#allocation9 + $0x24] ss:$16 sps:$4 sm:$0xff]   ;;  %v2145_v62 = vld [vmem:[#allocation9 + $0x2c] ss:$16 sps:$4 sm:$0xff]  }
 0x550   :  { %v1294_v25 = vpack.c.bf16 %v2757_v23, %v2757_v23 }
 0x552   :  { %1328 = vmatmul.mubr.bf16.vlgmr.msra.gmra.mxu0 %v1294_v25  ;;  %1369 = vmatmul.mubr.bf16.vlgmr.msra.gmra.mxu1 %v1294_v25  ;;  %v2147_v25 = vld [vmem:[#allocation9 + $0x28] ss:$16 sps:$4 sm:$0xff]  }
 0x553   :  { %1416 = vmatpush1.bf16.msra.mxu0 %v2761_v19  ;;  %1457 = vmatpush1.bf16.msra.mxu1 %v2764_v17 }
 0x554   :  { %1417 = vmatprep.subr.bf16.mxu0 %v2767_v53  ;;  %1458 = vmatprep.subr.bf16.mxu1 %v2770_v7 }
 0x555   :  { %1447 = vmatprep.mubr.bf16.mxu0 %v2915_v10  ;;  %1488 = vmatprep.mubr.bf16.mxu1 %v2915_v10 }
 0x557   :  { %1418 = vmatpush1.bf16.msra.mxu0 %v2775_v8  ;;  %1459 = vmatpush1.bf16.msra.mxu1 %v2778_v15 }
 0x558   :  { %1419 = vmatprep.subr.bf16.mxu0 %v2781_v21  ;;  %1460 = vmatprep.subr.bf16.mxu1 %v2784_v29 }
 0x55b   :  { %1420 = vmatpush1.bf16.msra.mxu0 %v2787_v16  ;;  %1461 = vmatpush1.bf16.msra.mxu1 %v2790_v35 }
 0x55c   :  { %1421 = vmatprep.subr.bf16.mxu0 %v2793_v9  ;;  %1462 = vmatprep.subr.bf16.mxu1 %v2796_v27 }
 0x55f   :  { %1422 = vmatpush1.bf16.msra.mxu0 %v2799_v22  ;;  %1463 = vmatpush1.bf16.msra.mxu1 %v2802_v18 }
 0x560   :  { %1423 = vmatprep.subr.bf16.mxu0 %v2805_v38  ;;  %1464 = vmatprep.subr.bf16.mxu1 %v2808_v39 }
 0x563   :  { %1424 = vmatpush1.bf16.msra.mxu0 %v2811_v40  ;;  %1465 = vmatpush1.bf16.msra.mxu1 %v2814_v41 }
 0x564   :  { %1425 = vmatprep.subr.bf16.mxu0 %v2817_v42  ;;  %1466 = vmatprep.subr.bf16.mxu1 %v2820_v43 }
 0x567   :  { %1426 = vmatpush1.bf16.msra.mxu0 %v2409_v58  ;;  %1467 = vmatpush1.bf16.msra.mxu1 %v2411_v59 }
 0x568   :  { %1427 = vmatprep.subr.bf16.mxu0 %v2415_v60  ;;  %1468 = vmatprep.subr.bf16.mxu1 %v2417_v61  ;;  %v2925_v60 = vld [vmem:[#allocation27_spill] sm:$0xff] }
 0x56b   :  { %1428 = vmatpush1.bf16.msra.mxu0 %v2423_v63  ;;  %1469 = vmatpush1.bf16.msra.mxu1 %v2425_v1  ;;  %v2926_v1 = vld [vmem:[#allocation29_spill] sm:$0xff] }
 0x56c   :  { %1429 = vmatprep.subr.bf16.mxu0 %v2429_v2  ;;  %1470 = vmatprep.subr.bf16.mxu1 %v2431_v3 }
 0x56f   :  { %1430 = vmatpush1.bf16.msra.mxu0 %v2435_v4  ;;  %1471 = vmatpush1.bf16.msra.mxu1 %v2437_v5  ;;  %v2927_v5 = vld [vmem:[#allocation30_spill] sm:$0xff] }
 0x570   :  { %1535 = vmatprep.subr.bf16.mxu0 %v2743_v36  ;;  %1576 = vmatprep.subr.bf16.mxu1 %v2746_v37 }
 0x612   :  { %v1329_v58 = vpop.f32.mrf.mxu0  ;;  %v1370_v59 = vpop.f32.mrf.mxu1 }
 0x613   :  { %v1377_v61 = vadd.f32 %v1329_v58, %v2925_v60  ;;  %v1379_v37 = vadd.f32 %v1370_v59, %v2928_v50  ;;  %v2932_v58 = vld [vmem:[#allocation32_spill] sm:$0xff] }
 0x614   :  { %v1331_v45 = vpop.f32.mrf.mxu0  ;;  %v1372_v63 = vpop.f32.mrf.mxu1 }
 0x615   :  { %v1832_v46 = vmul.f32 -1.442695, %v1377_v61  ;;  %v1378_v47 = vadd.f32 %v1331_v45, %v2926_v1  ;;  %v1380_v36 = vadd.f32 %v1372_v63, %v2927_v5 }
 0x616   :  { %v1333_v2 = vpop.f32.mrf.mxu0  ;;  %v1374_v48 = vpop.f32.mrf.mxu1 }
 0x617   :  { %2072 = vpow2.f32 %v1832_v46  ;;  %v1833_v3 = vmul.f32 -1.442695, %v1378_v47  ;;  %v1834_v51 = vmul.f32 -1.442695, %v1380_v36 }
 0x618   :  { %v1334_v4 = vpop.f32.mrf.mxu0  ;;  %v1375_v49 = vpop.f32.mrf.mxu1 }
 0x619   :  { %2074 = vpow2.f32 %v1833_v3 }
 0x61a   :  { %2076 = vtanh.f32 %v1379_v37 }
 0x61b   :  { %2078 = vpow2.f32 %v1834_v51 }
 0x624   :  { %v2073_v52 = vpop.eup %2072 }
 0x625   :  { %v1384_v54 = vadd.f32 1.0, %v2073_v52 }
 0x626   :  { %v2075_v55 = vpop.eup %2074 }
 0x627   :  { %2080 = vrcp.f32 %v1384_v54  ;;  %v1390_v56 = vadd.f32 1.0, %v2075_v55  ;;  %v2077_v57 = vpop.eup %2076  ;;  %v2933_v55 = vld [vmem:[#allocation35_spill] sm:$0xff] }
 0x628   :  { %v2079_v6 = vpop.eup %2078 }
 0x629   :  { %2082 = vrcp.f32 %v1390_v56  ;;  %v1397_v0 = vadd.f32 1.0, %v2079_v6 }
 0x62b   :  { %2084 = vrcp.f32 %v1397_v0 }
 0x634   :  { %v2081_v11 = vpop.eup %2080 }
 0x635   :  { %v1401_v20 = vmul.f32 %v2081_v11, %v2077_v57 }
 0x636   :  { %v2083_v24 = vpop.eup %2082 }
 0x637   :  { %v1400_v28 = vmul.f32 %v2083_v24, %v2754_v34  ;;  %v2143_v34 = vld [vmem:[#allocation9 + $0x48] ss:$16 sps:$4 sm:$0xff]  }
 0x638   :  { %v2085_v12 = vpop.eup %2084 }
 0x639   :  { %v2840_v14 = vadd.f32 %v1401_v20, %v1400_v28 }
 0x63b   :  { %2086 = vtanh.f32 %v2840_v14 }
 0x648   :  { %v2087_v13 = vpop.eup %2086 }
 0x649   :  { %v1404_v26 = vmul.f32 %v2087_v13, %v2085_v12 }
 0x64b   :  { %v1414_v33 = vpack.c.bf16 %v1404_v26, %v1404_v26  ;;  %v1870_v32 = vpack.c.bf16 %v1404_v26, %v2757_v23  ;;  %v2146_v23 = vld [vmem:[#allocation9 + $0x20] ss:$16 sps:$4 sm:$0xff]  }
 0x64c   :  { %v2934_v26 = vld [vmem:[#allocation36_spill] sm:$0xff] }
 0x64d   :  { %1448 = vmatmul.mubr.bf16.vlgmr.msra.gmra.mxu0 %v1414_v33  ;;  %1489 = vmatmul.mubr.bf16.vlgmr.msra.gmra.mxu1 %v1414_v33  ;;  %1878 = vst [vmem:[#allocation10 + $0x10] sm:$0xff] %v1870_v32  }
 0x64e   :  { %1536 = vmatpush1.bf16.msra.mxu0 %v2761_v19  ;;  %1577 = vmatpush1.bf16.msra.mxu1 %v2764_v17  ;;  %v2148_v19 = vld [vmem:[#allocation9 + $0x4] ss:$16 sps:$4 sm:$0xff]   ;;  %v2149_v17 = vld [vmem:[#allocation9 + $0xc] ss:$16 sps:$4 sm:$0xff]  }
 0x64f   :  { %1537 = vmatprep.subr.bf16.mxu0 %v2767_v53  ;;  %1578 = vmatprep.subr.bf16.mxu1 %v2770_v7  ;;  %v2150_v53 = vld [vmem:[#allocation9] ss:$16 sps:$4 sm:$0xff]   ;;  %v2151_v7 = vld [vmem:[#allocation9 + $0x8] ss:$16 sps:$4 sm:$0xff]  }
 0x650   :  { %1567 = vmatprep.mubr.bf16.mxu0 %v2915_v10  ;;  %1608 = vmatprep.mubr.bf16.mxu1 %v2915_v10  ;;  %v2142_v10 = vld [vmem:[#allocation9 + $0x40] ss:$16 sps:$4 sm:$0xff]  }
 0x652   :  { %1538 = vmatpush1.bf16.msra.mxu0 %v2775_v8  ;;  %1579 = vmatpush1.bf16.msra.mxu1 %v2778_v15 }
 0x653   :  { %1539 = vmatprep.subr.bf16.mxu0 %v2781_v21  ;;  %1580 = vmatprep.subr.bf16.mxu1 %v2784_v29  ;;  %v2929_v21 = vld [vmem:[#allocation31_spill] sm:$0xff] }
 0x656   :  { %1540 = vmatpush1.bf16.msra.mxu0 %v2787_v16  ;;  %1581 = vmatpush1.bf16.msra.mxu1 %v2790_v35 }
 0x657   :  { %1541 = vmatprep.subr.bf16.mxu0 %v2793_v9  ;;  %1582 = vmatprep.subr.bf16.mxu1 %v2796_v27  ;;  %v2930_v27 = vld [vmem:[#allocation33_spill] sm:$0xff] }
 0x65a   :  { %1542 = vmatpush1.bf16.msra.mxu0 %v2799_v22  ;;  %1583 = vmatpush1.bf16.msra.mxu1 %v2802_v18 }
 0x65b   :  { %1543 = vmatprep.subr.bf16.mxu0 %v2805_v38  ;;  %1584 = vmatprep.subr.bf16.mxu1 %v2808_v39 }
 0x65e   :  { %1544 = vmatpush1.bf16.msra.mxu0 %v2811_v40  ;;  %1585 = vmatpush1.bf16.msra.mxu1 %v2814_v41 }
 0x65f   :  { %1545 = vmatprep.subr.bf16.mxu0 %v2817_v42  ;;  %1586 = vmatprep.subr.bf16.mxu1 %v2820_v43  ;;  %v2931_v42 = vld [vmem:[#allocation34_spill] sm:$0xff] }
 0x662   :  { %1546 = vmatpush1.bf16.msra.mxu0 %v2142_v10  ;;  %1587 = vmatpush1.bf16.msra.mxu1 %v2143_v34 }
 0x663   :  { %1547 = vmatprep.subr.bf16.mxu0 %v2144_v30  ;;  %1588 = vmatprep.subr.bf16.mxu1 %v2145_v62 }
 0x666   :  { %1548 = vmatpush1.bf16.msra.mxu0 %v2146_v23  ;;  %1589 = vmatpush1.bf16.msra.mxu1 %v2147_v25 }
 0x667   :  { %1549 = vmatprep.subr.bf16.mxu0 %v2148_v19  ;;  %1590 = vmatprep.subr.bf16.mxu1 %v2149_v17 }
 0x66a   :  { %1550 = vmatpush1.bf16.msra.mxu0 %v2150_v53  ;;  %1591 = vmatpush1.bf16.msra.mxu1 %v2151_v7 }
 0x70d   :  { %v1449_v8 = vpop.f32.mrf.mxu0  ;;  %v1490_v15 = vpop.f32.mrf.mxu1 }
 0x70e   :  { %v1497_v29 = vadd.f32 %v1449_v8, %v2929_v21  ;;  %v1499_v59 = vadd.f32 %v1490_v15, %v2932_v58 }
 0x70f   :  { %v1451_v16 = vpop.f32.mrf.mxu0  ;;  %v1492_v35 = vpop.f32.mrf.mxu1 }
 0x710   :  { %v1835_v9 = vmul.f32 -1.442695, %v1497_v29  ;;  %v1498_v22 = vadd.f32 %v1451_v16, %v2930_v27  ;;  %v1500_v43 = vadd.f32 %v1492_v35, %v2931_v42 }
 0x711   :  { %v1453_v18 = vpop.f32.mrf.mxu0  ;;  %v1494_v38 = vpop.f32.mrf.mxu1 }
 0x712   :  { %2088 = vpow2.f32 %v1835_v9  ;;  %v1836_v39 = vmul.f32 -1.442695, %v1498_v22  ;;  %v1837_v60 = vmul.f32 -1.442695, %v1500_v43 }
 0x713   :  { %v1454_v40 = vpop.f32.mrf.mxu0  ;;  %v1495_v41 = vpop.f32.mrf.mxu1 }
 0x714   :  { %2090 = vpow2.f32 %v1836_v39 }
 0x715   :  { %2092 = vtanh.f32 %v1499_v59 }
 0x716   :  { %2094 = vpow2.f32 %v1837_v60 }
 0x71f   :  { %v2089_v61 = vpop.eup %2088 }
 0x720   :  { %v1504_v45 = vadd.f32 1.0, %v2089_v61 }
 0x721   :  { %v2091_v63 = vpop.eup %2090 }
 0x722   :  { %2096 = vrcp.f32 %v1504_v45  ;;  %v1510_v46 = vadd.f32 1.0, %v2091_v63  ;;  %v2093_v1 = vpop.eup %2092 }
 0x723   :  { %v2095_v47 = vpop.eup %2094 }
 0x724   :  { %2098 = vrcp.f32 %v1510_v46  ;;  %v1517_v4 = vadd.f32 1.0, %v2095_v47 }
 0x726   :  { %2100 = vrcp.f32 %v1517_v4 }
 0x72f   :  { %v2097_v2 = vpop.eup %2096 }
 0x730   :  { %v1521_v48 = vmul.f32 %v2097_v2, %v2093_v1 }
 0x731   :  { %v2099_v3 = vpop.eup %2098 }
 0x732   :  { %v1520_v49 = vmul.f32 %v2099_v3, %v2840_v14 }
 0x733   :  { %v2101_v36 = vpop.eup %2100 }
 0x734   :  { %v1522_v5 = vadd.f32 %v1521_v48, %v1520_v49 }
 0x736   :  { %2102 = vtanh.f32 %v1522_v5 }
 0x743   :  { %v2103_v50 = vpop.eup %2102 }
 0x744   :  { %v1524_v37 = vmul.f32 %v2103_v50, %v2101_v36 }
 0x746   :  { %v1534_v51 = vpack.c.bf16 %v1524_v37, %v1524_v37 }
 0x748   :  { %1568 = vmatmul.mubr.bf16.vlgmr.msra.gmra.mxu0 %v1534_v51  ;;  %1609 = vmatmul.mubr.bf16.vlgmr.msra.gmra.mxu1 %v1534_v51 }
 0x808   :  { %v1569_v52 = vpop.f32.mrf.mxu0  ;;  %v1610_v54 = vpop.f32.mrf.mxu1 }
 0x809   :  { %v1617_v56 = vadd.f32 %v1569_v52, %v2933_v55  ;;  %v1619_v33 = vadd.f32 %v1610_v54, %v2934_v26 }
 0x80a   :  { %v1571_v57 = vpop.f32.mrf.mxu0  ;;  %v1612_v6 = vpop.f32.mrf.mxu1 }
 0x80b   :  { %v1838_v11 = vmul.f32 -1.442695, %v1617_v56  ;;  %v1618_v20 = vadd.f32 %v1571_v57, %v2562_v31  ;;  %v1620_v13 = vadd.f32 %v1612_v6, %v2565_v44 }
 0x80c   :  { %v1573_v24 = vpop.f32.mrf.mxu0  ;;  %v1614_v0 = vpop.f32.mrf.mxu1 }
 0x80d   :  { %2104 = vpow2.f32 %v1838_v11  ;;  %v1839_v28 = vmul.f32 -1.442695, %v1618_v20  ;;  %v1840_v32 = vmul.f32 -1.442695, %v1620_v13 }
 0x80e   :  { %v1574_v14 = vpop.f32.mrf.mxu0  ;;  %v1615_v12 = vpop.f32.mrf.mxu1 }
 0x80f   :  { %2106 = vpow2.f32 %v1839_v28 }
 0x810   :  { %2108 = vtanh.f32 %v1619_v33 }
 0x811   :  { %2110 = vpow2.f32 %v1840_v32 }
 0x81a   :  { %v2105_v10 = vpop.eup %2104 }
 0x81b   :  { %v1624_v34 = vadd.f32 1.0, %v2105_v10 }
 0x81c   :  { %v2107_v30 = vpop.eup %2106 }
 0x81d   :  { %2112 = vrcp.f32 %v1624_v34  ;;  %v1630_v62 = vadd.f32 1.0, %v2107_v30  ;;  %v2109_v31 = vpop.eup %2108 }
 0x81e   :  { %v2111_v23 = vpop.eup %2110 }
 0x81f   :  { %2114 = vrcp.f32 %v1630_v62  ;;  %v1637_v53 = vadd.f32 1.0, %v2111_v23 }
 0x821   :  { %2116 = vrcp.f32 %v1637_v53 }
 0x82a   :  { %v2113_v25 = vpop.eup %2112 }
 0x82b   :  { %v1641_v19 = vmul.f32 %v2113_v25, %v2109_v31 }
 0x82c   :  { %v2115_v17 = vpop.eup %2114 }
 0x82d   :  { %v1640_v7 = vmul.f32 %v2115_v17, %v1522_v5 }
 0x82e   :  { %v2117_v44 = vpop.eup %2116 }
 0x82f   :  { %v1642_v8 = vadd.f32 %v1641_v19, %v1640_v7 }
 0x831   :  { %2118 = vtanh.f32 %v1642_v8  ;;  %1648 = vst [vmem:[#allocation13] sm:$0xff] %v1642_v8 }
 0x83e   :  { %v2119_v15 = vpop.eup %2118 }
 0x83f   :  { %v1644_v21 = vmul.f32 %v2119_v15, %v2117_v44 }
 0x841   :  { %1647 = vst [vmem:[#allocation11] sm:$0xff] %v1644_v21  ;;  %v1875_v29 = vpack.c.bf16 %v1644_v21, %v1524_v37 }
 0x842   :  { %2223 = shalt.err (!%p2220_p5)
}
 0x843   :  { %1718 = dma.vmem_to_hbm [thread:$0]  %s1716_s15, 128, %s2892_s5, [#allocation12]   ;;  %1879 = vst [vmem:[#allocation10 + $0x18] sm:$0xff] %v1875_v29  }
 0x844   :  { %s2232_s23 = scalar_lea.vmem %s1726_s17, 128  ;;  %p2237_p7 = scmp.lt.s32.totalorder %s1726_s17, %s1726_s17 }
 0x845   :  { %p2233_p6 = scmp.ne.s32.totalorder %s1726_s17, %s2232_s23  ;;  %p2238_p8 = scmp.lt.s32.totalorder %s2232_s23, %s2232_s23 }
 0x847   :  { %p2239_p9 = por %p2238_p8, %p2237_p7 }
 0x849   :  { %p2240_p10 = pnand %p2239_p9, %p2233_p6 }
 0x84b   :  { %2243 = shalt.err (!%p2240_p10)
}
 0x84c   :  { %1728 = dma.vmem_to_hbm [thread:$0]  %s1726_s17, 128, %s2893_s6, [#allocation12]  }
 0x84d   :  { %s2252_s26 = scalar_lea.vmem %s1703_s19, 512  ;;  %p2257_p12 = scmp.lt.s32.totalorder %s1703_s19, %s1703_s19 }
 0x84e   :  { %p2253_p11 = scmp.ne.s32.totalorder %s1703_s19, %s2252_s26  ;;  %p2258_p13 = scmp.lt.s32.totalorder %s2252_s26, %s2252_s26 }
 0x850   :  { %p2259_p0 = por %p2258_p13, %p2257_p12 }
 0x852   :  { %p2260_p1 = pnand %p2259_p0, %p2253_p11 }
 0x854   :  { %2263 = shalt.err (!%p2260_p1)
}
 0x855   :  { %1708 = dma.vmem_to_hbm [thread:$0]  %s1703_s19, 512, %s2891_s4, [#allocation6], %s2284_s7, %s2284_s7, %s2285_s8  }
 0x856   :  { %2276 = dma.done.wait [#allocation6], 512  }
 0x857   :  { %2277 = vsyncadd [#allocation6], 4294966784 }
 0x858   :  { %2278 = dma.done.wait [#allocation12], 256  }
 0x859   :  { %2279 = vsyncadd [#allocation12], 4294967040 }
 0x85a   :  { %1738 = vsyncpa [#allocation5], 1 }
 0x85b   :  { %1739 = vsyncpa [#allocation8], 1 }
 0x85c   :  { %1740 = vsyncpa [#allocation6], 1 }
 0x85d   :  { %1741 = vsyncpa [#allocation12], 1 }

// kernel: tpu_custom_call.1
= control target key start
LH: loop header
LB: loop body
LE: loop exit
PB: predicated region body
PF: predicated region fallthrough
CT: control target
= control target key end

     0   :  { %12 = vsyncpa [#allocation5], 0  ;;  %s2887_s0 = inlined_call_operand.hbm [shape: bf16[64,128], index: 0, kind: input, shape index: {}]   ;;  %s2888_s1 = inlined_call_operand.hbm [shape: bf16[128,512], index: 1, kind: input, shape index: {}]   ;;  %s2889_s2 = inlined_call_operand.hbm [shape: bf16[128,512], index: 2, kind: input, shape index: {}]   ;;  %s2890_s3 = inlined_call_operand.vmem [shape: f32[1,512], index: 3, kind: input, shape index: {}]   ;;  %s2891_s4 = inlined_call_operand.hbm [shape: bf16[64,128], index: 4, kind: output, shape index: {0}]   ;;  %s2892_s5 = inlined_call_operand.hbm [shape: f32[8,128], index: 5, kind: output, shape index: {1}]   ;;  %s2893_s6 = inlined_call_operand.hbm [shape: f32[8,128], index: 6, kind: output, shape index: {2}]  }
   0x1   :  { %13 = vsyncpa [#allocation8], 0 }
   0x2   :  { %14 = vsyncpa [#allocation6], 0 }
   0x3   :  { %15 = vsyncpa [#allocation12], 0  ;;  %s2280_s21 = smov [#allocation7]  }
   0x4   :  { %s33_s22 = sshll.u32 %s2280_s21, 4  ;;  %s34_s22 = int_to_ptr.vmem [resolvable:$true] %s33_s22 }
   0x5   :  { %s2160_s23 = scalar_lea.vmem %s34_s22, 4096  ;;  %p2165_p1 = scmp.lt.s32.totalorder %s34_s22, %s34_s22 }
   0x6   :  { %p2161_p0 = scmp.ne.s32.totalorder %s34_s22, %s2160_s23  ;;  %p2166_p2 = scmp.lt.s32.totalorder %s2160_s23, %s2160_s23 }
   0x8   :  { %p2167_p3 = por %p2166_p2, %p2165_p1 }
   0xa   :  { %p2168_p4 = pnand %p2167_p3, %p2161_p0 }
   0xc   :  { %2171 = shalt.err (!%p2168_p4)
}
   0xd   :  { %s2281_s24 = smov 256   ;;  %s2282_s25 = smov 16  }
   0xe   :  { %39 = dma.hbm_to_vmem [thread:$0]  %s2888_s1, 4096, %s34_s22, [#allocation8], %s2281_s24, %s2281_s24, %s2282_s25  }
   0xf   :  { %s2283_s28 = smov [#allocation4]  }
  0x10   :  { %s21_s29 = sshll.u32 %s2283_s28, 4  ;;  %s22_s29 = int_to_ptr.vmem [resolvable:$true] %s21_s29 }
  0x11   :  { %s2180_s30 = scalar_lea.vmem %s22_s29, 512  ;;  %p2185_p6 = scmp.lt.s32.totalorder %s22_s29, %s22_s29 }
  0x12   :  { %p2181_p5 = scmp.ne.s32.totalorder %s22_s29, %s2180_s30  ;;  %p2186_p7 = scmp.lt.s32.totalorder %s2180_s30, %s2180_s30 }
  0x14   :  { %p2187_p8 = por %p2186_p7, %p2185_p6 }
  0x16   :  { %p2188_p9 = pnand %p2187_p8, %p2181_p5 }
  0x18   :  { %2191 = shalt.err (!%p2188_p9)
}
  0x19   :  { %s2284_s7 = smov 64   ;;  %s2285_s8 = smov 4  }
  0x1a   :  { %27 = dma.hbm_to_vmem [thread:$0]  %s2887_s0, 512, %s22_s29, [#allocation5], %s2284_s7, %s2284_s7, %s2285_s8  }
  0x1b   :  { %s2286_s1 = smov [#allocation9]  }
  0x1c   :  { %s45_s11 = sshll.u32 %s2286_s1, 4  ;;  %s46_s11 = int_to_ptr.vmem [resolvable:$true] %s45_s11 }
  0x1d   :  { %s2200_s12 = scalar_lea.vmem %s46_s11, 4096  ;;  %p2205_p11 = scmp.lt.s32.totalorder %s46_s11, %s46_s11 }
  0x1e   :  { %p2201_p10 = scmp.ne.s32.totalorder %s46_s11, %s2200_s12  ;;  %p2206_p12 = scmp.lt.s32.totalorder %s2200_s12, %s2200_s12 }
  0x20   :  { %p2207_p13 = por %p2206_p12, %p2205_p11 }
  0x22   :  { %p2208_p0 = pnand %p2207_p13, %p2201_p10 }
  0x24   :  { %2211 = shalt.err (!%p2208_p0)
}
  0x25   :  { %51 = dma.hbm_to_vmem [thread:$0]  %s2889_s2, 4096, %s46_s11, [#allocation8], %s2281_s24, %s2281_s24, %s2282_s25  }
  0x26   :  { %2272 = dma.done.wait [#allocation5], 512  }
  0x27   :  { %2273 = vsyncadd [#allocation5], 4294966784 }
  0x28   :  { %2274 = dma.done.wait [#allocation8], 8192  }
  0x29   :  { %2275 = vsyncadd [#allocation8], 4294959104  ;;  %v2894_v0 = vmov 0   ;;  %v1892_v1 = vld [vmem:[#allocation7 + $0xe4] ss:$16 sps:$4 sm:$0xff]   ;;  %v1953_v44 = vld [vmem:[#allocation4 + $0x8] sm:$0xff]  }
  0x2a   :  { %348 = vmatprep.mubr.bf16.mxu0 %v2894_v0  ;;  %421 = vmatprep.mubr.bf16.mxu1 %v2894_v0  ;;  %v1894_v2 = vld [vmem:[#allocation7 + $0xec] ss:$16 sps:$4 sm:$0xff]   ;;  %v1896_v3 = vld [vmem:[#allocation7 + $0xe0] ss:$16 sps:$4 sm:$0xff]   ;;  %v1897_v4 = vld [vmem:[#allocation7 + $0xe8] ss:$16 sps:$4 sm:$0xff]  }
  0x2b   :  { %316 = vmatprep.subr.bf16.mxu0 %v1892_v1  ;;  %389 = vmatprep.subr.bf16.mxu1 %v1894_v2  ;;  %v1898_v5 = vld [vmem:[#allocation7 + $0xc4] ss:$16 sps:$4 sm:$0xff]   ;;  %v1900_v6 = vld [vmem:[#allocation7 + $0xcc] ss:$16 sps:$4 sm:$0xff]   ;;  %v1902_v7 = vld [vmem:[#allocation7 + $0xc0] ss:$16 sps:$4 sm:$0xff]  }
  0x2c   :  { %317 = vmatpush1.bf16.msra.mxu0 %v1896_v3  ;;  %390 = vmatpush1.bf16.msra.mxu1 %v1897_v4  ;;  %v1903_v8 = vld [vmem:[#allocation7 + $0xc8] ss:$16 sps:$4 sm:$0xff]   ;;  %v1904_v9 = vld [vmem:[#allocation7 + $0xa4] ss:$16 sps:$4 sm:$0xff]   ;;  %v1906_v10 = vld [vmem:[#allocation7 + $0xac] ss:$16 sps:$4 sm:$0xff]  }
  0x2d   :  { %318 = vmatprep.subr.bf16.mxu0 %v1898_v5  ;;  %391 = vmatprep.subr.bf16.mxu1 %v1900_v6  ;;  %v1908_v11 = vld [vmem:[#allocation7 + $0xa0] ss:$16 sps:$4 sm:$0xff]   ;;  %v1909_v12 = vld [vmem:[#allocation7 + $0xa8] ss:$16 sps:$4 sm:$0xff]   ;;  %v1910_v13 = vld [vmem:[#allocation7 + $0x84] ss:$16 sps:$4 sm:$0xff]  }
  0x2e   :  { %v1912_v14 = vld [vmem:[#allocation7 + $0x8c] ss:$16 sps:$4 sm:$0xff]   ;;  %v1914_v15 = vld [vmem:[#allocation7 + $0x80] ss:$16 sps:$4 sm:$0xff]   ;;  %v1915_v16 = vld [vmem:[#allocation7 + $0x88] ss:$16 sps:$4 sm:$0xff]  }
  0x2f   :  { %v1916_v17 = vld [vmem:[#allocation7 + $0x64] ss:$16 sps:$4 sm:$0xff]   ;;  %v1918_v18 = vld [vmem:[#allocation7 + $0x6c] ss:$16 sps:$4 sm:$0xff]   ;;  %v1920_v19 = vld [vmem:[#allocation7 + $0x60] ss:$16 sps:$4 sm:$0xff]  }
  0x30   :  { %319 = vmatpush1.bf16.msra.mxu0 %v1902_v7  ;;  %392 = vmatpush1.bf16.msra.mxu1 %v1903_v8  ;;  %v1921_v20 = vld [vmem:[#allocation7 + $0x68] ss:$16 sps:$4 sm:$0xff]   ;;  %v1922_v21 = vld [vmem:[#allocation7 + $0x44] ss:$16 sps:$4 sm:$0xff]   ;;  %v1924_v22 = vld [vmem:[#allocation7 + $0x4c] ss:$16 sps:$4 sm:$0xff]   ;;  %v112_v7 = vlaneseq }
  0x31   :  { %320 = vmatprep.subr.bf16.mxu0 %v1904_v9  ;;  %393 = vmatprep.subr.bf16.mxu1 %v1906_v10  ;;  %v1926_v23 = vld [vmem:[#allocation7 + $0x40] ss:$16 sps:$4 sm:$0xff]   ;;  %v1927_v24 = vld [vmem:[#allocation7 + $0x48] ss:$16 sps:$4 sm:$0xff]   ;;  %v1928_v25 = vld [vmem:[#allocation7 + $0x24] ss:$16 sps:$4 sm:$0xff]  }
  0x32   :  { %v1930_v26 = vld [vmem:[#allocation7 + $0x2c] ss:$16 sps:$4 sm:$0xff]   ;;  %v1932_v27 = vld [vmem:[#allocation7 + $0x20] ss:$16 sps:$4 sm:$0xff]   ;;  %v1933_v28 = vld [vmem:[#allocation7 + $0x28] ss:$16 sps:$4 sm:$0xff]  }
  0x33   :  { %v1934_v29 = vld [vmem:[#allocation7 + $0x4] ss:$16 sps:$4 sm:$0xff]   ;;  %v1936_v30 = vld [vmem:[#allocation7 + $0xc] ss:$16 sps:$4 sm:$0xff]   ;;  %v1938_v31 = vld [vmem:[#allocation7] ss:$16 sps:$4 sm:$0xff]  }
  0x34   :  { %321 = vmatpush1.bf16.msra.mxu0 %v1908_v11  ;;  %394 = vmatpush1.bf16.msra.mxu1 %v1909_v12  ;;  %v1939_v32 = vld [vmem:[#allocation7 + $0x8] ss:$16 sps:$4 sm:$0xff]   ;;  %v2341_v33 = vld [vmem:[#allocation9 + $0xe4] ss:$16 sps:$4 sm:$0xff]   ;;  %v2343_v34 = vld [vmem:[#allocation9 + $0xec] ss:$16 sps:$4 sm:$0xff]  }
  0x35   :  { %322 = vmatprep.subr.bf16.mxu0 %v1910_v13  ;;  %395 = vmatprep.subr.bf16.mxu1 %v1912_v14  ;;  %v1940_v35 = vld [vmem:[#allocation4] sm:$0xff]   ;;  %v2347_v37 = vld [vmem:[#allocation9 + $0xe8] ss:$16 sps:$4 sm:$0xff]   ;;  %v2353_v39 = vld [vmem:[#allocation9 + $0xcc] ss:$16 sps:$4 sm:$0xff]   ;;  %v2288_v6 = vmov 0.0|0.0  }
  0x36   :  { %v2345_v36 = vld [vmem:[#allocation9 + $0xe0] ss:$16 sps:$4 sm:$0xff]   ;;  %v2351_v38 = vld [vmem:[#allocation9 + $0xc4] ss:$16 sps:$4 sm:$0xff]   ;;  %v2359_v41 = vld [vmem:[#allocation9 + $0xc8] ss:$16 sps:$4 sm:$0xff]  }
  0x37   :  { %v2355_v40 = vld [vmem:[#allocation9 + $0xc0] ss:$16 sps:$4 sm:$0xff]   ;;  %v2363_v42 = vld [vmem:[#allocation9 + $0xa4] ss:$16 sps:$4 sm:$0xff]   ;;  %v2365_v43 = vld [vmem:[#allocation9 + $0xac] ss:$16 sps:$4 sm:$0xff]  }
  0x38   :  { %323 = vmatpush1.bf16.msra.mxu0 %v1914_v15  ;;  %396 = vmatpush1.bf16.msra.mxu1 %v1915_v16  ;;  %v2369_v45 = vld [vmem:[#allocation9 + $0xa0] ss:$16 sps:$4 sm:$0xff]   ;;  %v2371_v46 = vld [vmem:[#allocation9 + $0xa8] ss:$16 sps:$4 sm:$0xff]   ;;  %v2375_v47 = vld [vmem:[#allocation9 + $0x84] ss:$16 sps:$4 sm:$0xff]  }
  0x39   :  { %324 = vmatprep.subr.bf16.mxu0 %v1916_v17  ;;  %397 = vmatprep.subr.bf16.mxu1 %v1918_v18  ;;  %v2379_v48 = vld [vmem:[#allocation9 + $0x8c] ss:$16 sps:$4 sm:$0xff]   ;;  %v2381_v49 = vld [vmem:[#allocation9 + $0x80] ss:$16 sps:$4 sm:$0xff]   ;;  %v2383_v50 = vld [vmem:[#allocation9 + $0x88] ss:$16 sps:$4 sm:$0xff]  }
  0x3a   :  { %v2387_v51 = vld [vmem:[#allocation9 + $0x64] ss:$16 sps:$4 sm:$0xff]   ;;  %v2391_v52 = vld [vmem:[#allocation9 + $0x6c] ss:$16 sps:$4 sm:$0xff]   ;;  %v2397_v54 = vld [vmem:[#allocation9 + $0x60] ss:$16 sps:$4 sm:$0xff]  }
  0x3b   :  { %v1966_v53 = vld [vmem:[#allocation4 + $0x10] sm:$0xff]   ;;  %v2399_v55 = vld [vmem:[#allocation9 + $0x68] ss:$16 sps:$4 sm:$0xff]   ;;  %v2405_v57 = vld [vmem:[#allocation9 + $0x4c] ss:$16 sps:$4 sm:$0xff]   ;;  %v113_v8 = vshrl.u32 %v112_v7, 7 }
  0x3c   :  { %325 = vmatpush1.bf16.msra.mxu0 %v1920_v19  ;;  %398 = vmatpush1.bf16.msra.mxu1 %v1921_v20  ;;  %v2403_v56 = vld [vmem:[#allocation9 + $0x44] ss:$16 sps:$4 sm:$0xff]   ;;  %v2409_v58 = vld [vmem:[#allocation9 + $0x40] ss:$16 sps:$4 sm:$0xff]   ;;  %v2411_v59 = vld [vmem:[#allocation9 + $0x48] ss:$16 sps:$4 sm:$0xff]  }
  0x3d   :  { %326 = vmatprep.subr.bf16.mxu0 %v1922_v21  ;;  %399 = vmatprep.subr.bf16.mxu1 %v1924_v22  ;;  %v2415_v60 = vld [vmem:[#allocation9 + $0x24] ss:$16 sps:$4 sm:$0xff]   ;;  %v2417_v61 = vld [vmem:[#allocation9 + $0x2c] ss:$16 sps:$4 sm:$0xff]   ;;  %v2423_v63 = vld [vmem:[#allocation9 + $0x20] ss:$16 sps:$4 sm:$0xff]  }
  0x3e   :  { %v1979_v62 = vld [vmem:[#allocation4 + $0x18] sm:$0xff]   ;;  %v2429_v2 = vld [vmem:[#allocation9 + $0x4] ss:$16 sps:$4 sm:$0xff]   ;;  %v2435_v4 = vld [vmem:[#allocation9] ss:$16 sps:$4 sm:$0xff]   ;;  %v122_v9 = vsub.s32 2, %v113_v8 }
  0x3f   :  { %v2425_v1 = vld [vmem:[#allocation9 + $0x28] ss:$16 sps:$4 sm:$0xff]   ;;  %v2431_v3 = vld [vmem:[#allocation9 + $0xc] ss:$16 sps:$4 sm:$0xff]   ;;  %v114_v10 = vsub.s32 0, %v113_v8  ;;  %v126_v11 = vsub.s32 3, %v113_v8 }
  0x40   :  { %327 = vmatpush1.bf16.msra.mxu0 %v1926_v23  ;;  %400 = vmatpush1.bf16.msra.mxu1 %v1927_v24  ;;  %v2437_v5 = vld [vmem:[#allocation9 + $0x8] ss:$16 sps:$4 sm:$0xff]   ;;  %v110_v12 = vld [vmem:[%s2890_s3] sm:$0xf]  ;;  %v118_v16 = vsub.s32 1, %v113_v8  ;;  %s2289_s3 = smov [#allocation11]  }
  0x41   :  { %328 = vmatprep.subr.bf16.mxu0 %v1928_v25  ;;  %401 = vmatprep.subr.bf16.mxu1 %v1930_v26  ;;  %v2488_v15 = vrot.slane %v110_v12, %v122_v9  ;;  %v115_v19 = vrot.slane %v110_v12, %v114_v10  ;;  %v2494_v20 = vrot.slane %v110_v12, %v126_v11  ;;  %s1715_s15 = sshll.u32 %s2289_s3, 4  ;;  %s2290_s16 = smov [#allocation13]   ;;  %s1716_s15 = int_to_ptr.vmem [resolvable:$true] %s1715_s15 }
  0x42   :  { %v119_v23 = vrot.slane %v110_v12, %v118_v16  ;;  %s1725_s17 = sshll.u32 %s2290_s16, 4  ;;  %s2291_s18 = smov [#allocation10]   ;;  %s1726_s17 = int_to_ptr.vmem [resolvable:$true] %s1725_s17 }
  0x43   :  { %s1702_s19 = sshll.u32 %s2291_s18, 4  ;;  %s2212_s20 = scalar_lea.vmem %s1716_s15, 128  ;;  %s1703_s19 = int_to_ptr.vmem [resolvable:$true] %s1702_s19 }
  0x44   :  { %329 = vmatpush1.bf16.msra.mxu0 %v1932_v27  ;;  %402 = vmatpush1.bf16.msra.mxu1 %v1933_v28  ;;  %p2213_p1 = scmp.ne.s32.totalorder %s1716_s15, %s2212_s20  ;;  %p2217_p2 = scmp.lt.s32.totalorder %s1716_s15, %s1716_s15 }
  0x45   :  { %330 = vmatprep.subr.bf16.mxu0 %v1934_v29  ;;  %403 = vmatprep.subr.bf16.mxu1 %v1936_v30  ;;  %p2218_p3 = scmp.lt.s32.totalorder %s2212_s20, %s2212_s20 }
  0x47   :  { %p2219_p4 = por %p2218_p3, %p2217_p2 }
  0x48   :  { %331 = vmatpush1.bf16.msra.mxu0 %v1938_v31  ;;  %404 = vmatpush1.bf16.msra.mxu1 %v1939_v32 }
  0x49   :  { %696 = vmatprep.subr.bf16.mxu0 %v2341_v33  ;;  %737 = vmatprep.subr.bf16.mxu1 %v2343_v34  ;;  %p2220_p5 = pnand %p2219_p4, %p2213_p1 }
  0x4b   :  { %349 = vmatmul.mubr.bf16.vlgmr.msra.gmra.mxu0 %v1940_v35  ;;  %422 = vmatmul.mubr.bf16.vlgmr.msra.gmra.mxu1 %v1940_v35 }
  0x4c   :  { %697 = vmatpush1.bf16.msra.mxu0 %v2345_v36  ;;  %738 = vmatpush1.bf16.msra.mxu1 %v2347_v37 }
  0x4d   :  { %698 = vmatprep.subr.bf16.mxu0 %v2351_v38  ;;  %739 = vmatprep.subr.bf16.mxu1 %v2353_v39 }
  0x4e   :  { %358 = vmatprep.mubr.bf16.mxu0 %v2894_v0  ;;  %431 = vmatprep.mubr.bf16.mxu1 %v2894_v0 }
  0x50   :  { %699 = vmatpush1.bf16.msra.mxu0 %v2355_v40  ;;  %740 = vmatpush1.bf16.msra.mxu1 %v2359_v41 }
  0x51   :  { %700 = vmatprep.subr.bf16.mxu0 %v2363_v42  ;;  %741 = vmatprep.subr.bf16.mxu1 %v2365_v43 }
  0x53   :  { %359 = vmatmul.mubr.bf16.gmra.mxu0 %v1953_v44  ;;  %432 = vmatmul.mubr.bf16.gmra.mxu1 %v1953_v44 }
  0x54   :  { %701 = vmatpush1.bf16.msra.mxu0 %v2369_v45  ;;  %742 = vmatpush1.bf16.msra.mxu1 %v2371_v46 }
  0x55   :  { %702 = vmatprep.subr.bf16.mxu0 %v2375_v47  ;;  %743 = vmatprep.subr.bf16.mxu1 %v2379_v48 }
  0x56   :  { %368 = vmatprep.mubr.bf16.mxu0 %v2894_v0  ;;  %441 = vmatprep.mubr.bf16.mxu1 %v2894_v0 }
  0x58   :  { %703 = vmatpush1.bf16.msra.mxu0 %v2381_v49  ;;  %744 = vmatpush1.bf16.msra.mxu1 %v2383_v50 }
  0x59   :  { %704 = vmatprep.subr.bf16.mxu0 %v2387_v51  ;;  %745 = vmatprep.subr.bf16.mxu1 %v2391_v52 }
  0x5b   :  { %369 = vmatmul.mubr.bf16.gmra.mxu0 %v1966_v53  ;;  %442 = vmatmul.mubr.bf16.gmra.mxu1 %v1966_v53 }
  0x5c   :  { %705 = vmatpush1.bf16.msra.mxu0 %v2397_v54  ;;  %746 = vmatpush1.bf16.msra.mxu1 %v2399_v55 }
  0x5d   :  { %706 = vmatprep.subr.bf16.mxu0 %v2403_v56  ;;  %747 = vmatprep.subr.bf16.mxu1 %v2405_v57 }
  0x5e   :  { %378 = vmatprep.mubr.bf16.mxu0 %v2894_v0  ;;  %451 = vmatprep.mubr.bf16.mxu1 %v2894_v0 }
  0x60   :  { %707 = vmatpush1.bf16.msra.mxu0 %v2409_v58  ;;  %748 = vmatpush1.bf16.msra.mxu1 %v2411_v59 }
  0x61   :  { %708 = vmatprep.subr.bf16.mxu0 %v2415_v60  ;;  %749 = vmatprep.subr.bf16.mxu1 %v2417_v61 }
  0x63   :  { %379 = vmatmul.mubr.bf16.gmra.mxu0 %v1979_v62  ;;  %452 = vmatmul.mubr.bf16.gmra.mxu1 %v1979_v62 }
  0x64   :  { %709 = vmatpush1.bf16.msra.mxu0 %v2423_v63  ;;  %750 = vmatpush1.bf16.msra.mxu1 %v2425_v1 }
  0x65   :  { %710 = vmatprep.subr.bf16.mxu0 %v2429_v2  ;;  %751 = vmatprep.subr.bf16.mxu1 %v2431_v3 }
  0x66   :  { %728 = vmatprep.mubr.bf16.mxu0 %v2894_v0  ;;  %769 = vmatprep.mubr.bf16.mxu1 %v2894_v0 }
  0x68   :  { %711 = vmatpush1.bf16.msra.mxu0 %v2435_v4  ;;  %752 = vmatpush1.bf16.msra.mxu1 %v2437_v5 }
  0x69   :  { %815 = vmatprep.subr.bf16.mxu0 %v2341_v33  ;;  %856 = vmatprep.subr.bf16.mxu1 %v2343_v34 }
  0x6b   :  { %729 = vmatmul.mubr.bf16.vlgmr.msra.gmra.mxu0 %v2288_v6  ;;  %770 = vmatmul.mubr.bf16.vlgmr.msra.gmra.mxu1 %v2288_v6 }
  0x6c   :  { %816 = vmatpush1.bf16.msra.mxu0 %v2345_v36  ;;  %857 = vmatpush1.bf16.msra.mxu1 %v2347_v37 }
  0x6d   :  { %817 = vmatprep.subr.bf16.mxu0 %v2351_v38  ;;  %858 = vmatprep.subr.bf16.mxu1 %v2353_v39 }
  0x6e   :  { %847 = vmatprep.mubr.bf16.mxu0 %v2894_v0  ;;  %888 = vmatprep.mubr.bf16.mxu1 %v2894_v0 }
  0x70   :  { %818 = vmatpush1.bf16.msra.mxu0 %v2355_v40  ;;  %859 = vmatpush1.bf16.msra.mxu1 %v2359_v41 }
  0x71   :  { %819 = vmatprep.subr.bf16.mxu0 %v2363_v42  ;;  %860 = vmatprep.subr.bf16.mxu1 %v2365_v43 }
  0x74   :  { %820 = vmatpush1.bf16.msra.mxu0 %v2369_v45  ;;  %861 = vmatpush1.bf16.msra.mxu1 %v2371_v46 }
  0x75   :  { %821 = vmatprep.subr.bf16.mxu0 %v2375_v47  ;;  %862 = vmatprep.subr.bf16.mxu1 %v2379_v48 }
  0x78   :  { %822 = vmatpush1.bf16.msra.mxu0 %v2381_v49  ;;  %863 = vmatpush1.bf16.msra.mxu1 %v2383_v50 }
  0x79   :  { %823 = vmatprep.subr.bf16.mxu0 %v2387_v51  ;;  %864 = vmatprep.subr.bf16.mxu1 %v2391_v52 }
  0x7c   :  { %824 = vmatpush1.bf16.msra.mxu0 %v2397_v54  ;;  %865 = vmatpush1.bf16.msra.mxu1 %v2399_v55 }
  0x7d   :  { %825 = vmatprep.subr.bf16.mxu0 %v2403_v56  ;;  %866 = vmatprep.subr.bf16.mxu1 %v2405_v57 }
  0x80   :  { %826 = vmatpush1.bf16.msra.mxu0 %v2409_v58  ;;  %867 = vmatpush1.bf16.msra.mxu1 %v2411_v59 }
  0x81   :  { %827 = vmatprep.subr.bf16.mxu0 %v2415_v60  ;;  %868 = vmatprep.subr.bf16.mxu1 %v2417_v61 }
  0x84   :  { %828 = vmatpush1.bf16.msra.mxu0 %v2423_v63  ;;  %869 = vmatpush1.bf16.msra.mxu1 %v2425_v1 }
  0x85   :  { %829 = vmatprep.subr.bf16.mxu0 %v2429_v2  ;;  %870 = vmatprep.subr.bf16.mxu1 %v2431_v3 }
  0x88   :  { %830 = vmatpush1.bf16.msra.mxu0 %v2435_v4  ;;  %871 = vmatpush1.bf16.msra.mxu1 %v2437_v5 }
  0x89   :  { %935 = vmatprep.subr.bf16.mxu0 %v2341_v33  ;;  %976 = vmatprep.subr.bf16.mxu1 %v2343_v34 }
 0x10b   :  { %v2484_v13 = vpop.f32.mrf.mxu0  ;;  %v2486_v14 = vpop.f32.mrf.mxu1 }
 0x10d   :  { %v2490_v17 = vpop.f32.mrf.mxu0  ;;  %v2492_v18 = vpop.f32.mrf.mxu1 }
 0x10f   :  { %v354_v21 = vpop.f32.mrf.mxu0  ;;  %v427_v22 = vpop.f32.mrf.mxu1 }
 0x110   :  { %v2496_v24 = vadd.f32 %v354_v21, %v115_v19  ;;  %v2499_v25 = vadd.f32 %v427_v22, %v2488_v15 }
 0x111   :  { %v356_v26 = vpop.f32.mrf.mxu0  ;;  %v429_v27 = vpop.f32.mrf.mxu1 }
 0x112   :  { %v2501_v28 = vadd.f32 %v356_v26, %v119_v23  ;;  %v2504_v29 = vadd.f32 %v429_v27, %v2494_v20 }
 0x113   :  { %v360_v30 = vpop.f32.mrf.mxu0  ;;  %v433_v31 = vpop.f32.mrf.mxu1 }
 0x114   :  { %v2506_v32 = vadd.f32 %v360_v30, %v115_v19  ;;  %v2509_v35 = vadd.f32 %v433_v31, %v2488_v15 }
 0x115   :  { %v362_v44 = vpop.f32.mrf.mxu0  ;;  %v435_v53 = vpop.f32.mrf.mxu1 }
 0x116   :  { %2896 = vst [vmem:[#allocation18_spill] sm:$0xff] %v2509_v35  ;;  %v2511_v62 = vadd.f32 %v362_v44, %v119_v23  ;;  %v2514_v6 = vadd.f32 %v435_v53, %v2494_v20 }
 0x117   :  { %v364_v7 = vpop.f32.mrf.mxu0  ;;  %v437_v8 = vpop.f32.mrf.mxu1 }
 0x118   :  { %v2516_v9 = vadd.f32 %v364_v7, %v115_v19  ;;  %v2519_v10 = vadd.f32 %v437_v8, %v2488_v15 }
 0x119   :  { %v366_v11 = vpop.f32.mrf.mxu0  ;;  %v439_v12 = vpop.f32.mrf.mxu1 }
 0x11a   :  { %2897 = vst [vmem:[#allocation19_spill] sm:$0xff] %v2516_v9  ;;  %2898 = vst [vmem:[#allocation20_spill] sm:$0xff] %v2519_v10  ;;  %v2521_v16 = vadd.f32 %v366_v11, %v119_v23  ;;  %v2524_v21 = vadd.f32 %v439_v12, %v2494_v20 }
 0x11b   :  { %v370_v22 = vpop.f32.mrf.mxu0  ;;  %v443_v26 = vpop.f32.mrf.mxu1 }
 0x11c   :  { %2899 = vst [vmem:[#allocation21_spill] sm:$0xff] %v2521_v16  ;;  %2900 = vst [vmem:[#allocation22_spill] sm:$0xff] %v2524_v21  ;;  %v2526_v27 = vadd.f32 %v370_v22, %v115_v19  ;;  %v2529_v30 = vadd.f32 %v443_v26, %v2488_v15 }
 0x11d   :  { %v372_v31 = vpop.f32.mrf.mxu0  ;;  %v445_v44 = vpop.f32.mrf.mxu1 }
 0x11e   :  { %2901 = vst [vmem:[#allocation23_spill] sm:$0xff] %v2526_v27  ;;  %2902 = vst [vmem:[#allocation24_spill] sm:$0xff] %v2529_v30  ;;  %v2531_v53 = vadd.f32 %v372_v31, %v119_v23  ;;  %v2534_v7 = vadd.f32 %v445_v44, %v2494_v20 }
 0x11f   :  { %v374_v8 = vpop.f32.mrf.mxu0  ;;  %v447_v11 = vpop.f32.mrf.mxu1 }
 0x120   :  { %2903 = vst [vmem:[#allocation25_spill] sm:$0xff] %v2531_v53  ;;  %2904 = vst [vmem:[#allocation26_spill] sm:$0xff] %v2534_v7  ;;  %v2536_v0 = vadd.f32 %v374_v8, %v115_v19  ;;  %v2539_v12 = vadd.f32 %v447_v11, %v2488_v15 }
 0x121   :  { %v376_v10 = vpop.f32.mrf.mxu0  ;;  %v449_v22 = vpop.f32.mrf.mxu1 }
 0x122   :  { %2905 = vst [vmem:[#allocation27_spill] sm:$0xff] %v2536_v0  ;;  %2906 = vst [vmem:[#allocation28_spill] sm:$0xff] %v2539_v12  ;;  %v2541_v27 = vadd.f32 %v376_v10, %v119_v23  ;;  %v2544_v26 = vadd.f32 %v449_v22, %v2494_v20 }
 0x123   :  { %v380_v30 = vpop.f32.mrf.mxu0  ;;  %v453_v31 = vpop.f32.mrf.mxu1 }
 0x124   :  { %2907 = vst [vmem:[#allocation29_spill] sm:$0xff] %v2541_v27  ;;  %2908 = vst [vmem:[#allocation30_spill] sm:$0xff] %v2544_v26  ;;  %v2546_v53 = vadd.f32 %v380_v30, %v115_v19  ;;  %v2549_v44 = vadd.f32 %v453_v31, %v2488_v15 }
 0x125   :  { %v382_v7 = vpop.f32.mrf.mxu0  ;;  %v455_v8 = vpop.f32.mrf.mxu1 }
 0x126   :  { %2909 = vst [vmem:[#allocation31_spill] sm:$0xff] %v2546_v53  ;;  %2910 = vst [vmem:[#allocation32_spill] sm:$0xff] %v2549_v44  ;;  %v2551_v0 = vadd.f32 %v382_v7, %v119_v23  ;;  %v2554_v11 = vadd.f32 %v455_v8, %v2494_v20  ;;  %v351_v53 = vadd.f32 %v2484_v13, %v115_v19 }
 0x127   :  { %v384_v12 = vpop.f32.mrf.mxu0  ;;  %v457_v10 = vpop.f32.mrf.mxu1  ;;  %v353_v8 = vadd.f32 %v2490_v17, %v119_v23 }
 0x128   :  { %2911 = vst [vmem:[#allocation33_spill] sm:$0xff] %v2551_v0  ;;  %2912 = vst [vmem:[#allocation34_spill] sm:$0xff] %v2554_v11  ;;  %v2556_v27 = vadd.f32 %v384_v12, %v115_v19  ;;  %v2559_v22 = vadd.f32 %v457_v10, %v2488_v15  ;;  %v426_v19 = vadd.f32 %v2492_v18, %v2494_v20 }
 0x129   :  { %v386_v26 = vpop.f32.mrf.mxu0  ;;  %v459_v30 = vpop.f32.mrf.mxu1 }
 0x12a   :  { %2913 = vst [vmem:[#allocation35_spill] sm:$0xff] %v2556_v27  ;;  %2914 = vst [vmem:[#allocation36_spill] sm:$0xff] %v2559_v22  ;;  %v2562_v31 = vadd.f32 %v386_v26, %v119_v23  ;;  %v2565_v44 = vadd.f32 %v459_v30, %v2494_v20  ;;  %v424_v30 = vadd.f32 %v2486_v14, %v2488_v15 }
 0x12b   :  { %v730_v7 = vpop.f32.mrf.mxu0  ;;  %v771_v0 = vpop.f32.mrf.mxu1 }
 0x12c   :  { %v778_v11 = vadd.f32 %v730_v7, %v351_v53  ;;  %v780_v53 = vadd.f32 %v771_v0, %v424_v30 }
 0x12d   :  { %v732_v21 = vpop.f32.mrf.mxu0  ;;  %v773_v12 = vpop.f32.mrf.mxu1 }
 0x12e   :  { %v1817_v27 = vmul.f32 -1.442695, %v778_v11  ;;  %v779_v16 = vadd.f32 %v732_v21, %v353_v8  ;;  %v781_v26 = vadd.f32 %v773_v12, %v426_v19 }
 0x12f   :  { %v734_v10 = vpop.f32.mrf.mxu0  ;;  %v775_v22 = vpop.f32.mrf.mxu1 }
 0x130   :  { %1992 = vpow2.f32 %v1817_v27  ;;  %v1818_v9 = vmul.f32 -1.442695, %v779_v16  ;;  %v1819_v17 = vmul.f32 -1.442695, %v781_v26  ;;  %v2915_v10 = vmov 0  }
 0x131   :  { %v735_v35 = vpop.f32.mrf.mxu0  ;;  %v776_v13 = vpop.f32.mrf.mxu1 }
 0x132   :  { %1994 = vpow2.f32 %v1818_v9 }
 0x133   :  { %1996 = vpow2.f32 %v1819_v17 }
 0x13d   :  { %v1993_v23 = vpop.eup %1992 }
 0x13e   :  { %v785_v7 = vadd.f32 1.0, %v1993_v23 }
 0x13f   :  { %v1995_v11 = vpop.eup %1994 }
 0x140   :  { %1998 = vrcp.f32 %v785_v7  ;;  %v791_v21 = vadd.f32 1.0, %v1995_v11  ;;  %v1997_v35 = vpop.eup %1996 }
 0x141   :  { %2000 = vtanh.f32 %v780_v53  ;;  %v798_v22 = vadd.f32 1.0, %v1997_v35 }
 0x142   :  { %2002 = vrcp.f32 %v791_v21 }
 0x143   :  { %2004 = vrcp.f32 %v798_v22 }
 0x14d   :  { %v1999_v16 = vpop.eup %1998 }
 0x14e   :  { %v2001_v9 = vpop.eup %2000 }
 0x14f   :  { %v2003_v27 = vpop.eup %2002  ;;  %v802_v18 = vmul.f32 %v2001_v9, %v1999_v16 }
 0x150   :  { %v801_v20 = vmul.f32 0.0, %v2003_v27  ;;  %v2005_v0 = vpop.eup %2004 }
 0x152   :  { %v2572_v8 = vadd.f32 %v802_v18, %v801_v20 }
 0x154   :  { %2006 = vtanh.f32 %v2572_v8 }
 0x161   :  { %v2007_v14 = vpop.eup %2006 }
 0x162   :  { %v2575_v15 = vmul.f32 %v2007_v14, %v2005_v0 }
 0x164   :  { %v814_v12 = vpack.c.bf16 %v2575_v15, %v2575_v15 }
 0x166   :  { %848 = vmatmul.mubr.bf16.vlgmr.msra.gmra.mxu0 %v814_v12  ;;  %889 = vmatmul.mubr.bf16.vlgmr.msra.gmra.mxu1 %v814_v12 }
 0x167   :  { %936 = vmatpush1.bf16.msra.mxu0 %v2345_v36  ;;  %977 = vmatpush1.bf16.msra.mxu1 %v2347_v37 }
 0x168   :  { %937 = vmatprep.subr.bf16.mxu0 %v2351_v38  ;;  %978 = vmatprep.subr.bf16.mxu1 %v2353_v39 }
 0x169   :  { %967 = vmatprep.mubr.bf16.mxu0 %v2915_v10  ;;  %1008 = vmatprep.mubr.bf16.mxu1 %v2915_v10 }
 0x16b   :  { %938 = vmatpush1.bf16.msra.mxu0 %v2355_v40  ;;  %979 = vmatpush1.bf16.msra.mxu1 %v2359_v41 }
 0x16c   :  { %939 = vmatprep.subr.bf16.mxu0 %v2363_v42  ;;  %980 = vmatprep.subr.bf16.mxu1 %v2365_v43 }
 0x16f   :  { %940 = vmatpush1.bf16.msra.mxu0 %v2369_v45  ;;  %981 = vmatpush1.bf16.msra.mxu1 %v2371_v46 }
 0x170   :  { %941 = vmatprep.subr.bf16.mxu0 %v2375_v47  ;;  %982 = vmatprep.subr.bf16.mxu1 %v2379_v48 }
 0x173   :  { %942 = vmatpush1.bf16.msra.mxu0 %v2381_v49  ;;  %983 = vmatpush1.bf16.msra.mxu1 %v2383_v50 }
 0x174   :  { %943 = vmatprep.subr.bf16.mxu0 %v2387_v51  ;;  %984 = vmatprep.subr.bf16.mxu1 %v2391_v52 }
 0x177   :  { %944 = vmatpush1.bf16.msra.mxu0 %v2397_v54  ;;  %985 = vmatpush1.bf16.msra.mxu1 %v2399_v55 }
 0x178   :  { %945 = vmatprep.subr.bf16.mxu0 %v2403_v56  ;;  %986 = vmatprep.subr.bf16.mxu1 %v2405_v57 }
 0x17b   :  { %946 = vmatpush1.bf16.msra.mxu0 %v2409_v58  ;;  %987 = vmatpush1.bf16.msra.mxu1 %v2411_v59 }
 0x17c   :  { %947 = vmatprep.subr.bf16.mxu0 %v2415_v60  ;;  %988 = vmatprep.subr.bf16.mxu1 %v2417_v61 }
 0x17f   :  { %948 = vmatpush1.bf16.msra.mxu0 %v2423_v63  ;;  %989 = vmatpush1.bf16.msra.mxu1 %v2425_v1 }
 0x180   :  { %949 = vmatprep.subr.bf16.mxu0 %v2429_v2  ;;  %990 = vmatprep.subr.bf16.mxu1 %v2431_v3 }
 0x183   :  { %950 = vmatpush1.bf16.msra.mxu0 %v2435_v4  ;;  %991 = vmatpush1.bf16.msra.mxu1 %v2437_v5 }
 0x184   :  { %1055 = vmatprep.subr.bf16.mxu0 %v2341_v33  ;;  %1096 = vmatprep.subr.bf16.mxu1 %v2343_v34 }
 0x226   :  { %v849_v13 = vpop.f32.mrf.mxu0  ;;  %v890_v19 = vpop.f32.mrf.mxu1 }
 0x227   :  { %v897_v26 = vadd.f32 %v849_v13, %v2496_v24  ;;  %v899_v27 = vadd.f32 %v890_v19, %v2499_v25 }
 0x228   :  { %v851_v30 = vpop.f32.mrf.mxu0  ;;  %v892_v17 = vpop.f32.mrf.mxu1 }
 0x229   :  { %v1820_v23 = vmul.f32 -1.442695, %v897_v26  ;;  %v898_v53 = vadd.f32 %v851_v30, %v2501_v28  ;;  %v900_v9 = vadd.f32 %v892_v17, %v2504_v29 }
 0x22a   :  { %v853_v7 = vpop.f32.mrf.mxu0  ;;  %v894_v11 = vpop.f32.mrf.mxu1 }
 0x22b   :  { %2008 = vpow2.f32 %v1820_v23  ;;  %v1821_v21 = vmul.f32 -1.442695, %v898_v53  ;;  %v1822_v22 = vmul.f32 -1.442695, %v900_v9 }
 0x22c   :  { %v854_v35 = vpop.f32.mrf.mxu0  ;;  %v895_v16 = vpop.f32.mrf.mxu1 }
 0x22d   :  { %2010 = vpow2.f32 %v1821_v21 }
 0x22e   :  { %2012 = vtanh.f32 %v899_v27 }
 0x22f   :  { %2014 = vpow2.f32 %v1822_v22 }
 0x238   :  { %v2009_v18 = vpop.eup %2008 }
 0x239   :  { %v904_v20 = vadd.f32 1.0, %v2009_v18 }
 0x23a   :  { %v2011_v24 = vpop.eup %2010 }
 0x23b   :  { %2016 = vrcp.f32 %v904_v20  ;;  %v910_v0 = vadd.f32 1.0, %v2011_v24  ;;  %v2013_v28 = vpop.eup %2012 }
 0x23c   :  { %v2015_v14 = vpop.eup %2014 }
 0x23d   :  { %2018 = vrcp.f32 %v910_v0  ;;  %v917_v30 = vadd.f32 1.0, %v2015_v14 }
 0x23f   :  { %2020 = vrcp.f32 %v917_v30 }
 0x248   :  { %v2017_v12 = vpop.eup %2016 }
 0x249   :  { %v921_v13 = vmul.f32 %v2017_v12, %v2013_v28  ;;  %v2916_v28 = vld [vmem:[#allocation18_spill] sm:$0xff] }
 0x24a   :  { %v2019_v26 = vpop.eup %2018 }
 0x24b   :  { %v920_v23 = vmul.f32 %v2019_v26, %v2572_v8 }
 0x24c   :  { %v2021_v25 = vpop.eup %2020 }
 0x24d   :  { %v2618_v29 = vadd.f32 %v921_v13, %v920_v23 }
 0x24f   :  { %2022 = vtanh.f32 %v2618_v29 }
 0x25c   :  { %v2023_v19 = vpop.eup %2022 }
 0x25d   :  { %v924_v17 = vmul.f32 %v2023_v19, %v2021_v25 }
 0x25f   :  { %v934_v53 = vpack.c.bf16 %v924_v17, %v924_v17  ;;  %v1860_v7 = vpack.c.bf16 %v924_v17, %v2575_v15 }
 0x261   :  { %968 = vmatmul.mubr.bf16.vlgmr.msra.gmra.mxu0 %v934_v53  ;;  %1009 = vmatmul.mubr.bf16.vlgmr.msra.gmra.mxu1 %v934_v53  ;;  %1861 = vst [vmem:[#allocation10] sm:$0xff] %v1860_v7  }
 0x262   :  { %1056 = vmatpush1.bf16.msra.mxu0 %v2345_v36  ;;  %1097 = vmatpush1.bf16.msra.mxu1 %v2347_v37 }
 0x263   :  { %1057 = vmatprep.subr.bf16.mxu0 %v2351_v38  ;;  %1098 = vmatprep.subr.bf16.mxu1 %v2353_v39 }
 0x264   :  { %1087 = vmatprep.mubr.bf16.mxu0 %v2915_v10  ;;  %1128 = vmatprep.mubr.bf16.mxu1 %v2915_v10 }
 0x266   :  { %1058 = vmatpush1.bf16.msra.mxu0 %v2355_v40  ;;  %1099 = vmatpush1.bf16.msra.mxu1 %v2359_v41 }
 0x267   :  { %1059 = vmatprep.subr.bf16.mxu0 %v2363_v42  ;;  %1100 = vmatprep.subr.bf16.mxu1 %v2365_v43 }
 0x26a   :  { %1060 = vmatpush1.bf16.msra.mxu0 %v2369_v45  ;;  %1101 = vmatpush1.bf16.msra.mxu1 %v2371_v46 }
 0x26b   :  { %1061 = vmatprep.subr.bf16.mxu0 %v2375_v47  ;;  %1102 = vmatprep.subr.bf16.mxu1 %v2379_v48 }
 0x26e   :  { %1062 = vmatpush1.bf16.msra.mxu0 %v2381_v49  ;;  %1103 = vmatpush1.bf16.msra.mxu1 %v2383_v50 }
 0x26f   :  { %1063 = vmatprep.subr.bf16.mxu0 %v2387_v51  ;;  %1104 = vmatprep.subr.bf16.mxu1 %v2391_v52 }
 0x272   :  { %1064 = vmatpush1.bf16.msra.mxu0 %v2397_v54  ;;  %1105 = vmatpush1.bf16.msra.mxu1 %v2399_v55 }
 0x273   :  { %1065 = vmatprep.subr.bf16.mxu0 %v2403_v56  ;;  %1106 = vmatprep.subr.bf16.mxu1 %v2405_v57 }
 0x276   :  { %1066 = vmatpush1.bf16.msra.mxu0 %v2409_v58  ;;  %1107 = vmatpush1.bf16.msra.mxu1 %v2411_v59 }
 0x277   :  { %1067 = vmatprep.subr.bf16.mxu0 %v2415_v60  ;;  %1108 = vmatprep.subr.bf16.mxu1 %v2417_v61 }
 0x27a   :  { %1068 = vmatpush1.bf16.msra.mxu0 %v2423_v63  ;;  %1109 = vmatpush1.bf16.msra.mxu1 %v2425_v1 }
 0x27b   :  { %1069 = vmatprep.subr.bf16.mxu0 %v2429_v2  ;;  %1110 = vmatprep.subr.bf16.mxu1 %v2431_v3 }
 0x27e   :  { %1070 = vmatpush1.bf16.msra.mxu0 %v2435_v4  ;;  %1111 = vmatpush1.bf16.msra.mxu1 %v2437_v5 }
 0x27f   :  { %1175 = vmatprep.subr.bf16.mxu0 %v2341_v33  ;;  %1216 = vmatprep.subr.bf16.mxu1 %v2343_v34 }
 0x321   :  { %v969_v8 = vpop.f32.mrf.mxu0  ;;  %v1010_v15 = vpop.f32.mrf.mxu1 }
 0x322   :  { %v1017_v11 = vadd.f32 %v969_v8, %v2506_v32  ;;  %v1019_v14 = vadd.f32 %v1010_v15, %v2916_v28 }
 0x323   :  { %v971_v21 = vpop.f32.mrf.mxu0  ;;  %v1012_v35 = vpop.f32.mrf.mxu1 }
 0x324   :  { %v1823_v16 = vmul.f32 -1.442695, %v1017_v11  ;;  %v1018_v9 = vadd.f32 %v971_v21, %v2511_v62  ;;  %v1020_v0 = vadd.f32 %v1012_v35, %v2514_v6 }
 0x325   :  { %v973_v27 = vpop.f32.mrf.mxu0  ;;  %v1014_v22 = vpop.f32.mrf.mxu1 }
 0x326   :  { %2024 = vpow2.f32 %v1823_v16  ;;  %v1824_v18 = vmul.f32 -1.442695, %v1018_v9  ;;  %v1825_v12 = vmul.f32 -1.442695, %v1020_v0  ;;  %v2917_v16 = vld [vmem:[#allocation19_spill] sm:$0xff] }
 0x327   :  { %v974_v20 = vpop.f32.mrf.mxu0  ;;  %v1015_v24 = vpop.f32.mrf.mxu1 }
 0x328   :  { %2026 = vpow2.f32 %v1824_v18  ;;  %v2918_v20 = vld [vmem:[#allocation21_spill] sm:$0xff] }
 0x329   :  { %2028 = vtanh.f32 %v1019_v14 }
 0x32a   :  { %2030 = vpow2.f32 %v1825_v12 }
 0x333   :  { %v2025_v13 = vpop.eup %2024 }
 0x334   :  { %v1024_v26 = vadd.f32 1.0, %v2025_v13 }
 0x335   :  { %v2027_v32 = vpop.eup %2026 }
 0x336   :  { %2032 = vrcp.f32 %v1024_v26  ;;  %v1030_v30 = vadd.f32 1.0, %v2027_v32  ;;  %v2029_v62 = vpop.eup %2028  ;;  %v2919_v26 = vld [vmem:[#allocation22_spill] sm:$0xff]  ;;  %v2920_v32 = vld [vmem:[#allocation20_spill] sm:$0xff] }
 0x337   :  { %v2031_v23 = vpop.eup %2030 }
 0x338   :  { %2034 = vrcp.f32 %v1030_v30  ;;  %v1037_v53 = vadd.f32 1.0, %v2031_v23 }
 0x33a   :  { %2036 = vrcp.f32 %v1037_v53 }
 0x343   :  { %v2033_v25 = vpop.eup %2032 }
 0x344   :  { %v1041_v19 = vmul.f32 %v2033_v25, %v2029_v62 }
 0x345   :  { %v2035_v17 = vpop.eup %2034 }
 0x346   :  { %v1040_v7 = vmul.f32 %v2035_v17, %v2618_v29 }
 0x347   :  { %v2037_v8 = vpop.eup %2036 }
 0x348   :  { %v2661_v6 = vadd.f32 %v1041_v19, %v1040_v7 }
 0x34a   :  { %2038 = vtanh.f32 %v2661_v6 }
 0x357   :  { %v2039_v15 = vpop.eup %2038 }
 0x358   :  { %v2664_v11 = vmul.f32 %v2039_v15, %v2037_v8 }
 0x35a   :  { %v1054_v21 = vpack.c.bf16 %v2664_v11, %v2664_v11 }
 0x35c   :  { %1088 = vmatmul.mubr.bf16.vlgmr.msra.gmra.mxu0 %v1054_v21  ;;  %1129 = vmatmul.mubr.bf16.vlgmr.msra.gmra.mxu1 %v1054_v21 }
 0x35d   :  { %1176 = vmatpush1.bf16.msra.mxu0 %v2345_v36  ;;  %1217 = vmatpush1.bf16.msra.mxu1 %v2347_v37 }
 0x35e   :  { %1177 = vmatprep.subr.bf16.mxu0 %v2351_v38  ;;  %1218 = vmatprep.subr.bf16.mxu1 %v2353_v39 }
 0x35f   :  { %1207 = vmatprep.mubr.bf16.mxu0 %v2915_v10  ;;  %1248 = vmatprep.mubr.bf16.mxu1 %v2915_v10 }
 0x361   :  { %1178 = vmatpush1.bf16.msra.mxu0 %v2355_v40  ;;  %1219 = vmatpush1.bf16.msra.mxu1 %v2359_v41 }
 0x362   :  { %1179 = vmatprep.subr.bf16.mxu0 %v2363_v42  ;;  %1220 = vmatprep.subr.bf16.mxu1 %v2365_v43 }
 0x365   :  { %1180 = vmatpush1.bf16.msra.mxu0 %v2369_v45  ;;  %1221 = vmatpush1.bf16.msra.mxu1 %v2371_v46 }
 0x366   :  { %1181 = vmatprep.subr.bf16.mxu0 %v2375_v47  ;;  %1222 = vmatprep.subr.bf16.mxu1 %v2379_v48 }
 0x369   :  { %1182 = vmatpush1.bf16.msra.mxu0 %v2381_v49  ;;  %1223 = vmatpush1.bf16.msra.mxu1 %v2383_v50 }
 0x36a   :  { %1183 = vmatprep.subr.bf16.mxu0 %v2387_v51  ;;  %1224 = vmatprep.subr.bf16.mxu1 %v2391_v52 }
 0x36d   :  { %1184 = vmatpush1.bf16.msra.mxu0 %v2397_v54  ;;  %1225 = vmatpush1.bf16.msra.mxu1 %v2399_v55 }
 0x36e   :  { %1185 = vmatprep.subr.bf16.mxu0 %v2403_v56  ;;  %1226 = vmatprep.subr.bf16.mxu1 %v2405_v57 }
 0x371   :  { %1186 = vmatpush1.bf16.msra.mxu0 %v2409_v58  ;;  %1227 = vmatpush1.bf16.msra.mxu1 %v2411_v59 }
 0x372   :  { %1187 = vmatprep.subr.bf16.mxu0 %v2415_v60  ;;  %1228 = vmatprep.subr.bf16.mxu1 %v2417_v61 }
 0x375   :  { %1188 = vmatpush1.bf16.msra.mxu0 %v2423_v63  ;;  %1229 = vmatpush1.bf16.msra.mxu1 %v2425_v1 }
 0x376   :  { %1189 = vmatprep.subr.bf16.mxu0 %v2429_v2  ;;  %1230 = vmatprep.subr.bf16.mxu1 %v2431_v3 }
 0x379   :  { %1190 = vmatpush1.bf16.msra.mxu0 %v2435_v4  ;;  %1231 = vmatpush1.bf16.msra.mxu1 %v2437_v5 }
 0x37a   :  { %1295 = vmatprep.subr.bf16.mxu0 %v2341_v33  ;;  %1336 = vmatprep.subr.bf16.mxu1 %v2343_v34 }
 0x41c   :  { %v1089_v29 = vpop.f32.mrf.mxu0  ;;  %v1130_v35 = vpop.f32.mrf.mxu1 }
 0x41d   :  { %v1137_v9 = vadd.f32 %v1089_v29, %v2917_v16  ;;  %v1139_v34 = vadd.f32 %v1130_v35, %v2920_v32 }
 0x41e   :  { %v1091_v27 = vpop.f32.mrf.mxu0  ;;  %v1132_v22 = vpop.f32.mrf.mxu1 }
 0x41f   :  { %v1826_v18 = vmul.f32 -1.442695, %v1137_v9  ;;  %v1138_v24 = vadd.f32 %v1091_v27, %v2918_v20  ;;  %v1140_v33 = vadd.f32 %v1132_v22, %v2919_v26 }
 0x420   :  { %v1093_v0 = vpop.f32.mrf.mxu0  ;;  %v1134_v28 = vpop.f32.mrf.mxu1 }
 0x421   :  { %2040 = vpow2.f32 %v1826_v18  ;;  %v1827_v14 = vmul.f32 -1.442695, %v1138_v24  ;;  %v1828_v30 = vmul.f32 -1.442695, %v1140_v33 }
 0x422   :  { %v1094_v12 = vpop.f32.mrf.mxu0  ;;  %v1135_v13 = vpop.f32.mrf.mxu1 }
 0x423   :  { %2042 = vpow2.f32 %v1827_v14 }
 0x424   :  { %2044 = vtanh.f32 %v1139_v34 }
 0x425   :  { %2046 = vpow2.f32 %v1828_v30 }
 0x42e   :  { %v2041_v62 = vpop.eup %2040 }
 0x42f   :  { %v1144_v23 = vadd.f32 1.0, %v2041_v62 }
 0x430   :  { %v2043_v25 = vpop.eup %2042 }
 0x431   :  { %2048 = vrcp.f32 %v1144_v23  ;;  %v1150_v19 = vadd.f32 1.0, %v2043_v25  ;;  %v2045_v17 = vpop.eup %2044 }
 0x432   :  { %v2047_v53 = vpop.eup %2046 }
 0x433   :  { %2050 = vrcp.f32 %v1150_v19  ;;  %v1157_v21 = vadd.f32 1.0, %v2047_v53  ;;  %v2761_v19 = vld [vmem:[#allocation9 + $0xe0] ss:$16 sps:$4 sm:$0xff]   ;;  %v2767_v53 = vld [vmem:[#allocation9 + $0xc4] ss:$16 sps:$4 sm:$0xff]  }
 0x435   :  { %2052 = vrcp.f32 %v1157_v21  ;;  %v2781_v21 = vld [vmem:[#allocation9 + $0xa4] ss:$16 sps:$4 sm:$0xff]  }
 0x43e   :  { %v2049_v7 = vpop.eup %2048 }
 0x43f   :  { %v1161_v8 = vmul.f32 %v2049_v7, %v2045_v17  ;;  %v2764_v17 = vld [vmem:[#allocation9 + $0xe8] ss:$16 sps:$4 sm:$0xff]   ;;  %v2770_v7 = vld [vmem:[#allocation9 + $0xcc] ss:$16 sps:$4 sm:$0xff]  }
 0x440   :  { %v2051_v15 = vpop.eup %2050 }
 0x441   :  { %v1160_v29 = vmul.f32 %v2051_v15, %v2661_v6  ;;  %v2778_v15 = vld [vmem:[#allocation9 + $0xc8] ss:$16 sps:$4 sm:$0xff]  }
 0x442   :  { %v2053_v35 = vpop.eup %2052 }
 0x443   :  { %v2707_v16 = vadd.f32 %v1161_v8, %v1160_v29  ;;  %v2775_v8 = vld [vmem:[#allocation9 + $0xc0] ss:$16 sps:$4 sm:$0xff]   ;;  %v2784_v29 = vld [vmem:[#allocation9 + $0xac] ss:$16 sps:$4 sm:$0xff]  }
 0x445   :  { %2054 = vtanh.f32 %v2707_v16 }
 0x452   :  { %v2055_v9 = vpop.eup %2054 }
 0x453   :  { %v1164_v27 = vmul.f32 %v2055_v9, %v2053_v35  ;;  %v2790_v35 = vld [vmem:[#allocation9 + $0xa8] ss:$16 sps:$4 sm:$0xff]   ;;  %v2793_v9 = vld [vmem:[#allocation9 + $0x84] ss:$16 sps:$4 sm:$0xff]  }
 0x455   :  { %v1174_v22 = vpack.c.bf16 %v1164_v27, %v1164_v27  ;;  %v1865_v18 = vpack.c.bf16 %v1164_v27, %v2664_v11  ;;  %v2796_v27 = vld [vmem:[#allocation9 + $0x8c] ss:$16 sps:$4 sm:$0xff]  }
 0x457   :  { %1208 = vmatmul.mubr.bf16.vlgmr.msra.gmra.mxu0 %v1174_v22  ;;  %1249 = vmatmul.mubr.bf16.vlgmr.msra.gmra.mxu1 %v1174_v22  ;;  %1877 = vst [vmem:[#allocation10 + $0x8] sm:$0xff] %v1865_v18   ;;  %v2799_v22 = vld [vmem:[#allocation9 + $0x80] ss:$16 sps:$4 sm:$0xff]   ;;  %v2802_v18 = vld [vmem:[#allocation9 + $0x88] ss:$16 sps:$4 sm:$0xff]  }
 0x458   :  { %1296 = vmatpush1.bf16.msra.mxu0 %v2345_v36  ;;  %1337 = vmatpush1.bf16.msra.mxu1 %v2347_v37  ;;  %v2743_v36 = vld [vmem:[#allocation9 + $0xe4] ss:$16 sps:$4 sm:$0xff]   ;;  %v2746_v37 = vld [vmem:[#allocation9 + $0xec] ss:$16 sps:$4 sm:$0xff]  }
 0x459   :  { %1297 = vmatprep.subr.bf16.mxu0 %v2351_v38  ;;  %1338 = vmatprep.subr.bf16.mxu1 %v2353_v39 }
 0x45a   :  { %1327 = vmatprep.mubr.bf16.mxu0 %v2915_v10  ;;  %1368 = vmatprep.mubr.bf16.mxu1 %v2915_v10 }
 0x45c   :  { %1298 = vmatpush1.bf16.msra.mxu0 %v2355_v40  ;;  %1339 = vmatpush1.bf16.msra.mxu1 %v2359_v41  ;;  %v2921_v40 = vld [vmem:[#allocation23_spill] sm:$0xff] }
 0x45d   :  { %1299 = vmatprep.subr.bf16.mxu0 %v2363_v42  ;;  %1340 = vmatprep.subr.bf16.mxu1 %v2365_v43 }
 0x460   :  { %1300 = vmatpush1.bf16.msra.mxu0 %v2369_v45  ;;  %1341 = vmatpush1.bf16.msra.mxu1 %v2371_v46  ;;  %v2922_v46 = vld [vmem:[#allocation25_spill] sm:$0xff] }
 0x461   :  { %1301 = vmatprep.subr.bf16.mxu0 %v2375_v47  ;;  %1342 = vmatprep.subr.bf16.mxu1 %v2379_v48 }
 0x464   :  { %1302 = vmatpush1.bf16.msra.mxu0 %v2381_v49  ;;  %1343 = vmatpush1.bf16.msra.mxu1 %v2383_v50 }
 0x465   :  { %1303 = vmatprep.subr.bf16.mxu0 %v2387_v51  ;;  %1344 = vmatprep.subr.bf16.mxu1 %v2391_v52 }
 0x468   :  { %1304 = vmatpush1.bf16.msra.mxu0 %v2397_v54  ;;  %1345 = vmatpush1.bf16.msra.mxu1 %v2399_v55  ;;  %v2923_v54 = vld [vmem:[#allocation26_spill] sm:$0xff] }
 0x469   :  { %1305 = vmatprep.subr.bf16.mxu0 %v2403_v56  ;;  %1346 = vmatprep.subr.bf16.mxu1 %v2405_v57  ;;  %v2924_v56 = vld [vmem:[#allocation24_spill] sm:$0xff] }
 0x46c   :  { %1306 = vmatpush1.bf16.msra.mxu0 %v2409_v58  ;;  %1347 = vmatpush1.bf16.msra.mxu1 %v2411_v59 }
 0x46d   :  { %1307 = vmatprep.subr.bf16.mxu0 %v2415_v60  ;;  %1348 = vmatprep.subr.bf16.mxu1 %v2417_v61 }
 0x470   :  { %1308 = vmatpush1.bf16.msra.mxu0 %v2423_v63  ;;  %1349 = vmatpush1.bf16.msra.mxu1 %v2425_v1 }
 0x471   :  { %1309 = vmatprep.subr.bf16.mxu0 %v2429_v2  ;;  %1350 = vmatprep.subr.bf16.mxu1 %v2431_v3 }
 0x474   :  { %1310 = vmatpush1.bf16.msra.mxu0 %v2435_v4  ;;  %1351 = vmatpush1.bf16.msra.mxu1 %v2437_v5 }
 0x475   :  { %1415 = vmatprep.subr.bf16.mxu0 %v2743_v36  ;;  %1456 = vmatprep.subr.bf16.mxu1 %v2746_v37 }
 0x517   :  { %v1209_v38 = vpop.f32.mrf.mxu0  ;;  %v1250_v39 = vpop.f32.mrf.mxu1 }
 0x518   :  { %v1257_v41 = vadd.f32 %v1209_v38, %v2921_v40  ;;  %v1259_v57 = vadd.f32 %v1250_v39, %v2924_v56  ;;  %v2805_v38 = vld [vmem:[#allocation9 + $0x64] ss:$16 sps:$4 sm:$0xff]   ;;  %v2808_v39 = vld [vmem:[#allocation9 + $0x6c] ss:$16 sps:$4 sm:$0xff]   ;;  %v2811_v40 = vld [vmem:[#allocation9 + $0x60] ss:$16 sps:$4 sm:$0xff]  }
 0x519   :  { %v1211_v42 = vpop.f32.mrf.mxu0  ;;  %v1252_v43 = vpop.f32.mrf.mxu1 }
 0x51a   :  { %v1829_v45 = vmul.f32 -1.442695, %v1257_v41  ;;  %v1258_v47 = vadd.f32 %v1211_v42, %v2922_v46  ;;  %v1260_v55 = vadd.f32 %v1252_v43, %v2923_v54  ;;  %v2814_v41 = vld [vmem:[#allocation9 + $0x68] ss:$16 sps:$4 sm:$0xff]   ;;  %v2817_v42 = vld [vmem:[#allocation9 + $0x44] ss:$16 sps:$4 sm:$0xff]  }
 0x51b   :  { %v1213_v48 = vpop.f32.mrf.mxu0  ;;  %v1254_v49 = vpop.f32.mrf.mxu1  ;;  %v2820_v43 = vld [vmem:[#allocation9 + $0x4c] ss:$16 sps:$4 sm:$0xff]  }
 0x51c   :  { %2056 = vpow2.f32 %v1829_v45  ;;  %v1830_v50 = vmul.f32 -1.442695, %v1258_v47  ;;  %v1831_v6 = vmul.f32 -1.442695, %v1260_v55 }
 0x51d   :  { %v1214_v51 = vpop.f32.mrf.mxu0  ;;  %v1255_v52 = vpop.f32.mrf.mxu1 }
 0x51e   :  { %2058 = vpow2.f32 %v1830_v50  ;;  %v2928_v50 = vld [vmem:[#allocation28_spill] sm:$0xff] }
 0x51f   :  { %2060 = vtanh.f32 %v1259_v57 }
 0x520   :  { %2062 = vpow2.f32 %v1831_v6 }
 0x529   :  { %v2057_v11 = vpop.eup %2056 }
 0x52a   :  { %v1264_v20 = vadd.f32 1.0, %v2057_v11 }
 0x52b   :  { %v2059_v24 = vpop.eup %2058 }
 0x52c   :  { %2064 = vrcp.f32 %v1264_v20  ;;  %v1270_v0 = vadd.f32 1.0, %v2059_v24  ;;  %v2061_v28 = vpop.eup %2060 }
 0x52d   :  { %v2063_v14 = vpop.eup %2062 }
 0x52e   :  { %2066 = vrcp.f32 %v1270_v0  ;;  %v1277_v33 = vadd.f32 1.0, %v2063_v14 }
 0x530   :  { %2068 = vrcp.f32 %v1277_v33 }
 0x539   :  { %v2065_v12 = vpop.eup %2064 }
 0x53a   :  { %v1281_v13 = vmul.f32 %v2065_v12, %v2061_v28 }
 0x53b   :  { %v2067_v26 = vpop.eup %2066 }
 0x53c   :  { %v1280_v32 = vmul.f32 %v2067_v26, %v2707_v16  ;;  %v2787_v16 = vld [vmem:[#allocation9 + $0xa0] ss:$16 sps:$4 sm:$0xff]  }
 0x53d   :  { %v2069_v30 = vpop.eup %2068 }
 0x53e   :  { %v2754_v34 = vadd.f32 %v1281_v13, %v1280_v32 }
 0x540   :  { %2070 = vtanh.f32 %v2754_v34 }
 0x54d   :  { %v2071_v62 = vpop.eup %2070 }
 0x54e   :  { %v2757_v23 = vmul.f32 %v2071_v62, %v2069_v30  ;;  %v2144_v30 = vld [vmem:[#allocation9 + $0x24] ss:$16 sps:$4 sm:$0xff]   ;;  %v2145_v62 = vld [vmem:[#allocation9 + $0x2c] ss:$16 sps:$4 sm:$0xff]  }
 0x550   :  { %v1294_v25 = vpack.c.bf16 %v2757_v23, %v2757_v23 }
 0x552   :  { %1328 = vmatmul.mubr.bf16.vlgmr.msra.gmra.mxu0 %v1294_v25  ;;  %1369 = vmatmul.mubr.bf16.vlgmr.msra.gmra.mxu1 %v1294_v25  ;;  %v2147_v25 = vld [vmem:[#allocation9 + $0x28] ss:$16 sps:$4 sm:$0xff]  }
 0x553   :  { %1416 = vmatpush1.bf16.msra.mxu0 %v2761_v19  ;;  %1457 = vmatpush1.bf16.msra.mxu1 %v2764_v17 }
 0x554   :  { %1417 = vmatprep.subr.bf16.mxu0 %v2767_v53  ;;  %1458 = vmatprep.subr.bf16.mxu1 %v2770_v7 }
 0x555   :  { %1447 = vmatprep.mubr.bf16.mxu0 %v2915_v10  ;;  %1488 = vmatprep.mubr.bf16.mxu1 %v2915_v10 }
 0x557   :  { %1418 = vmatpush1.bf16.msra.mxu0 %v2775_v8  ;;  %1459 = vmatpush1.bf16.msra.mxu1 %v2778_v15 }
 0x558   :  { %1419 = vmatprep.subr.bf16.mxu0 %v2781_v21  ;;  %1460 = vmatprep.subr.bf16.mxu1 %v2784_v29 }
 0x55b   :  { %1420 = vmatpush1.bf16.msra.mxu0 %v2787_v16  ;;  %1461 = vmatpush1.bf16.msra.mxu1 %v2790_v35 }
 0x55c   :  { %1421 = vmatprep.subr.bf16.mxu0 %v2793_v9  ;;  %1462 = vmatprep.subr.bf16.mxu1 %v2796_v27 }
 0x55f   :  { %1422 = vmatpush1.bf16.msra.mxu0 %v2799_v22  ;;  %1463 = vmatpush1.bf16.msra.mxu1 %v2802_v18 }
 0x560   :  { %1423 = vmatprep.subr.bf16.mxu0 %v2805_v38  ;;  %1464 = vmatprep.subr.bf16.mxu1 %v2808_v39 }
 0x563   :  { %1424 = vmatpush1.bf16.msra.mxu0 %v2811_v40  ;;  %1465 = vmatpush1.bf16.msra.mxu1 %v2814_v41 }
 0x564   :  { %1425 = vmatprep.subr.bf16.mxu0 %v2817_v42  ;;  %1466 = vmatprep.subr.bf16.mxu1 %v2820_v43 }
 0x567   :  { %1426 = vmatpush1.bf16.msra.mxu0 %v2409_v58  ;;  %1467 = vmatpush1.bf16.msra.mxu1 %v2411_v59 }
 0x568   :  { %1427 = vmatprep.subr.bf16.mxu0 %v2415_v60  ;;  %1468 = vmatprep.subr.bf16.mxu1 %v2417_v61  ;;  %v2925_v60 = vld [vmem:[#allocation27_spill] sm:$0xff] }
 0x56b   :  { %1428 = vmatpush1.bf16.msra.mxu0 %v2423_v63  ;;  %1469 = vmatpush1.bf16.msra.mxu1 %v2425_v1  ;;  %v2926_v1 = vld [vmem:[#allocation29_spill] sm:$0xff] }
 0x56c   :  { %1429 = vmatprep.subr.bf16.mxu0 %v2429_v2  ;;  %1470 = vmatprep.subr.bf16.mxu1 %v2431_v3 }
 0x56f   :  { %1430 = vmatpush1.bf16.msra.mxu0 %v2435_v4  ;;  %1471 = vmatpush1.bf16.msra.mxu1 %v2437_v5  ;;  %v2927_v5 = vld [vmem:[#allocation30_spill] sm:$0xff] }
 0x570   :  { %1535 = vmatprep.subr.bf16.mxu0 %v2743_v36  ;;  %1576 = vmatprep.subr.bf16.mxu1 %v2746_v37 }
 0x612   :  { %v1329_v58 = vpop.f32.mrf.mxu0  ;;  %v1370_v59 = vpop.f32.mrf.mxu1 }
 0x613   :  { %v1377_v61 = vadd.f32 %v1329_v58, %v2925_v60  ;;  %v1379_v37 = vadd.f32 %v1370_v59, %v2928_v50  ;;  %v2932_v58 = vld [vmem:[#allocation32_spill] sm:$0xff] }
 0x614   :  { %v1331_v45 = vpop.f32.mrf.mxu0  ;;  %v1372_v63 = vpop.f32.mrf.mxu1 }
 0x615   :  { %v1832_v46 = vmul.f32 -1.442695, %v1377_v61  ;;  %v1378_v47 = vadd.f32 %v1331_v45, %v2926_v1  ;;  %v1380_v36 = vadd.f32 %v1372_v63, %v2927_v5 }
 0x616   :  { %v1333_v2 = vpop.f32.mrf.mxu0  ;;  %v1374_v48 = vpop.f32.mrf.mxu1 }
 0x617   :  { %2072 = vpow2.f32 %v1832_v46  ;;  %v1833_v3 = vmul.f32 -1.442695, %v1378_v47  ;;  %v1834_v51 = vmul.f32 -1.442695, %v1380_v36 }
 0x618   :  { %v1334_v4 = vpop.f32.mrf.mxu0  ;;  %v1375_v49 = vpop.f32.mrf.mxu1 }
 0x619   :  { %2074 = vpow2.f32 %v1833_v3 }
 0x61a   :  { %2076 = vtanh.f32 %v1379_v37 }
 0x61b   :  { %2078 = vpow2.f32 %v1834_v51 }
 0x624   :  { %v2073_v52 = vpop.eup %2072 }
 0x625   :  { %v1384_v54 = vadd.f32 1.0, %v2073_v52 }
 0x626   :  { %v2075_v55 = vpop.eup %2074 }
 0x627   :  { %2080 = vrcp.f32 %v1384_v54  ;;  %v1390_v56 = vadd.f32 1.0, %v2075_v55  ;;  %v2077_v57 = vpop.eup %2076  ;;  %v2933_v55 = vld [vmem:[#allocation35_spill] sm:$0xff] }
 0x628   :  { %v2079_v6 = vpop.eup %2078 }
 0x629   :  { %2082 = vrcp.f32 %v1390_v56  ;;  %v1397_v0 = vadd.f32 1.0, %v2079_v6 }
 0x62b   :  { %2084 = vrcp.f32 %v1397_v0 }
 0x634   :  { %v2081_v11 = vpop.eup %2080 }
 0x635   :  { %v1401_v20 = vmul.f32 %v2081_v11, %v2077_v57 }
 0x636   :  { %v2083_v24 = vpop.eup %2082 }
 0x637   :  { %v1400_v28 = vmul.f32 %v2083_v24, %v2754_v34  ;;  %v2143_v34 = vld [vmem:[#allocation9 + $0x48] ss:$16 sps:$4 sm:$0xff]  }
 0x638   :  { %v2085_v12 = vpop.eup %2084 }
 0x639   :  { %v2840_v14 = vadd.f32 %v1401_v20, %v1400_v28 }
 0x63b   :  { %2086 = vtanh.f32 %v2840_v14 }
 0x648   :  { %v2087_v13 = vpop.eup %2086 }
 0x649   :  { %v1404_v26 = vmul.f32 %v2087_v13, %v2085_v12 }
 0x64b   :  { %v1414_v33 = vpack.c.bf16 %v1404_v26, %v1404_v26  ;;  %v1870_v32 = vpack.c.bf16 %v1404_v26, %v2757_v23  ;;  %v2146_v23 = vld [vmem:[#allocation9 + $0x20] ss:$16 sps:$4 sm:$0xff]  }
 0x64c   :  { %v2934_v26 = vld [vmem:[#allocation36_spill] sm:$0xff] }
 0x64d   :  { %1448 = vmatmul.mubr.bf16.vlgmr.msra.gmra.mxu0 %v1414_v33  ;;  %1489 = vmatmul.mubr.bf16.vlgmr.msra.gmra.mxu1 %v1414_v33  ;;  %1878 = vst [vmem:[#allocation10 + $0x10] sm:$0xff] %v1870_v32  }
 0x64e   :  { %1536 = vmatpush1.bf16.msra.mxu0 %v2761_v19  ;;  %1577 = vmatpush1.bf16.msra.mxu1 %v2764_v17  ;;  %v2148_v19 = vld [vmem:[#allocation9 + $0x4] ss:$16 sps:$4 sm:$0xff]   ;;  %v2149_v17 = vld [vmem:[#allocation9 + $0xc] ss:$16 sps:$4 sm:$0xff]  }
 0x64f   :  { %1537 = vmatprep.subr.bf16.mxu0 %v2767_v53  ;;  %1578 = vmatprep.subr.bf16.mxu1 %v2770_v7  ;;  %v2150_v53 = vld [vmem:[#allocation9] ss:$16 sps:$4 sm:$0xff]   ;;  %v2151_v7 = vld [vmem:[#allocation9 + $0x8] ss:$16 sps:$4 sm:$0xff]  }
 0x650   :  { %1567 = vmatprep.mubr.bf16.mxu0 %v2915_v10  ;;  %1608 = vmatprep.mubr.bf16.mxu1 %v2915_v10  ;;  %v2142_v10 = vld [vmem:[#allocation9 + $0x40] ss:$16 sps:$4 sm:$0xff]  }
 0x652   :  { %1538 = vmatpush1.bf16.msra.mxu0 %v2775_v8  ;;  %1579 = vmatpush1.bf16.msra.mxu1 %v2778_v15 }
 0x653   :  { %1539 = vmatprep.subr.bf16.mxu0 %v2781_v21  ;;  %1580 = vmatprep.subr.bf16.mxu1 %v2784_v29  ;;  %v2929_v21 = vld [vmem:[#allocation31_spill] sm:$0xff] }
 0x656   :  { %1540 = vmatpush1.bf16.msra.mxu0 %v2787_v16  ;;  %1581 = vmatpush1.bf16.msra.mxu1 %v2790_v35 }
 0x657   :  { %1541 = vmatprep.subr.bf16.mxu0 %v2793_v9  ;;  %1582 = vmatprep.subr.bf16.mxu1 %v2796_v27  ;;  %v2930_v27 = vld [vmem:[#allocation33_spill] sm:$0xff] }
 0x65a   :  { %1542 = vmatpush1.bf16.msra.mxu0 %v2799_v22  ;;  %1583 = vmatpush1.bf16.msra.mxu1 %v2802_v18 }
 0x65b   :  { %1543 = vmatprep.subr.bf16.mxu0 %v2805_v38  ;;  %1584 = vmatprep.subr.bf16.mxu1 %v2808_v39 }
 0x65e   :  { %1544 = vmatpush1.bf16.msra.mxu0 %v2811_v40  ;;  %1585 = vmatpush1.bf16.msra.mxu1 %v2814_v41 }
 0x65f   :  { %1545 = vmatprep.subr.bf16.mxu0 %v2817_v42  ;;  %1586 = vmatprep.subr.bf16.mxu1 %v2820_v43  ;;  %v2931_v42 = vld [vmem:[#allocation34_spill] sm:$0xff] }
 0x662   :  { %1546 = vmatpush1.bf16.msra.mxu0 %v2142_v10  ;;  %1587 = vmatpush1.bf16.msra.mxu1 %v2143_v34 }
 0x663   :  { %1547 = vmatprep.subr.bf16.mxu0 %v2144_v30  ;;  %1588 = vmatprep.subr.bf16.mxu1 %v2145_v62 }
 0x666   :  { %1548 = vmatpush1.bf16.msra.mxu0 %v2146_v23  ;;  %1589 = vmatpush1.bf16.msra.mxu1 %v2147_v25 }
 0x667   :  { %1549 = vmatprep.subr.bf16.mxu0 %v2148_v19  ;;  %1590 = vmatprep.subr.bf16.mxu1 %v2149_v17 }
 0x66a   :  { %1550 = vmatpush1.bf16.msra.mxu0 %v2150_v53  ;;  %1591 = vmatpush1.bf16.msra.mxu1 %v2151_v7 }
 0x70d   :  { %v1449_v8 = vpop.f32.mrf.mxu0  ;;  %v1490_v15 = vpop.f32.mrf.mxu1 }
 0x70e   :  { %v1497_v29 = vadd.f32 %v1449_v8, %v2929_v21  ;;  %v1499_v59 = vadd.f32 %v1490_v15, %v2932_v58 }
 0x70f   :  { %v1451_v16 = vpop.f32.mrf.mxu0  ;;  %v1492_v35 = vpop.f32.mrf.mxu1 }
 0x710   :  { %v1835_v9 = vmul.f32 -1.442695, %v1497_v29  ;;  %v1498_v22 = vadd.f32 %v1451_v16, %v2930_v27  ;;  %v1500_v43 = vadd.f32 %v1492_v35, %v2931_v42 }
 0x711   :  { %v1453_v18 = vpop.f32.mrf.mxu0  ;;  %v1494_v38 = vpop.f32.mrf.mxu1 }
 0x712   :  { %2088 = vpow2.f32 %v1835_v9  ;;  %v1836_v39 = vmul.f32 -1.442695, %v1498_v22  ;;  %v1837_v60 = vmul.f32 -1.442695, %v1500_v43 }
 0x713   :  { %v1454_v40 = vpop.f32.mrf.mxu0  ;;  %v1495_v41 = vpop.f32.mrf.mxu1 }
 0x714   :  { %2090 = vpow2.f32 %v1836_v39 }
 0x715   :  { %2092 = vtanh.f32 %v1499_v59 }
 0x716   :  { %2094 = vpow2.f32 %v1837_v60 }
 0x71f   :  { %v2089_v61 = vpop.eup %2088 }
 0x720   :  { %v1504_v45 = vadd.f32 1.0, %v2089_v61 }
 0x721   :  { %v2091_v63 = vpop.eup %2090 }
 0x722   :  { %2096 = vrcp.f32 %v1504_v45  ;;  %v1510_v46 = vadd.f32 1.0, %v2091_v63  ;;  %v2093_v1 = vpop.eup %2092 }
 0x723   :  { %v2095_v47 = vpop.eup %2094 }
 0x724   :  { %2098 = vrcp.f32 %v1510_v46  ;;  %v1517_v4 = vadd.f32 1.0, %v2095_v47 }
 0x726   :  { %2100 = vrcp.f32 %v1517_v4 }
 0x72f   :  { %v2097_v2 = vpop.eup %2096 }
 0x730   :  { %v1521_v48 = vmul.f32 %v2097_v2, %v2093_v1 }
 0x731   :  { %v2099_v3 = vpop.eup %2098 }
 0x732   :  { %v1520_v49 = vmul.f32 %v2099_v3, %v2840_v14 }
 0x733   :  { %v2101_v36 = vpop.eup %2100 }
 0x734   :  { %v1522_v5 = vadd.f32 %v1521_v48, %v1520_v49 }
 0x736   :  { %2102 = vtanh.f32 %v1522_v5 }
 0x743   :  { %v2103_v50 = vpop.eup %2102 }
 0x744   :  { %v1524_v37 = vmul.f32 %v2103_v50, %v2101_v36 }
 0x746   :  { %v1534_v51 = vpack.c.bf16 %v1524_v37, %v1524_v37 }
 0x748   :  { %1568 = vmatmul.mubr.bf16.vlgmr.msra.gmra.mxu0 %v1534_v51  ;;  %1609 = vmatmul.mubr.bf16.vlgmr.msra.gmra.mxu1 %v1534_v51 }
 0x808   :  { %v1569_v52 = vpop.f32.mrf.mxu0  ;;  %v1610_v54 = vpop.f32.mrf.mxu1 }
 0x809   :  { %v1617_v56 = vadd.f32 %v1569_v52, %v2933_v55  ;;  %v1619_v33 = vadd.f32 %v1610_v54, %v2934_v26 }
 0x80a   :  { %v1571_v57 = vpop.f32.mrf.mxu0  ;;  %v1612_v6 = vpop.f32.mrf.mxu1 }
 0x80b   :  { %v1838_v11 = vmul.f32 -1.442695, %v1617_v56  ;;  %v1618_v20 = vadd.f32 %v1571_v57, %v2562_v31  ;;  %v1620_v13 = vadd.f32 %v1612_v6, %v2565_v44 }
 0x80c   :  { %v1573_v24 = vpop.f32.mrf.mxu0  ;;  %v1614_v0 = vpop.f32.mrf.mxu1 }
 0x80d   :  { %2104 = vpow2.f32 %v1838_v11  ;;  %v1839_v28 = vmul.f32 -1.442695, %v1618_v20  ;;  %v1840_v32 = vmul.f32 -1.442695, %v1620_v13 }
 0x80e   :  { %v1574_v14 = vpop.f32.mrf.mxu0  ;;  %v1615_v12 = vpop.f32.mrf.mxu1 }
 0x80f   :  { %2106 = vpow2.f32 %v1839_v28 }
 0x810   :  { %2108 = vtanh.f32 %v1619_v33 }
 0x811   :  { %2110 = vpow2.f32 %v1840_v32 }
 0x81a   :  { %v2105_v10 = vpop.eup %2104 }
 0x81b   :  { %v1624_v34 = vadd.f32 1.0, %v2105_v10 }
 0x81c   :  { %v2107_v30 = vpop.eup %2106 }
 0x81d   :  { %2112 = vrcp.f32 %v1624_v34  ;;  %v1630_v62 = vadd.f32 1.0, %v2107_v30  ;;  %v2109_v31 = vpop.eup %2108 }
 0x81e   :  { %v2111_v23 = vpop.eup %2110 }
 0x81f   :  { %2114 = vrcp.f32 %v1630_v62  ;;  %v1637_v53 = vadd.f32 1.0, %v2111_v23 }
 0x821   :  { %2116 = vrcp.f32 %v1637_v53 }
 0x82a   :  { %v2113_v25 = vpop.eup %2112 }
 0x82b   :  { %v1641_v19 = vmul.f32 %v2113_v25, %v2109_v31 }
 0x82c   :  { %v2115_v17 = vpop.eup %2114 }
 0x82d   :  { %v1640_v7 = vmul.f32 %v2115_v17, %v1522_v5 }
 0x82e   :  { %v2117_v44 = vpop.eup %2116 }
 0x82f   :  { %v1642_v8 = vadd.f32 %v1641_v19, %v1640_v7 }
 0x831   :  { %2118 = vtanh.f32 %v1642_v8  ;;  %1648 = vst [vmem:[#allocation13] sm:$0xff] %v1642_v8 }
 0x83e   :  { %v2119_v15 = vpop.eup %2118 }
 0x83f   :  { %v1644_v21 = vmul.f32 %v2119_v15, %v2117_v44 }
 0x841   :  { %1647 = vst [vmem:[#allocation11] sm:$0xff] %v1644_v21  ;;  %v1875_v29 = vpack.c.bf16 %v1644_v21, %v1524_v37 }
 0x842   :  { %2223 = shalt.err (!%p2220_p5)
}
 0x843   :  { %1718 = dma.vmem_to_hbm [thread:$0]  %s1716_s15, 128, %s2892_s5, [#allocation12]   ;;  %1879 = vst [vmem:[#allocation10 + $0x18] sm:$0xff] %v1875_v29  }
 0x844   :  { %s2232_s23 = scalar_lea.vmem %s1726_s17, 128  ;;  %p2237_p7 = scmp.lt.s32.totalorder %s1726_s17, %s1726_s17 }
 0x845   :  { %p2233_p6 = scmp.ne.s32.totalorder %s1726_s17, %s2232_s23  ;;  %p2238_p8 = scmp.lt.s32.totalorder %s2232_s23, %s2232_s23 }
 0x847   :  { %p2239_p9 = por %p2238_p8, %p2237_p7 }
 0x849   :  { %p2240_p10 = pnand %p2239_p9, %p2233_p6 }
 0x84b   :  { %2243 = shalt.err (!%p2240_p10)
}
 0x84c   :  { %1728 = dma.vmem_to_hbm [thread:$0]  %s1726_s17, 128, %s2893_s6, [#allocation12]  }
 0x84d   :  { %s2252_s26 = scalar_lea.vmem %s1703_s19, 512  ;;  %p2257_p12 = scmp.lt.s32.totalorder %s1703_s19, %s1703_s19 }
 0x84e   :  { %p2253_p11 = scmp.ne.s32.totalorder %s1703_s19, %s2252_s26  ;;  %p2258_p13 = scmp.lt.s32.totalorder %s2252_s26, %s2252_s26 }
 0x850   :  { %p2259_p0 = por %p2258_p13, %p2257_p12 }
 0x852   :  { %p2260_p1 = pnand %p2259_p0, %p2253_p11 }
 0x854   :  { %2263 = shalt.err (!%p2260_p1)
}
 0x855   :  { %1708 = dma.vmem_to_hbm [thread:$0]  %s1703_s19, 512, %s2891_s4, [#allocation6], %s2284_s7, %s2284_s7, %s2285_s8  }
 0x856   :  { %2276 = dma.done.wait [#allocation6], 512  }
 0x857   :  { %2277 = vsyncadd [#allocation6], 4294966784 }
 0x858   :  { %2278 = dma.done.wait [#allocation12], 256  }
 0x859   :  { %2279 = vsyncadd [#allocation12], 4294967040 }
 0x85a   :  { %1738 = vsyncpa [#allocation5], 1 }
 0x85b   :  { %1739 = vsyncpa [#allocation8], 1 }
 0x85c   :  { %1740 = vsyncpa [#allocation6], 1 }
 0x85d   :  { %1741 = vsyncpa [#allocation12], 1 }

</bundles_post_ra>
